<compile_context>
chip_gen: v7x
topology: tpu7x:2x2x1
jax: 0.10.0
libtpu: 0.0.40
codegen_flags: <defaults>
</compile_context>

<pallas_src>
import functools

import jax
import jax.numpy as jnp
import numpy as np
from jax.experimental import pallas as pl
from jax.experimental.pallas import tpu as pltpu

HIDDEN = 32
BATCH = 2
SEQ = 8
NUM_HOPS = 2

# Gate feature parts, in the reference concat order:
#   z = [f*q, f*m, f*a, q*a, |f-q|, |f-m|, |f-a|, |q-a|]
_BASE_PARTS = (0, 2, 3, 4, 6, 7)   # independent of prev_mem (hoisted out of hop loop)
_MEM_PARTS = (1, 5)                # depend on prev_mem (recomputed per hop)


def _memory_kernel(facts_ref, qam_ref, w_ref, out_ref, *,
                   hop_start, n_hops, total_hops, use_bf16):
    B, S, H = facts_ref.shape
    f32 = jnp.float32
    cdt = jnp.bfloat16 if use_bf16 else jnp.float32   # MXU input dtype only

    # Packed-weight row layout (must match pack_params):
    r_wr, r_wh, r_ur, r_uh = 0, H, 2 * H, 3 * H
    r_w1_base = 4 * H                                  # (6H, H)
    r_w1_mem = 10 * H                                  # (2H, H)
    r_mem_w = 12 * H                                   # total_hops * (4H, H)
    r_misc = r_mem_w + 4 * H * total_hops              # gate_b1,gate_w2,gru_br,gru_bh,mem_b[h]

    def wslab(r0, nrows, cast=True):                   # static Ref slice -> value
        v = w_ref[r0:r0 + nrows, :]
        return v.astype(cdt) if cast else v.astype(f32)

    def mxu(x, w):                                     # bf16 (or f32) in, f32 accumulate
        return jnp.dot(x.astype(cdt), w, preferred_element_type=f32)

    f = facts_ref[...].astype(f32)                     # (B, S, H)
    f2 = f.reshape(B * S, H)
    qv = qam_ref[0].astype(f32)                        # (B, H)
    av = qam_ref[1].astype(f32)
    mv = qam_ref[2].astype(f32)                        # prev_mem, carried across hops

    gate_b1 = wslab(r_misc + 0, 1, cast=False)         # (1, H)
    gate_w2 = wslab(r_misc + 1, 1, cast=False)         # (1, H)  Linear(H,1,bias=False)
    gru_br = wslab(r_misc + 2, 1, cast=False)
    gru_bh = wslab(r_misc + 3, 1, cast=False)

    def bcast(v):                                      # (B, H) -> (B*S, H)
        return jnp.broadcast_to(v[:, None, :], (B, S, H)).reshape(B * S, H)

    q2 = bcast(qv)
    a2 = bcast(av)

    # ---- gate layer 1, hop-invariant contribution: ONE (B*S, 6H) @ (6H, H) matmul
    z_base = jnp.concatenate(
        [f2 * q2, f2 * a2, q2 * a2,
         jnp.abs(f2 - q2), jnp.abs(f2 - a2), jnp.abs(q2 - a2)], axis=-1)
    gate_base = mxu(z_base, wslab(r_w1_base, 6 * H)) + gate_b1         # (B*S, H)

    # ---- hoisted AttentionGRU x-side projection: ONE (B*S, H) @ (H, 2H) matmul
    w_x = jnp.concatenate([wslab(r_wr, H), wslab(r_wh, H)], axis=-1)   # (H, 2H) [Wr|Wh]
    w_hh = jnp.concatenate([wslab(r_ur, H), wslab(r_uh, H)], axis=-1)  # (H, 2H) [Ur|Uh]
    x_proj = mxu(f2, w_x)                                              # (B*S, 2H)
    xr_all = (x_proj[:, :H] + gru_br).reshape(B, S, H)
    xh_all = (x_proj[:, H:] + gru_bh).reshape(B, S, H)

    w1_mem = wslab(r_w1_mem, 2 * H)                                    # (2H, H)

    outs = []
    for j in range(n_hops):                            # static unroll over hops
        hop = hop_start + j

        # ---- gate: prev_mem-dependent parts as ONE (B*S, 2H) matmul, tanh,
        #      lane reduce against w2, softmax over S.
        m2 = bcast(mv)
        z_mem = jnp.concatenate([f2 * m2, jnp.abs(f2 - m2)], axis=-1)
        pre = gate_base + mxu(z_mem, w1_mem)
        h1 = jnp.tanh(pre).reshape(B, S, H)
        scores = jnp.sum(h1 * gate_w2[None, :, :], axis=-1)            # (B, S)
        # scores are bounded (tanh in [-1,1]) -> skip max subtraction.
        e = jnp.exp(scores)
        denom = jnp.sum(e, axis=-1, keepdims=True)
        if use_bf16:
            gate = e * pl.reciprocal(denom, approx=True)               # EUP slot
        else:
            gate = e / denom                                           # exact baseline

        # ---- attention GRU (Xiong et al. 2016): ONE matmul per step on the
        #      serial chain (h @ [Ur|Uh]); x-side already hoisted above.
        #   r_t  = sigmoid(x_t Wr + h Ur + br)
        #   h~_t = tanh(x_t Wh + r_t * (h Uh) + bh)
        #   h_t  = g_t * h~_t + (1 - g_t) * h_{t-1}
        h = jnp.zeros((B, H), f32)
        for t in range(S):                             # static unroll, S is small
            hp = mxu(h, w_hh)                          # (B, 2H)
            r = jax.nn.sigmoid(xr_all[:, t, :] + hp[:, :H])
            h_til = jnp.tanh(xh_all[:, t, :] + r * hp[:, H:])
            g_t = gate[:, t:t + 1]                     # (B, 1)
            h = g_t * h_til + (1.0 - g_t) * h
        context = h
        # TODO(synk): nn.Dropout treated as identity (eval mode); no RNG mask applied.

        # ---- memory update: ReLU(Linear([prev_mem, ctx, q, a])) as ONE
        #      (B, 4H=128) @ (4H, H) matmul (K=128 fills the v5e MXU depth).
        mem_in = jnp.concatenate([mv, context, qv, av], axis=-1)       # (B, 4H)
        mem_w = wslab(r_mem_w + 4 * H * hop, 4 * H)                    # (4H, H)
        mem_b = wslab(r_misc + 4 + hop, 1, cast=False)                 # (1, H)
        nxt = jnp.maximum(mxu(mem_in, mem_w) + mem_b, 0.0)
        outs.append(nxt)
        mv = nxt                                       # carry memory to next hop

    # Single store of all hop outputs (was n_hops masked 32-lane partial stores).
    # TODO(synk): pad output to >=128 lanes if the caller can take it (avoids vst.msk).
    out_ref[...] = jnp.concatenate(outs, axis=-1).astype(out_ref.dtype)


def _call_kernel(facts, qam, packed, hop_start, n_hops, use_bf16):
    B, S, H = facts.shape
    vmem = pl.BlockSpec(memory_space=pltpu.MemorySpace.VMEM)
    kernel = functools.partial(
        _memory_kernel, hop_start=hop_start, n_hops=n_hops,
        total_hops=packed["num_hops"], use_bf16=use_bf16)
    # Gridless single-program kernel: total footprint is ~100 KB, far below VMEM
    # on every generation (including v7x's 64 MiB), so no grid/tiling -- a grid
    # would only add ~0.35 us/step pipeline overhead at B=2, S=8, H=32.
    # TODO(synk): with a much larger batch, add a leading "parallel" grid axis
    # over batch so both v7x TensorCores are used.
    return pl.pallas_call(
        kernel,
        out_shape=jax.ShapeDtypeStruct((B, n_hops * H), facts.dtype),
        in_specs=[vmem, vmem, vmem],
        out_specs=vmem,
    )(facts, qam, packed["weights"])


def memory_episode_forward(facts, question, answer, init_mem, packed, use_bf16=True):
    """All hops fused in ONE pallas_call. Hop h memory is out[:, h*H:(h+1)*H]."""
    qam = jnp.stack([question, answer, init_mem])      # (3, B, H) -> one DMA
    return _call_kernel(facts, qam, packed, 0, packed["num_hops"], use_bf16)


def memory_module_forward(facts, question, answer, prev_mem, packed, hop, use_bf16=True):
    """Single-hop forward matching the original PyTorch module signature."""
    qam = jnp.stack([question, answer, prev_mem])
    return _call_kernel(facts, qam, packed, hop, 1, use_bf16)


# ------------------------- parameter construction / packing -------------------------

def _xavier_normal(key, shape):
    fan_in, fan_out = shape
    std = (2.0 / (fan_in + fan_out)) ** 0.5
    return std * jax.random.normal(key, shape, dtype=jnp.float32)


def init_params(key, hidden, num_hops):
    H = hidden
    keys = jax.random.split(key, 6 + num_hops)
    return dict(
        gate_w1=_xavier_normal(keys[0], (8 * H, H)),
        gate_b1=jnp.zeros((1, H), jnp.float32),
        gate_w2=_xavier_normal(keys[1], (H, 1)).reshape(1, H),   # Linear(H,1,bias=False)
        gru_wr=_xavier_normal(keys[2], (H, H)),
        gru_ur=_xavier_normal(keys[3], (H, H)),
        gru_br=jnp.zeros((1, H), jnp.float32),
        gru_wh=_xavier_normal(keys[4], (H, H)),
        gru_uh=_xavier_normal(keys[5], (H, H)),
        gru_bh=jnp.zeros((1, H), jnp.float32),
        mem_w=[_xavier_normal(keys[6 + i], (4 * H, H)) for i in range(num_hops)],
        mem_b=[jnp.zeros((1, H), jnp.float32) for _ in range(num_hops)],
    )


def pack_params(params):
    """Pack ALL module parameters into ONE (rows, H) f32 operand (3 DMAs total).

    Row layout (H = hidden):
      [0, H)    Wr      [H, 2H)  Wh      [2H, 3H)  Ur      [3H, 4H)  Uh
      [4H, 10H)   gate W1 rows for parts (f*q, f*a, q*a, |f-q|, |f-a|, |q-a|)
      [10H, 12H)  gate W1 rows for parts (f*m, |f-m|)
      [12H, 12H+4H*hops)  per-hop memory Linear weights, (4H, H) each
      then 4+hops rows:   gate_b1, gate_w2, gru_br, gru_bh, mem_b[0..hops-1]
    """
    H = params["gru_wr"].shape[0]
    num_hops = len(params["mem_w"])
    w1 = params["gate_w1"].reshape(8, H, H)
    rows = [params["gru_wr"], params["gru_wh"], params["gru_ur"], params["gru_uh"]]
    rows += [w1[k] for k in _BASE_PARTS]
    rows += [w1[k] for k in _MEM_PARTS]
    rows += list(params["mem_w"])
    rows += [params["gate_b1"], params["gate_w2"].reshape(1, H),
             params["gru_br"], params["gru_bh"]]
    rows += [b.reshape(1, H) for b in params["mem_b"]]
    weights = jnp.concatenate(rows, axis=0).astype(jnp.float32)   # (12H+4H*hops+4+hops, H)
    return dict(weights=weights, num_hops=num_hops)


# ------------------------- pure-JAX reference (per hop) -------------------------

def reference_forward(facts, question, answer, prev_mem, params, hop):
    # HIGHEST matmul precision so the f32 kernel variant can be checked tightly.
    with jax.default_matmul_precision("highest"):
        f = facts
        qb = jnp.broadcast_to(question[:, None, :], f.shape)
        ab = jnp.broadcast_to(answer[:, None, :], f.shape)
        mb = jnp.broadcast_to(prev_mem[:, None, :], f.shape)
        z = jnp.concatenate(
            [f * qb, f * mb, f * ab, qb * ab,
             jnp.abs(f - qb), jnp.abs(f - mb), jnp.abs(f - ab), jnp.abs(qb - ab)],
            axis=-1)
        h1 = jnp.tanh(z @ params["gate_w1"] + params["gate_b1"])
        scores = jnp.sum(h1 * params["gate_w2"][None, :, :], axis=-1)
        gate = jax.nn.softmax(scores, axis=-1)

        h = jnp.zeros_like(question)
        for t in range(facts.shape[1]):
            x_t = f[:, t, :]
            g_t = gate[:, t:t + 1]
            r = jax.nn.sigmoid(x_t @ params["gru_wr"] + h @ params["gru_ur"]
                               + params["gru_br"])
            h_til = jnp.tanh(x_t @ params["gru_wh"] + r * (h @ params["gru_uh"])
                             + params["gru_bh"])
            h = g_t * h_til + (1.0 - g_t) * h

        mem_in = jnp.concatenate([prev_mem, h, question, answer], axis=-1)
        return jnp.maximum(mem_in @ params["mem_w"][hop] + params["mem_b"][hop], 0.0)


if __name__ == "__main__":
    key = jax.random.PRNGKey(0)
    k_f, k_q, k_a, k_m, k_p = jax.random.split(key, 5)
    facts = jax.random.normal(k_f, (BATCH, SEQ, HIDDEN), jnp.float32)
    question = jax.random.normal(k_q, (BATCH, HIDDEN), jnp.float32)
    answer = jax.random.normal(k_a, (BATCH, HIDDEN), jnp.float32)
    prev_mem = jax.random.normal(k_m, (BATCH, HIDDEN), jnp.float32)
    params = init_params(k_p, HIDDEN, NUM_HOPS)
    packed = pack_params(params)

    # Hop-chained f32 reference.
    mem = prev_mem
    ref_hops = []
    for hop in range(NUM_HOPS):
        mem = reference_forward(facts, question, answer, mem, params, hop)
        ref_hops.append(mem)
    ref_all = jnp.concatenate(ref_hops, axis=-1)

    # 1) Full-f32-dot variant: tight baseline (per correctness review). Observed
    #    error is ~1e-6; tolerance leaves margin for Mosaic-vs-XLA transcendentals
    #    and the reordered K-summation in the fused gate matmul.
    out_f32 = jax.block_until_ready(
        memory_episode_forward(facts, question, answer, prev_mem, packed,
                               use_bf16=False))
    assert out_f32.shape == (BATCH, NUM_HOPS * HIDDEN)
    np.testing.assert_allclose(np.asarray(out_f32), np.asarray(ref_all),
                               atol=1e-3, rtol=1e-3)

    # 2) bf16-MXU fast path (default): both hops fused in one pallas_call.
    out_all = jax.block_until_ready(
        memory_episode_forward(facts, question, answer, prev_mem, packed))
    assert out_all.shape == (BATCH, NUM_HOPS * HIDDEN)
    assert bool(jnp.all(jnp.isfinite(out_all)))
    np.testing.assert_allclose(np.asarray(out_all), np.asarray(ref_all),
                               atol=5e-2, rtol=5e-2)

    # 3) Single-hop path (original module forward signature).
    out_one = jax.block_until_ready(
        memory_module_forward(facts, question, answer, prev_mem, packed, hop=0))
    assert out_one.shape == (BATCH, HIDDEN)
    np.testing.assert_allclose(np.asarray(out_one), np.asarray(ref_hops[0]),
                               atol=5e-2, rtol=5e-2)

    print("KERNEL_OK")
</pallas_src>

<mosaic_0001>
module attributes {stable_mosaic.version = 11 : i64} {
  func.func @_memory_kernel(%arg0: memref<2x8x32xf32, #tpu.memory_space<vmem>>, %arg1: memref<3x2x32xf32, #tpu.memory_space<vmem>>, %arg2: memref<646x32xf32, #tpu.memory_space<vmem>>, %arg3: memref<2x64xf32, #tpu.memory_space<vmem>>) attributes {dimension_semantics = [], scalar_prefetch = 0 : i64, scratch_operands = 0 : i64, tpu.core_type = #tpu.core_type<tc>} {
    %c0 = arith.constant 0 : index
    %c0_0 = arith.constant 0 : index
    %c0_1 = arith.constant 0 : index
    %0 = vector.load %arg0[%c0, %c0_0, %c0_1] : memref<2x8x32xf32, #tpu.memory_space<vmem>>, vector<2x8x32xf32>
    %1 = vector.shape_cast %0 : vector<2x8x32xf32> to vector<16x32xf32>
    %c0_2 = arith.constant 0 : index
    %c0_3 = arith.constant 0 : index
    %c0_4 = arith.constant 0 : index
    %2 = vector.load %arg1[%c0_2, %c0_3, %c0_4] : memref<3x2x32xf32, #tpu.memory_space<vmem>>, vector<1x2x32xf32>
    %3 = vector.shape_cast %2 : vector<1x2x32xf32> to vector<2x32xf32>
    %c1 = arith.constant 1 : index
    %c0_5 = arith.constant 0 : index
    %c0_6 = arith.constant 0 : index
    %4 = vector.load %arg1[%c1, %c0_5, %c0_6] : memref<3x2x32xf32, #tpu.memory_space<vmem>>, vector<1x2x32xf32>
    %5 = vector.shape_cast %4 : vector<1x2x32xf32> to vector<2x32xf32>
    %c2 = arith.constant 2 : index
    %c0_7 = arith.constant 0 : index
    %c0_8 = arith.constant 0 : index
    %6 = vector.load %arg1[%c2, %c0_7, %c0_8] : memref<3x2x32xf32, #tpu.memory_space<vmem>>, vector<1x2x32xf32>
    %7 = vector.shape_cast %6 : vector<1x2x32xf32> to vector<2x32xf32>
    %c640 = arith.constant 640 : index
    %c0_9 = arith.constant 0 : index
    %8 = vector.load %arg2[%c640, %c0_9] : memref<646x32xf32, #tpu.memory_space<vmem>>, vector<1x32xf32>
    %c641 = arith.constant 641 : index
    %c0_10 = arith.constant 0 : index
    %9 = vector.load %arg2[%c641, %c0_10] : memref<646x32xf32, #tpu.memory_space<vmem>>, vector<1x32xf32>
    %c642 = arith.constant 642 : index
    %c0_11 = arith.constant 0 : index
    %10 = vector.load %arg2[%c642, %c0_11] : memref<646x32xf32, #tpu.memory_space<vmem>>, vector<1x32xf32>
    %c643 = arith.constant 643 : index
    %c0_12 = arith.constant 0 : index
    %11 = vector.load %arg2[%c643, %c0_12] : memref<646x32xf32, #tpu.memory_space<vmem>>, vector<1x32xf32>
    %12 = vector.shape_cast %3 : vector<2x32xf32> to vector<2x1x32xf32>
    %13 = vector.shape_cast %12 : vector<2x1x32xf32> to vector<2x1x32xf32>
    %14 = vector.broadcast %13 : vector<2x1x32xf32> to vector<2x8x32xf32>
    %15 = vector.shape_cast %14 : vector<2x8x32xf32> to vector<16x32xf32>
    %16 = vector.shape_cast %5 : vector<2x32xf32> to vector<2x1x32xf32>
    %17 = vector.shape_cast %16 : vector<2x1x32xf32> to vector<2x1x32xf32>
    %18 = vector.broadcast %17 : vector<2x1x32xf32> to vector<2x8x32xf32>
    %19 = vector.shape_cast %18 : vector<2x8x32xf32> to vector<16x32xf32>
    %20 = arith.mulf %1, %15 : vector<16x32xf32>
    %21 = arith.mulf %1, %19 : vector<16x32xf32>
    %22 = arith.mulf %15, %19 : vector<16x32xf32>
    %23 = arith.subf %1, %15 : vector<16x32xf32>
    %24 = math.absf %23 : vector<16x32xf32>
    %25 = arith.subf %1, %19 : vector<16x32xf32>
    %26 = math.absf %25 : vector<16x32xf32>
    %27 = arith.subf %15, %19 : vector<16x32xf32>
    %28 = math.absf %27 : vector<16x32xf32>
    %29 = tpu.concatenate %20, %21, %22, %24, %26, %28 in 1 : vector<16x32xf32>, vector<16x32xf32>, vector<16x32xf32>, vector<16x32xf32>, vector<16x32xf32>, vector<16x32xf32> -> vector<16x192xf32>
    %c128 = arith.constant 128 : index
    %c0_13 = arith.constant 0 : index
    %30 = vector.load %arg2[%c128, %c0_13] : memref<646x32xf32, #tpu.memory_space<vmem>>, vector<192x32xf32>
    %cst = arith.constant dense<0.000000e+00> : vector<16x32xf32>
    %31 = tpu.matmul %29, %30, %cst {dimension_numbers = #tpu.dot_dimension_numbers<[1], [0], [0], [1], [0, 0, 1, 1], [], []>} : vector<16x192xf32>, vector<192x32xf32>, vector<16x32xf32> -> vector<16x32xf32>
    %32 = vector.broadcast %8 : vector<1x32xf32> to vector<16x32xf32>
    %33 = arith.addf %31, %32 : vector<16x32xf32>
    %c0_14 = arith.constant 0 : index
    %c0_15 = arith.constant 0 : index
    %34 = vector.load %arg2[%c0_14, %c0_15] : memref<646x32xf32, #tpu.memory_space<vmem>>, vector<32x32xf32>
    %c32 = arith.constant 32 : index
    %c0_16 = arith.constant 0 : index
    %35 = vector.load %arg2[%c32, %c0_16] : memref<646x32xf32, #tpu.memory_space<vmem>>, vector<32x32xf32>
    %36 = tpu.concatenate %34, %35 in 1 : vector<32x32xf32>, vector<32x32xf32> -> vector<32x64xf32>
    %c64 = arith.constant 64 : index
    %c0_17 = arith.constant 0 : index
    %37 = vector.load %arg2[%c64, %c0_17] : memref<646x32xf32, #tpu.memory_space<vmem>>, vector<32x32xf32>
    %c96 = arith.constant 96 : index
    %c0_18 = arith.constant 0 : index
    %38 = vector.load %arg2[%c96, %c0_18] : memref<646x32xf32, #tpu.memory_space<vmem>>, vector<32x32xf32>
    %39 = tpu.concatenate %37, %38 in 1 : vector<32x32xf32>, vector<32x32xf32> -> vector<32x64xf32>
    %cst_19 = arith.constant dense<0.000000e+00> : vector<16x64xf32>
    %40 = tpu.matmul %1, %36, %cst_19 {dimension_numbers = #tpu.dot_dimension_numbers<[1], [0], [0], [1], [0, 0, 1, 1], [], []>} : vector<16x32xf32>, vector<32x64xf32>, vector<16x64xf32> -> vector<16x64xf32>
    %41 = vector.extract_strided_slice %40 {offsets = [0, 0], sizes = [16, 32], strides = [1, 1]} : vector<16x64xf32> to vector<16x32xf32>
    %42 = vector.broadcast %10 : vector<1x32xf32> to vector<16x32xf32>
    %43 = arith.addf %41, %42 : vector<16x32xf32>
    %44 = vector.shape_cast %43 : vector<16x32xf32> to vector<2x8x32xf32>
    %45 = vector.extract_strided_slice %40 {offsets = [0, 32], sizes = [16, 32], strides = [1, 1]} : vector<16x64xf32> to vector<16x32xf32>
    %46 = vector.broadcast %11 : vector<1x32xf32> to vector<16x32xf32>
    %47 = arith.addf %45, %46 : vector<16x32xf32>
    %48 = vector.shape_cast %47 : vector<16x32xf32> to vector<2x8x32xf32>
    %c320 = arith.constant 320 : index
    %c0_20 = arith.constant 0 : index
    %49 = vector.load %arg2[%c320, %c0_20] : memref<646x32xf32, #tpu.memory_space<vmem>>, vector<64x32xf32>
    %50 = vector.shape_cast %7 : vector<2x32xf32> to vector<2x1x32xf32>
    %51 = vector.shape_cast %50 : vector<2x1x32xf32> to vector<2x1x32xf32>
    %52 = vector.broadcast %51 : vector<2x1x32xf32> to vector<2x8x32xf32>
    %53 = vector.shape_cast %52 : vector<2x8x32xf32> to vector<16x32xf32>
    %54 = arith.mulf %1, %53 : vector<16x32xf32>
    %55 = arith.subf %1, %53 : vector<16x32xf32>
    %56 = math.absf %55 : vector<16x32xf32>
    %57 = tpu.concatenate %54, %56 in 1 : vector<16x32xf32>, vector<16x32xf32> -> vector<16x64xf32>
    %cst_21 = arith.constant dense<0.000000e+00> : vector<16x32xf32>
    %58 = tpu.matmul %57, %49, %cst_21 {dimension_numbers = #tpu.dot_dimension_numbers<[1], [0], [0], [1], [0, 0, 1, 1], [], []>} : vector<16x64xf32>, vector<64x32xf32>, vector<16x32xf32> -> vector<16x32xf32>
    %59 = arith.addf %33, %58 : vector<16x32xf32>
    %60 = math.tanh %59 : vector<16x32xf32>
    %61 = vector.shape_cast %60 : vector<16x32xf32> to vector<2x8x32xf32>
    %62 = vector.shape_cast %9 : vector<1x32xf32> to vector<1x1x32xf32>
    %63 = vector.broadcast %62 : vector<1x1x32xf32> to vector<2x8x32xf32>
    %64 = arith.mulf %61, %63 : vector<2x8x32xf32>
    %cst_22 = arith.constant dense<0.000000e+00> : vector<2x8xf32>
    %65 = vector.multi_reduction <add>, %64, %cst_22 [2] : vector<2x8x32xf32> to vector<2x8xf32>
    %66 = math.exp %65 : vector<2x8xf32>
    %cst_23 = arith.constant dense<0.000000e+00> : vector<2xf32>
    %67 = vector.multi_reduction <add>, %66, %cst_23 [1] : vector<2x8xf32> to vector<2xf32>
    %68 = vector.shape_cast %67 : vector<2xf32> to vector<2x1xf32>
    %69 = vector.broadcast %68 : vector<2x1xf32> to vector<2x8xf32>
    %70 = arith.divf %66, %69 : vector<2x8xf32>
    %cst_24 = arith.constant 0.000000e+00 : f32
    %71 = vector.broadcast %cst_24 : f32 to vector<2x32xf32>
    %cst_25 = arith.constant dense<0.000000e+00> : vector<2x64xf32>
    %72 = tpu.matmul %71, %39, %cst_25 {dimension_numbers = #tpu.dot_dimension_numbers<[1], [0], [0], [1], [0, 0, 1, 1], [], []>} : vector<2x32xf32>, vector<32x64xf32>, vector<2x64xf32> -> vector<2x64xf32>
    %73 = vector.extract_strided_slice %44 {offsets = [0, 0, 0], sizes = [2, 1, 32], strides = [1, 1, 1]} : vector<2x8x32xf32> to vector<2x1x32xf32>
    %74 = vector.shape_cast %73 : vector<2x1x32xf32> to vector<2x32xf32>
    %75 = vector.extract_strided_slice %72 {offsets = [0, 0], sizes = [2, 32], strides = [1, 1]} : vector<2x64xf32> to vector<2x32xf32>
    %76 = arith.addf %74, %75 : vector<2x32xf32>
    %77 = arith.negf %76 : vector<2x32xf32>
    %78 = math.exp %77 : vector<2x32xf32>
    %cst_26 = arith.constant 1.000000e+00 : f32
    %79 = vector.broadcast %cst_26 : f32 to vector<2x32xf32>
    %80 = arith.addf %79, %78 : vector<2x32xf32>
    %81 = arith.divf %79, %80 : vector<2x32xf32>
    %82 = vector.extract_strided_slice %48 {offsets = [0, 0, 0], sizes = [2, 1, 32], strides = [1, 1, 1]} : vector<2x8x32xf32> to vector<2x1x32xf32>
    %83 = vector.shape_cast %82 : vector<2x1x32xf32> to vector<2x32xf32>
    %84 = vector.extract_strided_slice %72 {offsets = [0, 32], sizes = [2, 32], strides = [1, 1]} : vector<2x64xf32> to vector<2x32xf32>
    %85 = arith.mulf %81, %84 : vector<2x32xf32>
    %86 = arith.addf %83, %85 : vector<2x32xf32>
    %87 = math.tanh %86 : vector<2x32xf32>
    %88 = vector.extract_strided_slice %70 {offsets = [0, 0], sizes = [2, 1], strides = [1, 1]} : vector<2x8xf32> to vector<2x1xf32>
    %89 = vector.broadcast %88 : vector<2x1xf32> to vector<2x32xf32>
    %90 = arith.mulf %89, %87 : vector<2x32xf32>
    %cst_27 = arith.constant 1.000000e+00 : f32
    %91 = vector.broadcast %cst_27 : f32 to vector<2x1xf32>
    %92 = arith.subf %91, %88 : vector<2x1xf32>
    %93 = vector.broadcast %92 : vector<2x1xf32> to vector<2x32xf32>
    %94 = arith.mulf %93, %71 : vector<2x32xf32>
    %95 = arith.addf %90, %94 : vector<2x32xf32>
    %cst_28 = arith.constant dense<0.000000e+00> : vector<2x64xf32>
    %96 = tpu.matmul %95, %39, %cst_28 {dimension_numbers = #tpu.dot_dimension_numbers<[1], [0], [0], [1], [0, 0, 1, 1], [], []>} : vector<2x32xf32>, vector<32x64xf32>, vector<2x64xf32> -> vector<2x64xf32>
    %97 = vector.extract_strided_slice %44 {offsets = [0, 1, 0], sizes = [2, 1, 32], strides = [1, 1, 1]} : vector<2x8x32xf32> to vector<2x1x32xf32>
    %98 = vector.shape_cast %97 : vector<2x1x32xf32> to vector<2x32xf32>
    %99 = vector.extract_strided_slice %96 {offsets = [0, 0], sizes = [2, 32], strides = [1, 1]} : vector<2x64xf32> to vector<2x32xf32>
    %100 = arith.addf %98, %99 : vector<2x32xf32>
    %101 = arith.negf %100 : vector<2x32xf32>
    %102 = math.exp %101 : vector<2x32xf32>
    %cst_29 = arith.constant 1.000000e+00 : f32
    %103 = vector.broadcast %cst_29 : f32 to vector<2x32xf32>
    %104 = arith.addf %103, %102 : vector<2x32xf32>
    %105 = arith.divf %103, %104 : vector<2x32xf32>
    %106 = vector.extract_strided_slice %48 {offsets = [0, 1, 0], sizes = [2, 1, 32], strides = [1, 1, 1]} : vector<2x8x32xf32> to vector<2x1x32xf32>
    %107 = vector.shape_cast %106 : vector<2x1x32xf32> to vector<2x32xf32>
    %108 = vector.extract_strided_slice %96 {offsets = [0, 32], sizes = [2, 32], strides = [1, 1]} : vector<2x64xf32> to vector<2x32xf32>
    %109 = arith.mulf %105, %108 : vector<2x32xf32>
    %110 = arith.addf %107, %109 : vector<2x32xf32>
    %111 = math.tanh %110 : vector<2x32xf32>
    %112 = vector.extract_strided_slice %70 {offsets = [0, 1], sizes = [2, 1], strides = [1, 1]} : vector<2x8xf32> to vector<2x1xf32>
    %113 = vector.broadcast %112 : vector<2x1xf32> to vector<2x32xf32>
    %114 = arith.mulf %113, %111 : vector<2x32xf32>
    %cst_30 = arith.constant 1.000000e+00 : f32
    %115 = vector.broadcast %cst_30 : f32 to vector<2x1xf32>
    %116 = arith.subf %115, %112 : vector<2x1xf32>
    %117 = vector.broadcast %116 : vector<2x1xf32> to vector<2x32xf32>
    %118 = arith.mulf %117, %95 : vector<2x32xf32>
    %119 = arith.addf %114, %118 : vector<2x32xf32>
    %cst_31 = arith.constant dense<0.000000e+00> : vector<2x64xf32>
    %120 = tpu.matmul %119, %39, %cst_31 {dimension_numbers = #tpu.dot_dimension_numbers<[1], [0], [0], [1], [0, 0, 1, 1], [], []>} : vector<2x32xf32>, vector<32x64xf32>, vector<2x64xf32> -> vector<2x64xf32>
    %121 = vector.extract_strided_slice %44 {offsets = [0, 2, 0], sizes = [2, 1, 32], strides = [1, 1, 1]} : vector<2x8x32xf32> to vector<2x1x32xf32>
    %122 = vector.shape_cast %121 : vector<2x1x32xf32> to vector<2x32xf32>
    %123 = vector.extract_strided_slice %120 {offsets = [0, 0], sizes = [2, 32], strides = [1, 1]} : vector<2x64xf32> to vector<2x32xf32>
    %124 = arith.addf %122, %123 : vector<2x32xf32>
    %125 = arith.negf %124 : vector<2x32xf32>
    %126 = math.exp %125 : vector<2x32xf32>
    %cst_32 = arith.constant 1.000000e+00 : f32
    %127 = vector.broadcast %cst_32 : f32 to vector<2x32xf32>
    %128 = arith.addf %127, %126 : vector<2x32xf32>
    %129 = arith.divf %127, %128 : vector<2x32xf32>
    %130 = vector.extract_strided_slice %48 {offsets = [0, 2, 0], sizes = [2, 1, 32], strides = [1, 1, 1]} : vector<2x8x32xf32> to vector<2x1x32xf32>
    %131 = vector.shape_cast %130 : vector<2x1x32xf32> to vector<2x32xf32>
    %132 = vector.extract_strided_slice %120 {offsets = [0, 32], sizes = [2, 32], strides = [1, 1]} : vector<2x64xf32> to vector<2x32xf32>
    %133 = arith.mulf %129, %132 : vector<2x32xf32>
    %134 = arith.addf %131, %133 : vector<2x32xf32>
    %135 = math.tanh %134 : vector<2x32xf32>
    %136 = vector.extract_strided_slice %70 {offsets = [0, 2], sizes = [2, 1], strides = [1, 1]} : vector<2x8xf32> to vector<2x1xf32>
    %137 = vector.broadcast %136 : vector<2x1xf32> to vector<2x32xf32>
    %138 = arith.mulf %137, %135 : vector<2x32xf32>
    %cst_33 = arith.constant 1.000000e+00 : f32
    %139 = vector.broadcast %cst_33 : f32 to vector<2x1xf32>
    %140 = arith.subf %139, %136 : vector<2x1xf32>
    %141 = vector.broadcast %140 : vector<2x1xf32> to vector<2x32xf32>
    %142 = arith.mulf %141, %119 : vector<2x32xf32>
    %143 = arith.addf %138, %142 : vector<2x32xf32>
    %cst_34 = arith.constant dense<0.000000e+00> : vector<2x64xf32>
    %144 = tpu.matmul %143, %39, %cst_34 {dimension_numbers = #tpu.dot_dimension_numbers<[1], [0], [0], [1], [0, 0, 1, 1], [], []>} : vector<2x32xf32>, vector<32x64xf32>, vector<2x64xf32> -> vector<2x64xf32>
    %145 = vector.extract_strided_slice %44 {offsets = [0, 3, 0], sizes = [2, 1, 32], strides = [1, 1, 1]} : vector<2x8x32xf32> to vector<2x1x32xf32>
    %146 = vector.shape_cast %145 : vector<2x1x32xf32> to vector<2x32xf32>
    %147 = vector.extract_strided_slice %144 {offsets = [0, 0], sizes = [2, 32], strides = [1, 1]} : vector<2x64xf32> to vector<2x32xf32>
    %148 = arith.addf %146, %147 : vector<2x32xf32>
    %149 = arith.negf %148 : vector<2x32xf32>
    %150 = math.exp %149 : vector<2x32xf32>
    %cst_35 = arith.constant 1.000000e+00 : f32
    %151 = vector.broadcast %cst_35 : f32 to vector<2x32xf32>
    %152 = arith.addf %151, %150 : vector<2x32xf32>
    %153 = arith.divf %151, %152 : vector<2x32xf32>
    %154 = vector.extract_strided_slice %48 {offsets = [0, 3, 0], sizes = [2, 1, 32], strides = [1, 1, 1]} : vector<2x8x32xf32> to vector<2x1x32xf32>
    %155 = vector.shape_cast %154 : vector<2x1x32xf32> to vector<2x32xf32>
    %156 = vector.extract_strided_slice %144 {offsets = [0, 32], sizes = [2, 32], strides = [1, 1]} : vector<2x64xf32> to vector<2x32xf32>
    %157 = arith.mulf %153, %156 : vector<2x32xf32>
    %158 = arith.addf %155, %157 : vector<2x32xf32>
    %159 = math.tanh %158 : vector<2x32xf32>
    %160 = vector.extract_strided_slice %70 {offsets = [0, 3], sizes = [2, 1], strides = [1, 1]} : vector<2x8xf32> to vector<2x1xf32>
    %161 = vector.broadcast %160 : vector<2x1xf32> to vector<2x32xf32>
    %162 = arith.mulf %161, %159 : vector<2x32xf32>
    %cst_36 = arith.constant 1.000000e+00 : f32
    %163 = vector.broadcast %cst_36 : f32 to vector<2x1xf32>
    %164 = arith.subf %163, %160 : vector<2x1xf32>
    %165 = vector.broadcast %164 : vector<2x1xf32> to vector<2x32xf32>
    %166 = arith.mulf %165, %143 : vector<2x32xf32>
    %167 = arith.addf %162, %166 : vector<2x32xf32>
    %cst_37 = arith.constant dense<0.000000e+00> : vector<2x64xf32>
    %168 = tpu.matmul %167, %39, %cst_37 {dimension_numbers = #tpu.dot_dimension_numbers<[1], [0], [0], [1], [0, 0, 1, 1], [], []>} : vector<2x32xf32>, vector<32x64xf32>, vector<2x64xf32> -> vector<2x64xf32>
    %169 = vector.extract_strided_slice %44 {offsets = [0, 4, 0], sizes = [2, 1, 32], strides = [1, 1, 1]} : vector<2x8x32xf32> to vector<2x1x32xf32>
    %170 = vector.shape_cast %169 : vector<2x1x32xf32> to vector<2x32xf32>
    %171 = vector.extract_strided_slice %168 {offsets = [0, 0], sizes = [2, 32], strides = [1, 1]} : vector<2x64xf32> to vector<2x32xf32>
    %172 = arith.addf %170, %171 : vector<2x32xf32>
    %173 = arith.negf %172 : vector<2x32xf32>
    %174 = math.exp %173 : vector<2x32xf32>
    %cst_38 = arith.constant 1.000000e+00 : f32
    %175 = vector.broadcast %cst_38 : f32 to vector<2x32xf32>
    %176 = arith.addf %175, %174 : vector<2x32xf32>
    %177 = arith.divf %175, %176 : vector<2x32xf32>
    %178 = vector.extract_strided_slice %48 {offsets = [0, 4, 0], sizes = [2, 1, 32], strides = [1, 1, 1]} : vector<2x8x32xf32> to vector<2x1x32xf32>
    %179 = vector.shape_cast %178 : vector<2x1x32xf32> to vector<2x32xf32>
    %180 = vector.extract_strided_slice %168 {offsets = [0, 32], sizes = [2, 32], strides = [1, 1]} : vector<2x64xf32> to vector<2x32xf32>
    %181 = arith.mulf %177, %180 : vector<2x32xf32>
    %182 = arith.addf %179, %181 : vector<2x32xf32>
    %183 = math.tanh %182 : vector<2x32xf32>
    %184 = vector.extract_strided_slice %70 {offsets = [0, 4], sizes = [2, 1], strides = [1, 1]} : vector<2x8xf32> to vector<2x1xf32>
    %185 = vector.broadcast %184 : vector<2x1xf32> to vector<2x32xf32>
    %186 = arith.mulf %185, %183 : vector<2x32xf32>
    %cst_39 = arith.constant 1.000000e+00 : f32
    %187 = vector.broadcast %cst_39 : f32 to vector<2x1xf32>
    %188 = arith.subf %187, %184 : vector<2x1xf32>
    %189 = vector.broadcast %188 : vector<2x1xf32> to vector<2x32xf32>
    %190 = arith.mulf %189, %167 : vector<2x32xf32>
    %191 = arith.addf %186, %190 : vector<2x32xf32>
    %cst_40 = arith.constant dense<0.000000e+00> : vector<2x64xf32>
    %192 = tpu.matmul %191, %39, %cst_40 {dimension_numbers = #tpu.dot_dimension_numbers<[1], [0], [0], [1], [0, 0, 1, 1], [], []>} : vector<2x32xf32>, vector<32x64xf32>, vector<2x64xf32> -> vector<2x64xf32>
    %193 = vector.extract_strided_slice %44 {offsets = [0, 5, 0], sizes = [2, 1, 32], strides = [1, 1, 1]} : vector<2x8x32xf32> to vector<2x1x32xf32>
    %194 = vector.shape_cast %193 : vector<2x1x32xf32> to vector<2x32xf32>
    %195 = vector.extract_strided_slice %192 {offsets = [0, 0], sizes = [2, 32], strides = [1, 1]} : vector<2x64xf32> to vector<2x32xf32>
    %196 = arith.addf %194, %195 : vector<2x32xf32>
    %197 = arith.negf %196 : vector<2x32xf32>
    %198 = math.exp %197 : vector<2x32xf32>
    %cst_41 = arith.constant 1.000000e+00 : f32
    %199 = vector.broadcast %cst_41 : f32 to vector<2x32xf32>
    %200 = arith.addf %199, %198 : vector<2x32xf32>
    %201 = arith.divf %199, %200 : vector<2x32xf32>
    %202 = vector.extract_strided_slice %48 {offsets = [0, 5, 0], sizes = [2, 1, 32], strides = [1, 1, 1]} : vector<2x8x32xf32> to vector<2x1x32xf32>
    %203 = vector.shape_cast %202 : vector<2x1x32xf32> to vector<2x32xf32>
    %204 = vector.extract_strided_slice %192 {offsets = [0, 32], sizes = [2, 32], strides = [1, 1]} : vector<2x64xf32> to vector<2x32xf32>
    %205 = arith.mulf %201, %204 : vector<2x32xf32>
    %206 = arith.addf %203, %205 : vector<2x32xf32>
    %207 = math.tanh %206 : vector<2x32xf32>
    %208 = vector.extract_strided_slice %70 {offsets = [0, 5], sizes = [2, 1], strides = [1, 1]} : vector<2x8xf32> to vector<2x1xf32>
    %209 = vector.broadcast %208 : vector<2x1xf32> to vector<2x32xf32>
    %210 = arith.mulf %209, %207 : vector<2x32xf32>
    %cst_42 = arith.constant 1.000000e+00 : f32
    %211 = vector.broadcast %cst_42 : f32 to vector<2x1xf32>
    %212 = arith.subf %211, %208 : vector<2x1xf32>
    %213 = vector.broadcast %212 : vector<2x1xf32> to vector<2x32xf32>
    %214 = arith.mulf %213, %191 : vector<2x32xf32>
    %215 = arith.addf %210, %214 : vector<2x32xf32>
    %cst_43 = arith.constant dense<0.000000e+00> : vector<2x64xf32>
    %216 = tpu.matmul %215, %39, %cst_43 {dimension_numbers = #tpu.dot_dimension_numbers<[1], [0], [0], [1], [0, 0, 1, 1], [], []>} : vector<2x32xf32>, vector<32x64xf32>, vector<2x64xf32> -> vector<2x64xf32>
    %217 = vector.extract_strided_slice %44 {offsets = [0, 6, 0], sizes = [2, 1, 32], strides = [1, 1, 1]} : vector<2x8x32xf32> to vector<2x1x32xf32>
    %218 = vector.shape_cast %217 : vector<2x1x32xf32> to vector<2x32xf32>
    %219 = vector.extract_strided_slice %216 {offsets = [0, 0], sizes = [2, 32], strides = [1, 1]} : vector<2x64xf32> to vector<2x32xf32>
    %220 = arith.addf %218, %219 : vector<2x32xf32>
    %221 = arith.negf %220 : vector<2x32xf32>
    %222 = math.exp %221 : vector<2x32xf32>
    %cst_44 = arith.constant 1.000000e+00 : f32
    %223 = vector.broadcast %cst_44 : f32 to vector<2x32xf32>
    %224 = arith.addf %223, %222 : vector<2x32xf32>
    %225 = arith.divf %223, %224 : vector<2x32xf32>
    %226 = vector.extract_strided_slice %48 {offsets = [0, 6, 0], sizes = [2, 1, 32], strides = [1, 1, 1]} : vector<2x8x32xf32> to vector<2x1x32xf32>
    %227 = vector.shape_cast %226 : vector<2x1x32xf32> to vector<2x32xf32>
    %228 = vector.extract_strided_slice %216 {offsets = [0, 32], sizes = [2, 32], strides = [1, 1]} : vector<2x64xf32> to vector<2x32xf32>
    %229 = arith.mulf %225, %228 : vector<2x32xf32>
    %230 = arith.addf %227, %229 : vector<2x32xf32>
    %231 = math.tanh %230 : vector<2x32xf32>
    %232 = vector.extract_strided_slice %70 {offsets = [0, 6], sizes = [2, 1], strides = [1, 1]} : vector<2x8xf32> to vector<2x1xf32>
    %233 = vector.broadcast %232 : vector<2x1xf32> to vector<2x32xf32>
    %234 = arith.mulf %233, %231 : vector<2x32xf32>
    %cst_45 = arith.constant 1.000000e+00 : f32
    %235 = vector.broadcast %cst_45 : f32 to vector<2x1xf32>
    %236 = arith.subf %235, %232 : vector<2x1xf32>
    %237 = vector.broadcast %236 : vector<2x1xf32> to vector<2x32xf32>
    %238 = arith.mulf %237, %215 : vector<2x32xf32>
    %239 = arith.addf %234, %238 : vector<2x32xf32>
    %cst_46 = arith.constant dense<0.000000e+00> : vector<2x64xf32>
    %240 = tpu.matmul %239, %39, %cst_46 {dimension_numbers = #tpu.dot_dimension_numbers<[1], [0], [0], [1], [0, 0, 1, 1], [], []>} : vector<2x32xf32>, vector<32x64xf32>, vector<2x64xf32> -> vector<2x64xf32>
    %241 = vector.extract_strided_slice %44 {offsets = [0, 7, 0], sizes = [2, 1, 32], strides = [1, 1, 1]} : vector<2x8x32xf32> to vector<2x1x32xf32>
    %242 = vector.shape_cast %241 : vector<2x1x32xf32> to vector<2x32xf32>
    %243 = vector.extract_strided_slice %240 {offsets = [0, 0], sizes = [2, 32], strides = [1, 1]} : vector<2x64xf32> to vector<2x32xf32>
    %244 = arith.addf %242, %243 : vector<2x32xf32>
    %245 = arith.negf %244 : vector<2x32xf32>
    %246 = math.exp %245 : vector<2x32xf32>
    %cst_47 = arith.constant 1.000000e+00 : f32
    %247 = vector.broadcast %cst_47 : f32 to vector<2x32xf32>
    %248 = arith.addf %247, %246 : vector<2x32xf32>
    %249 = arith.divf %247, %248 : vector<2x32xf32>
    %250 = vector.extract_strided_slice %48 {offsets = [0, 7, 0], sizes = [2, 1, 32], strides = [1, 1, 1]} : vector<2x8x32xf32> to vector<2x1x32xf32>
    %251 = vector.shape_cast %250 : vector<2x1x32xf32> to vector<2x32xf32>
    %252 = vector.extract_strided_slice %240 {offsets = [0, 32], sizes = [2, 32], strides = [1, 1]} : vector<2x64xf32> to vector<2x32xf32>
    %253 = arith.mulf %249, %252 : vector<2x32xf32>
    %254 = arith.addf %251, %253 : vector<2x32xf32>
    %255 = math.tanh %254 : vector<2x32xf32>
    %256 = vector.extract_strided_slice %70 {offsets = [0, 7], sizes = [2, 1], strides = [1, 1]} : vector<2x8xf32> to vector<2x1xf32>
    %257 = vector.broadcast %256 : vector<2x1xf32> to vector<2x32xf32>
    %258 = arith.mulf %257, %255 : vector<2x32xf32>
    %cst_48 = arith.constant 1.000000e+00 : f32
    %259 = vector.broadcast %cst_48 : f32 to vector<2x1xf32>
    %260 = arith.subf %259, %256 : vector<2x1xf32>
    %261 = vector.broadcast %260 : vector<2x1xf32> to vector<2x32xf32>
    %262 = arith.mulf %261, %239 : vector<2x32xf32>
    %263 = arith.addf %258, %262 : vector<2x32xf32>
    %264 = tpu.concatenate %7, %263, %3, %5 in 1 : vector<2x32xf32>, vector<2x32xf32>, vector<2x32xf32>, vector<2x32xf32> -> vector<2x128xf32>
    %c384 = arith.constant 384 : index
    %c0_49 = arith.constant 0 : index
    %265 = vector.load %arg2[%c384, %c0_49] : memref<646x32xf32, #tpu.memory_space<vmem>>, vector<128x32xf32>
    %c644 = arith.constant 644 : index
    %c0_50 = arith.constant 0 : index
    %266 = vector.load %arg2[%c644, %c0_50] : memref<646x32xf32, #tpu.memory_space<vmem>>, vector<1x32xf32>
    %cst_51 = arith.constant dense<0.000000e+00> : vector<2x32xf32>
    %267 = tpu.matmul %264, %265, %cst_51 {dimension_numbers = #tpu.dot_dimension_numbers<[1], [0], [0], [1], [0, 0, 1, 1], [], []>} : vector<2x128xf32>, vector<128x32xf32>, vector<2x32xf32> -> vector<2x32xf32>
    %268 = vector.broadcast %266 : vector<1x32xf32> to vector<2x32xf32>
    %269 = arith.addf %267, %268 : vector<2x32xf32>
    %cst_52 = arith.constant 0.000000e+00 : f32
    %270 = vector.broadcast %cst_52 : f32 to vector<2x32xf32>
    %271 = arith.maximumf %269, %270 : vector<2x32xf32>
    %272 = vector.shape_cast %271 : vector<2x32xf32> to vector<2x1x32xf32>
    %273 = vector.shape_cast %272 : vector<2x1x32xf32> to vector<2x1x32xf32>
    %274 = vector.broadcast %273 : vector<2x1x32xf32> to vector<2x8x32xf32>
    %275 = vector.shape_cast %274 : vector<2x8x32xf32> to vector<16x32xf32>
    %276 = arith.mulf %1, %275 : vector<16x32xf32>
    %277 = arith.subf %1, %275 : vector<16x32xf32>
    %278 = math.absf %277 : vector<16x32xf32>
    %279 = tpu.concatenate %276, %278 in 1 : vector<16x32xf32>, vector<16x32xf32> -> vector<16x64xf32>
    %cst_53 = arith.constant dense<0.000000e+00> : vector<16x32xf32>
    %280 = tpu.matmul %279, %49, %cst_53 {dimension_numbers = #tpu.dot_dimension_numbers<[1], [0], [0], [1], [0, 0, 1, 1], [], []>} : vector<16x64xf32>, vector<64x32xf32>, vector<16x32xf32> -> vector<16x32xf32>
    %281 = arith.addf %33, %280 : vector<16x32xf32>
    %282 = math.tanh %281 : vector<16x32xf32>
    %283 = vector.shape_cast %282 : vector<16x32xf32> to vector<2x8x32xf32>
    %284 = vector.shape_cast %9 : vector<1x32xf32> to vector<1x1x32xf32>
    %285 = vector.broadcast %284 : vector<1x1x32xf32> to vector<2x8x32xf32>
    %286 = arith.mulf %283, %285 : vector<2x8x32xf32>
    %cst_54 = arith.constant dense<0.000000e+00> : vector<2x8xf32>
    %287 = vector.multi_reduction <add>, %286, %cst_54 [2] : vector<2x8x32xf32> to vector<2x8xf32>
    %288 = math.exp %287 : vector<2x8xf32>
    %cst_55 = arith.constant dense<0.000000e+00> : vector<2xf32>
    %289 = vector.multi_reduction <add>, %288, %cst_55 [1] : vector<2x8xf32> to vector<2xf32>
    %290 = vector.shape_cast %289 : vector<2xf32> to vector<2x1xf32>
    %291 = vector.broadcast %290 : vector<2x1xf32> to vector<2x8xf32>
    %292 = arith.divf %288, %291 : vector<2x8xf32>
    %cst_56 = arith.constant 0.000000e+00 : f32
    %293 = vector.broadcast %cst_56 : f32 to vector<2x32xf32>
    %cst_57 = arith.constant dense<0.000000e+00> : vector<2x64xf32>
    %294 = tpu.matmul %293, %39, %cst_57 {dimension_numbers = #tpu.dot_dimension_numbers<[1], [0], [0], [1], [0, 0, 1, 1], [], []>} : vector<2x32xf32>, vector<32x64xf32>, vector<2x64xf32> -> vector<2x64xf32>
    %295 = vector.extract_strided_slice %44 {offsets = [0, 0, 0], sizes = [2, 1, 32], strides = [1, 1, 1]} : vector<2x8x32xf32> to vector<2x1x32xf32>
    %296 = vector.shape_cast %295 : vector<2x1x32xf32> to vector<2x32xf32>
    %297 = vector.extract_strided_slice %294 {offsets = [0, 0], sizes = [2, 32], strides = [1, 1]} : vector<2x64xf32> to vector<2x32xf32>
    %298 = arith.addf %296, %297 : vector<2x32xf32>
    %299 = arith.negf %298 : vector<2x32xf32>
    %300 = math.exp %299 : vector<2x32xf32>
    %cst_58 = arith.constant 1.000000e+00 : f32
    %301 = vector.broadcast %cst_58 : f32 to vector<2x32xf32>
    %302 = arith.addf %301, %300 : vector<2x32xf32>
    %303 = arith.divf %301, %302 : vector<2x32xf32>
    %304 = vector.extract_strided_slice %48 {offsets = [0, 0, 0], sizes = [2, 1, 32], strides = [1, 1, 1]} : vector<2x8x32xf32> to vector<2x1x32xf32>
    %305 = vector.shape_cast %304 : vector<2x1x32xf32> to vector<2x32xf32>
    %306 = vector.extract_strided_slice %294 {offsets = [0, 32], sizes = [2, 32], strides = [1, 1]} : vector<2x64xf32> to vector<2x32xf32>
    %307 = arith.mulf %303, %306 : vector<2x32xf32>
    %308 = arith.addf %305, %307 : vector<2x32xf32>
    %309 = math.tanh %308 : vector<2x32xf32>
    %310 = vector.extract_strided_slice %292 {offsets = [0, 0], sizes = [2, 1], strides = [1, 1]} : vector<2x8xf32> to vector<2x1xf32>
    %311 = vector.broadcast %310 : vector<2x1xf32> to vector<2x32xf32>
    %312 = arith.mulf %311, %309 : vector<2x32xf32>
    %cst_59 = arith.constant 1.000000e+00 : f32
    %313 = vector.broadcast %cst_59 : f32 to vector<2x1xf32>
    %314 = arith.subf %313, %310 : vector<2x1xf32>
    %315 = vector.broadcast %314 : vector<2x1xf32> to vector<2x32xf32>
    %316 = arith.mulf %315, %293 : vector<2x32xf32>
    %317 = arith.addf %312, %316 : vector<2x32xf32>
    %cst_60 = arith.constant dense<0.000000e+00> : vector<2x64xf32>
    %318 = tpu.matmul %317, %39, %cst_60 {dimension_numbers = #tpu.dot_dimension_numbers<[1], [0], [0], [1], [0, 0, 1, 1], [], []>} : vector<2x32xf32>, vector<32x64xf32>, vector<2x64xf32> -> vector<2x64xf32>
    %319 = vector.extract_strided_slice %44 {offsets = [0, 1, 0], sizes = [2, 1, 32], strides = [1, 1, 1]} : vector<2x8x32xf32> to vector<2x1x32xf32>
    %320 = vector.shape_cast %319 : vector<2x1x32xf32> to vector<2x32xf32>
    %321 = vector.extract_strided_slice %318 {offsets = [0, 0], sizes = [2, 32], strides = [1, 1]} : vector<2x64xf32> to vector<2x32xf32>
    %322 = arith.addf %320, %321 : vector<2x32xf32>
    %323 = arith.negf %322 : vector<2x32xf32>
    %324 = math.exp %323 : vector<2x32xf32>
    %cst_61 = arith.constant 1.000000e+00 : f32
    %325 = vector.broadcast %cst_61 : f32 to vector<2x32xf32>
    %326 = arith.addf %325, %324 : vector<2x32xf32>
    %327 = arith.divf %325, %326 : vector<2x32xf32>
    %328 = vector.extract_strided_slice %48 {offsets = [0, 1, 0], sizes = [2, 1, 32], strides = [1, 1, 1]} : vector<2x8x32xf32> to vector<2x1x32xf32>
    %329 = vector.shape_cast %328 : vector<2x1x32xf32> to vector<2x32xf32>
    %330 = vector.extract_strided_slice %318 {offsets = [0, 32], sizes = [2, 32], strides = [1, 1]} : vector<2x64xf32> to vector<2x32xf32>
    %331 = arith.mulf %327, %330 : vector<2x32xf32>
    %332 = arith.addf %329, %331 : vector<2x32xf32>
    %333 = math.tanh %332 : vector<2x32xf32>
    %334 = vector.extract_strided_slice %292 {offsets = [0, 1], sizes = [2, 1], strides = [1, 1]} : vector<2x8xf32> to vector<2x1xf32>
    %335 = vector.broadcast %334 : vector<2x1xf32> to vector<2x32xf32>
    %336 = arith.mulf %335, %333 : vector<2x32xf32>
    %cst_62 = arith.constant 1.000000e+00 : f32
    %337 = vector.broadcast %cst_62 : f32 to vector<2x1xf32>
    %338 = arith.subf %337, %334 : vector<2x1xf32>
    %339 = vector.broadcast %338 : vector<2x1xf32> to vector<2x32xf32>
    %340 = arith.mulf %339, %317 : vector<2x32xf32>
    %341 = arith.addf %336, %340 : vector<2x32xf32>
    %cst_63 = arith.constant dense<0.000000e+00> : vector<2x64xf32>
    %342 = tpu.matmul %341, %39, %cst_63 {dimension_numbers = #tpu.dot_dimension_numbers<[1], [0], [0], [1], [0, 0, 1, 1], [], []>} : vector<2x32xf32>, vector<32x64xf32>, vector<2x64xf32> -> vector<2x64xf32>
    %343 = vector.extract_strided_slice %44 {offsets = [0, 2, 0], sizes = [2, 1, 32], strides = [1, 1, 1]} : vector<2x8x32xf32> to vector<2x1x32xf32>
    %344 = vector.shape_cast %343 : vector<2x1x32xf32> to vector<2x32xf32>
    %345 = vector.extract_strided_slice %342 {offsets = [0, 0], sizes = [2, 32], strides = [1, 1]} : vector<2x64xf32> to vector<2x32xf32>
    %346 = arith.addf %344, %345 : vector<2x32xf32>
    %347 = arith.negf %346 : vector<2x32xf32>
    %348 = math.exp %347 : vector<2x32xf32>
    %cst_64 = arith.constant 1.000000e+00 : f32
    %349 = vector.broadcast %cst_64 : f32 to vector<2x32xf32>
    %350 = arith.addf %349, %348 : vector<2x32xf32>
    %351 = arith.divf %349, %350 : vector<2x32xf32>
    %352 = vector.extract_strided_slice %48 {offsets = [0, 2, 0], sizes = [2, 1, 32], strides = [1, 1, 1]} : vector<2x8x32xf32> to vector<2x1x32xf32>
    %353 = vector.shape_cast %352 : vector<2x1x32xf32> to vector<2x32xf32>
    %354 = vector.extract_strided_slice %342 {offsets = [0, 32], sizes = [2, 32], strides = [1, 1]} : vector<2x64xf32> to vector<2x32xf32>
    %355 = arith.mulf %351, %354 : vector<2x32xf32>
    %356 = arith.addf %353, %355 : vector<2x32xf32>
    %357 = math.tanh %356 : vector<2x32xf32>
    %358 = vector.extract_strided_slice %292 {offsets = [0, 2], sizes = [2, 1], strides = [1, 1]} : vector<2x8xf32> to vector<2x1xf32>
    %359 = vector.broadcast %358 : vector<2x1xf32> to vector<2x32xf32>
    %360 = arith.mulf %359, %357 : vector<2x32xf32>
    %cst_65 = arith.constant 1.000000e+00 : f32
    %361 = vector.broadcast %cst_65 : f32 to vector<2x1xf32>
    %362 = arith.subf %361, %358 : vector<2x1xf32>
    %363 = vector.broadcast %362 : vector<2x1xf32> to vector<2x32xf32>
    %364 = arith.mulf %363, %341 : vector<2x32xf32>
    %365 = arith.addf %360, %364 : vector<2x32xf32>
    %cst_66 = arith.constant dense<0.000000e+00> : vector<2x64xf32>
    %366 = tpu.matmul %365, %39, %cst_66 {dimension_numbers = #tpu.dot_dimension_numbers<[1], [0], [0], [1], [0, 0, 1, 1], [], []>} : vector<2x32xf32>, vector<32x64xf32>, vector<2x64xf32> -> vector<2x64xf32>
    %367 = vector.extract_strided_slice %44 {offsets = [0, 3, 0], sizes = [2, 1, 32], strides = [1, 1, 1]} : vector<2x8x32xf32> to vector<2x1x32xf32>
    %368 = vector.shape_cast %367 : vector<2x1x32xf32> to vector<2x32xf32>
    %369 = vector.extract_strided_slice %366 {offsets = [0, 0], sizes = [2, 32], strides = [1, 1]} : vector<2x64xf32> to vector<2x32xf32>
    %370 = arith.addf %368, %369 : vector<2x32xf32>
    %371 = arith.negf %370 : vector<2x32xf32>
    %372 = math.exp %371 : vector<2x32xf32>
    %cst_67 = arith.constant 1.000000e+00 : f32
    %373 = vector.broadcast %cst_67 : f32 to vector<2x32xf32>
    %374 = arith.addf %373, %372 : vector<2x32xf32>
    %375 = arith.divf %373, %374 : vector<2x32xf32>
    %376 = vector.extract_strided_slice %48 {offsets = [0, 3, 0], sizes = [2, 1, 32], strides = [1, 1, 1]} : vector<2x8x32xf32> to vector<2x1x32xf32>
    %377 = vector.shape_cast %376 : vector<2x1x32xf32> to vector<2x32xf32>
    %378 = vector.extract_strided_slice %366 {offsets = [0, 32], sizes = [2, 32], strides = [1, 1]} : vector<2x64xf32> to vector<2x32xf32>
    %379 = arith.mulf %375, %378 : vector<2x32xf32>
    %380 = arith.addf %377, %379 : vector<2x32xf32>
    %381 = math.tanh %380 : vector<2x32xf32>
    %382 = vector.extract_strided_slice %292 {offsets = [0, 3], sizes = [2, 1], strides = [1, 1]} : vector<2x8xf32> to vector<2x1xf32>
    %383 = vector.broadcast %382 : vector<2x1xf32> to vector<2x32xf32>
    %384 = arith.mulf %383, %381 : vector<2x32xf32>
    %cst_68 = arith.constant 1.000000e+00 : f32
    %385 = vector.broadcast %cst_68 : f32 to vector<2x1xf32>
    %386 = arith.subf %385, %382 : vector<2x1xf32>
    %387 = vector.broadcast %386 : vector<2x1xf32> to vector<2x32xf32>
    %388 = arith.mulf %387, %365 : vector<2x32xf32>
    %389 = arith.addf %384, %388 : vector<2x32xf32>
    %cst_69 = arith.constant dense<0.000000e+00> : vector<2x64xf32>
    %390 = tpu.matmul %389, %39, %cst_69 {dimension_numbers = #tpu.dot_dimension_numbers<[1], [0], [0], [1], [0, 0, 1, 1], [], []>} : vector<2x32xf32>, vector<32x64xf32>, vector<2x64xf32> -> vector<2x64xf32>
    %391 = vector.extract_strided_slice %44 {offsets = [0, 4, 0], sizes = [2, 1, 32], strides = [1, 1, 1]} : vector<2x8x32xf32> to vector<2x1x32xf32>
    %392 = vector.shape_cast %391 : vector<2x1x32xf32> to vector<2x32xf32>
    %393 = vector.extract_strided_slice %390 {offsets = [0, 0], sizes = [2, 32], strides = [1, 1]} : vector<2x64xf32> to vector<2x32xf32>
    %394 = arith.addf %392, %393 : vector<2x32xf32>
    %395 = arith.negf %394 : vector<2x32xf32>
    %396 = math.exp %395 : vector<2x32xf32>
    %cst_70 = arith.constant 1.000000e+00 : f32
    %397 = vector.broadcast %cst_70 : f32 to vector<2x32xf32>
    %398 = arith.addf %397, %396 : vector<2x32xf32>
    %399 = arith.divf %397, %398 : vector<2x32xf32>
    %400 = vector.extract_strided_slice %48 {offsets = [0, 4, 0], sizes = [2, 1, 32], strides = [1, 1, 1]} : vector<2x8x32xf32> to vector<2x1x32xf32>
    %401 = vector.shape_cast %400 : vector<2x1x32xf32> to vector<2x32xf32>
    %402 = vector.extract_strided_slice %390 {offsets = [0, 32], sizes = [2, 32], strides = [1, 1]} : vector<2x64xf32> to vector<2x32xf32>
    %403 = arith.mulf %399, %402 : vector<2x32xf32>
    %404 = arith.addf %401, %403 : vector<2x32xf32>
    %405 = math.tanh %404 : vector<2x32xf32>
    %406 = vector.extract_strided_slice %292 {offsets = [0, 4], sizes = [2, 1], strides = [1, 1]} : vector<2x8xf32> to vector<2x1xf32>
    %407 = vector.broadcast %406 : vector<2x1xf32> to vector<2x32xf32>
    %408 = arith.mulf %407, %405 : vector<2x32xf32>
    %cst_71 = arith.constant 1.000000e+00 : f32
    %409 = vector.broadcast %cst_71 : f32 to vector<2x1xf32>
    %410 = arith.subf %409, %406 : vector<2x1xf32>
    %411 = vector.broadcast %410 : vector<2x1xf32> to vector<2x32xf32>
    %412 = arith.mulf %411, %389 : vector<2x32xf32>
    %413 = arith.addf %408, %412 : vector<2x32xf32>
    %cst_72 = arith.constant dense<0.000000e+00> : vector<2x64xf32>
    %414 = tpu.matmul %413, %39, %cst_72 {dimension_numbers = #tpu.dot_dimension_numbers<[1], [0], [0], [1], [0, 0, 1, 1], [], []>} : vector<2x32xf32>, vector<32x64xf32>, vector<2x64xf32> -> vector<2x64xf32>
    %415 = vector.extract_strided_slice %44 {offsets = [0, 5, 0], sizes = [2, 1, 32], strides = [1, 1, 1]} : vector<2x8x32xf32> to vector<2x1x32xf32>
    %416 = vector.shape_cast %415 : vector<2x1x32xf32> to vector<2x32xf32>
    %417 = vector.extract_strided_slice %414 {offsets = [0, 0], sizes = [2, 32], strides = [1, 1]} : vector<2x64xf32> to vector<2x32xf32>
    %418 = arith.addf %416, %417 : vector<2x32xf32>
    %419 = arith.negf %418 : vector<2x32xf32>
    %420 = math.exp %419 : vector<2x32xf32>
    %cst_73 = arith.constant 1.000000e+00 : f32
    %421 = vector.broadcast %cst_73 : f32 to vector<2x32xf32>
    %422 = arith.addf %421, %420 : vector<2x32xf32>
    %423 = arith.divf %421, %422 : vector<2x32xf32>
    %424 = vector.extract_strided_slice %48 {offsets = [0, 5, 0], sizes = [2, 1, 32], strides = [1, 1, 1]} : vector<2x8x32xf32> to vector<2x1x32xf32>
    %425 = vector.shape_cast %424 : vector<2x1x32xf32> to vector<2x32xf32>
    %426 = vector.extract_strided_slice %414 {offsets = [0, 32], sizes = [2, 32], strides = [1, 1]} : vector<2x64xf32> to vector<2x32xf32>
    %427 = arith.mulf %423, %426 : vector<2x32xf32>
    %428 = arith.addf %425, %427 : vector<2x32xf32>
    %429 = math.tanh %428 : vector<2x32xf32>
    %430 = vector.extract_strided_slice %292 {offsets = [0, 5], sizes = [2, 1], strides = [1, 1]} : vector<2x8xf32> to vector<2x1xf32>
    %431 = vector.broadcast %430 : vector<2x1xf32> to vector<2x32xf32>
    %432 = arith.mulf %431, %429 : vector<2x32xf32>
    %cst_74 = arith.constant 1.000000e+00 : f32
    %433 = vector.broadcast %cst_74 : f32 to vector<2x1xf32>
    %434 = arith.subf %433, %430 : vector<2x1xf32>
    %435 = vector.broadcast %434 : vector<2x1xf32> to vector<2x32xf32>
    %436 = arith.mulf %435, %413 : vector<2x32xf32>
    %437 = arith.addf %432, %436 : vector<2x32xf32>
    %cst_75 = arith.constant dense<0.000000e+00> : vector<2x64xf32>
    %438 = tpu.matmul %437, %39, %cst_75 {dimension_numbers = #tpu.dot_dimension_numbers<[1], [0], [0], [1], [0, 0, 1, 1], [], []>} : vector<2x32xf32>, vector<32x64xf32>, vector<2x64xf32> -> vector<2x64xf32>
    %439 = vector.extract_strided_slice %44 {offsets = [0, 6, 0], sizes = [2, 1, 32], strides = [1, 1, 1]} : vector<2x8x32xf32> to vector<2x1x32xf32>
    %440 = vector.shape_cast %439 : vector<2x1x32xf32> to vector<2x32xf32>
    %441 = vector.extract_strided_slice %438 {offsets = [0, 0], sizes = [2, 32], strides = [1, 1]} : vector<2x64xf32> to vector<2x32xf32>
    %442 = arith.addf %440, %441 : vector<2x32xf32>
    %443 = arith.negf %442 : vector<2x32xf32>
    %444 = math.exp %443 : vector<2x32xf32>
    %cst_76 = arith.constant 1.000000e+00 : f32
    %445 = vector.broadcast %cst_76 : f32 to vector<2x32xf32>
    %446 = arith.addf %445, %444 : vector<2x32xf32>
    %447 = arith.divf %445, %446 : vector<2x32xf32>
    %448 = vector.extract_strided_slice %48 {offsets = [0, 6, 0], sizes = [2, 1, 32], strides = [1, 1, 1]} : vector<2x8x32xf32> to vector<2x1x32xf32>
    %449 = vector.shape_cast %448 : vector<2x1x32xf32> to vector<2x32xf32>
    %450 = vector.extract_strided_slice %438 {offsets = [0, 32], sizes = [2, 32], strides = [1, 1]} : vector<2x64xf32> to vector<2x32xf32>
    %451 = arith.mulf %447, %450 : vector<2x32xf32>
    %452 = arith.addf %449, %451 : vector<2x32xf32>
    %453 = math.tanh %452 : vector<2x32xf32>
    %454 = vector.extract_strided_slice %292 {offsets = [0, 6], sizes = [2, 1], strides = [1, 1]} : vector<2x8xf32> to vector<2x1xf32>
    %455 = vector.broadcast %454 : vector<2x1xf32> to vector<2x32xf32>
    %456 = arith.mulf %455, %453 : vector<2x32xf32>
    %cst_77 = arith.constant 1.000000e+00 : f32
    %457 = vector.broadcast %cst_77 : f32 to vector<2x1xf32>
    %458 = arith.subf %457, %454 : vector<2x1xf32>
    %459 = vector.broadcast %458 : vector<2x1xf32> to vector<2x32xf32>
    %460 = arith.mulf %459, %437 : vector<2x32xf32>
    %461 = arith.addf %456, %460 : vector<2x32xf32>
    %cst_78 = arith.constant dense<0.000000e+00> : vector<2x64xf32>
    %462 = tpu.matmul %461, %39, %cst_78 {dimension_numbers = #tpu.dot_dimension_numbers<[1], [0], [0], [1], [0, 0, 1, 1], [], []>} : vector<2x32xf32>, vector<32x64xf32>, vector<2x64xf32> -> vector<2x64xf32>
    %463 = vector.extract_strided_slice %44 {offsets = [0, 7, 0], sizes = [2, 1, 32], strides = [1, 1, 1]} : vector<2x8x32xf32> to vector<2x1x32xf32>
    %464 = vector.shape_cast %463 : vector<2x1x32xf32> to vector<2x32xf32>
    %465 = vector.extract_strided_slice %462 {offsets = [0, 0], sizes = [2, 32], strides = [1, 1]} : vector<2x64xf32> to vector<2x32xf32>
    %466 = arith.addf %464, %465 : vector<2x32xf32>
    %467 = arith.negf %466 : vector<2x32xf32>
    %468 = math.exp %467 : vector<2x32xf32>
    %cst_79 = arith.constant 1.000000e+00 : f32
    %469 = vector.broadcast %cst_79 : f32 to vector<2x32xf32>
    %470 = arith.addf %469, %468 : vector<2x32xf32>
    %471 = arith.divf %469, %470 : vector<2x32xf32>
    %472 = vector.extract_strided_slice %48 {offsets = [0, 7, 0], sizes = [2, 1, 32], strides = [1, 1, 1]} : vector<2x8x32xf32> to vector<2x1x32xf32>
    %473 = vector.shape_cast %472 : vector<2x1x32xf32> to vector<2x32xf32>
    %474 = vector.extract_strided_slice %462 {offsets = [0, 32], sizes = [2, 32], strides = [1, 1]} : vector<2x64xf32> to vector<2x32xf32>
    %475 = arith.mulf %471, %474 : vector<2x32xf32>
    %476 = arith.addf %473, %475 : vector<2x32xf32>
    %477 = math.tanh %476 : vector<2x32xf32>
    %478 = vector.extract_strided_slice %292 {offsets = [0, 7], sizes = [2, 1], strides = [1, 1]} : vector<2x8xf32> to vector<2x1xf32>
    %479 = vector.broadcast %478 : vector<2x1xf32> to vector<2x32xf32>
    %480 = arith.mulf %479, %477 : vector<2x32xf32>
    %cst_80 = arith.constant 1.000000e+00 : f32
    %481 = vector.broadcast %cst_80 : f32 to vector<2x1xf32>
    %482 = arith.subf %481, %478 : vector<2x1xf32>
    %483 = vector.broadcast %482 : vector<2x1xf32> to vector<2x32xf32>
    %484 = arith.mulf %483, %461 : vector<2x32xf32>
    %485 = arith.addf %480, %484 : vector<2x32xf32>
    %486 = tpu.concatenate %271, %485, %3, %5 in 1 : vector<2x32xf32>, vector<2x32xf32>, vector<2x32xf32>, vector<2x32xf32> -> vector<2x128xf32>
    %c512 = arith.constant 512 : index
    %c0_81 = arith.constant 0 : index
    %487 = vector.load %arg2[%c512, %c0_81] : memref<646x32xf32, #tpu.memory_space<vmem>>, vector<128x32xf32>
    %c645 = arith.constant 645 : index
    %c0_82 = arith.constant 0 : index
    %488 = vector.load %arg2[%c645, %c0_82] : memref<646x32xf32, #tpu.memory_space<vmem>>, vector<1x32xf32>
    %cst_83 = arith.constant dense<0.000000e+00> : vector<2x32xf32>
    %489 = tpu.matmul %486, %487, %cst_83 {dimension_numbers = #tpu.dot_dimension_numbers<[1], [0], [0], [1], [0, 0, 1, 1], [], []>} : vector<2x128xf32>, vector<128x32xf32>, vector<2x32xf32> -> vector<2x32xf32>
    %490 = vector.broadcast %488 : vector<1x32xf32> to vector<2x32xf32>
    %491 = arith.addf %489, %490 : vector<2x32xf32>
    %cst_84 = arith.constant 0.000000e+00 : f32
    %492 = vector.broadcast %cst_84 : f32 to vector<2x32xf32>
    %493 = arith.maximumf %491, %492 : vector<2x32xf32>
    %494 = tpu.concatenate %271, %493 in 1 : vector<2x32xf32>, vector<2x32xf32> -> vector<2x64xf32>
    %c0_85 = arith.constant 0 : index
    %c0_86 = arith.constant 0 : index
    %495 = vector.load %arg3[%c0_85, %c0_86] : memref<2x64xf32, #tpu.memory_space<vmem>>, vector<2x64xf32>
    tpu.vector_store %arg3[%c0_85, %c0_86], %494 {strides = array<i32>} : memref<2x64xf32, #tpu.memory_space<vmem>>, vector<2x64xf32>,
    return
  }
}

</mosaic_0001>

<bundles_post_ra>
// kernel: tpu_custom_call.1
= control target key start
LH: loop header
LB: loop body
LE: loop exit
PB: predicated region body
PF: predicated region fallthrough
CT: control target
= control target key end

     0   :  { %v30_v3 = vlaneseq  ;;  %v6212_v6 = vmov 1966171168   ;;  %s6213_s22 = smov 32   ;;  %vm142_vm0 = vcmask 261120   ;;  %v7856_v15 = vmov 0.0|0.0   ;;  %s7852_s0 = inlined_call_operand.vmem [shape: f32[2,8,32], index: 0, kind: input, shape index: {}]   ;;  %s7853_s1 = inlined_call_operand.vmem [shape: f32[3,2,32], index: 1, kind: input, shape index: {}]   ;;  %s7854_s2 = inlined_call_operand.vmem [shape: f32[646,32], index: 2, kind: input, shape index: {}]   ;;  %s7855_s3 = inlined_call_operand.hbm [shape: f32[2,64], index: 3, kind: output, shape index: {}]  }
   0x1   :  { %v266_v0 = vld [vmem:[%s7854_s2 + $0x20] sm:$0xff]  ;;  %v267_v1 = vld [vmem:[%s7854_s2 + $0x28] sm:$0xff]  ;;  %v268_v2 = vld [vmem:[%s7854_s2 + $0x30] sm:$0xff]  ;;  %v28_v7 = vunpack.c.l.s4 %v6212_v6  ;;  %5675 = vmatprep.subr.bf16.mxu0 %v7856_v15 }
   0x2   :  { %v5898_v4 = vpack.i.bf16 %v267_v1, %v266_v0  ;;  %v269_v5 = vld [vmem:[%s7854_s2 + $0x38] sm:$0xff]  ;;  %v6256_v8 = vld [vmem:[%s7852_s0] sm:$0xff]  ;;  %v6259_v9 = vshrl.u32 %v30_v3, 7  ;;  %v154_v17 = vld [vmem:[%s7854_s2 + $0x88] sm:$0xff] }
   0x3   :  { %v5903_v10 = vpack.i.bf16 %v269_v5, %v268_v2  ;;  %v6185_v11 = vld.sshfl [vmem:[%s7853_s1 + $0x2] sm:$0x11 pattern:$0x75316420]  ;;  %v29_v12 = vunpack.c.0.s8 %v28_v7  ;;  %5399 = vmatprep.mubr.msk.f32.mxu1 %vm142_vm0, %v6256_v8  ;;  %v155_v20 = vld [vmem:[%s7854_s2 + $0x90] sm:$0xff]  ;;  %v156_v21 = vld [vmem:[%s7854_s2 + $0x98] sm:$0xff] }
   0x4   :  { %5899 = vrot.lane.b32.xlu0 %v5898_v4, %s6213_s22  ;;  %v6186_v13 = vld.sshfl [vmem:[%s7853_s1] sm:$0x11 pattern:$0x75316420]  ;;  %v6291_v22 = vsub.s32 0, %v6259_v9  ;;  %v5679_v23 = vpack.c.bf16 %v156_v21, %v155_v20  ;;  %v67_v24 = vcombine.high %v6185_v11, %v6185_v11  ;;  %v158_v29 = vld [vmem:[%s7854_s2 + $0xa8] sm:$0xff] }
   0x5   :  { %v6187_v14 = vld.sshfl [vmem:[%s7853_s1 + $0x4] sm:$0x11 pattern:$0x75316420]  ;;  %v6281_v18 = vsub.s32 %v29_v12, %v6259_v9  ;;  %v34_v27 = vcombine.high %v6186_v13, %v6186_v13  ;;  %v6317_v37 = vld [vmem:[%s7852_s0 + $0x8] sm:$0xff]  ;;  %v159_v45 = vld [vmem:[%s7854_s2 + $0xb0] sm:$0xff] }
   0x6   :  { %v153_v16 = vld [vmem:[%s7854_s2 + $0x80] sm:$0xff]  ;;  %v431_v31 = vcombine.high %v6187_v14, %v6187_v14  ;;  %v160_v46 = vld [vmem:[%s7854_s2 + $0xb8] sm:$0xff]  ;;  %v295_v48 = vld [vmem:[%s7854_s2 + $0x68] sm:$0xff] }
   0x7   :  { %v5676_v19 = vpack.c.bf16 %v154_v17, %v153_v16  ;;  %v74_v25 = vrot.slane %v6185_v11, %v6281_v18  ;;  %v41_v26 = vrot.slane %v6186_v13, %v6281_v18  ;;  %v157_v28 = vld [vmem:[%s7854_s2 + $0xa0] sm:$0xff]  ;;  %v438_v30 = vrot.slane %v6187_v14, %v6281_v18  ;;  %v162_v62 = vld [vmem:[%s7854_s2 + $0xc8] sm:$0xff] }
   0x8   :  { %5904 = vrot.lane.b32.xlu0 %v5903_v10, %s6213_s22  ;;  %v48_v34 = vrot.slane %v34_v27, %v6281_v18  ;;  %v81_v35 = vrot.slane %v67_v24, %v6281_v18  ;;  %v294_v36 = vld [vmem:[%s7854_s2 + $0x60] sm:$0xff]  ;;  %v445_v39 = vrot.slane %v431_v31, %v6281_v18  ;;  %v5682_v40 = vpack.c.bf16 %v158_v29, %v157_v28 }
   0x9   :  { %5677 = vmatpush1.bf16.msra.mxu0 %v5676_v19  ;;  %v6304_v32 = vrot.slane %v74_v25, %v6291_v22  ;;  %v6307_v33 = vrot.slane %v41_v26, %v6291_v22  ;;  %v6320_v38 = vrot.slane %v438_v30, %v6291_v22  ;;  %v5685_v57 = vpack.c.bf16 %v160_v46, %v159_v45  ;;  %v161_v61 = vld [vmem:[%s7854_s2 + $0xc0] sm:$0xff] }
   0xa   :  { %5678 = vmatprep.subr.bf16.mxu0 %v7856_v15  ;;  %v6328_v43 = vrot.slane %v48_v34, %v6291_v22  ;;  %v6331_v44 = vrot.slane %v81_v35, %v6291_v22  ;;  %v6346_v49 = vrot.slane %v445_v39, %v6291_v22 }
   0xb   :  { %v94_v41 = vmul.f32 %v6304_v32, %v6256_v8  ;;  %v106_v42 = vsub.f32 %v6307_v33, %v6304_v32  ;;  %v96_v47 = vmul.f32 %v6304_v32, %v6307_v33  ;;  %v458_v54 = vsub.f32 %v6256_v8, %v6320_v38 }
   0xc   :  { %v97_v52 = vmul.f32 %v6331_v44, %v6328_v43  ;;  %v95_v53 = vmul.f32 %v6331_v44, %v6317_v37  ;;  %v459_v55 = vsub.f32 %v6317_v37, %v6346_v49  ;;  %v98_v56 = vsub.f32 %v6256_v8, %v6307_v33 }
   0xd   :  { %5680 = vmatpush1.bf16.msra.mxu0 %v5679_v23  ;;  %v5908_v50 = vpack.i.bf16 %v294_v36, %v94_v41  ;;  %v108_v51 = vand.u32 2147483647, %v106_v42  ;;  %v99_v60 = vsub.f32 %v6317_v37, %v6328_v43 }
   0xe   :  { %5681 = vmatprep.subr.bf16.mxu0 %v7856_v15  ;;  %v5913_v58 = vpack.i.bf16 %v97_v52, %v96_v47  ;;  %v5918_v59 = vpack.i.bf16 %v95_v53, %v295_v48 }
   0xf   :  { %5909 = vrot.lane.b32.xlu1 %v5908_v50, %s6213_s22  ;;  %136 = vrot.lane.b32.xlu0 %v108_v51, %s6213_s22 }
  0x11   :  { %5683 = vmatpush1.bf16.msra.mxu0 %v5682_v40 }
  0x12   :  { %5684 = vmatprep.subr.bf16.mxu0 %v7856_v15 }
  0x13   :  { %8 = vsyncpa [#allocation3], 0  ;;  %v460_v63 = vand.u32 2147483647, %v458_v54  ;;  %v5688_v0 = vpack.c.bf16 %v162_v62, %v161_v61  ;;  %v163_v1 = vld [vmem:[%s7854_s2 + $0xd0] sm:$0xff]  ;;  %v164_v2 = vld [vmem:[%s7854_s2 + $0xd8] sm:$0xff]  ;;  %5919 = vrot.lane.b32.xlu0 %v5918_v59, %s6213_s22  ;;  %v107_v14 = vsub.f32 %v6328_v43, %v6331_v44  ;;  %v102_v61 = vsub.f32 %v6256_v8, %v6304_v32 }
  0x14   :  { %s6215_s6 = smov 64   ;;  %v461_v4 = vand.u32 2147483647, %v459_v55  ;;  %v100_v5 = vand.u32 2147483647, %v98_v56  ;;  %v296_v7 = vld [vmem:[%s7854_s2 + $0x70] sm:$0xff]  ;;  %v5691_v11 = vpack.c.bf16 %v164_v2, %v163_v1 }
  0x15   :  { %5686 = vmatpush1.bf16.msra.mxu0 %v5685_v57  ;;  %5914 = vrot.lane.b32.xlu1 %v5913_v58, %s6215_s6  ;;  %v101_v6 = vand.u32 2147483647, %v99_v60  ;;  %v297_v10 = vld [vmem:[%s7854_s2 + $0x78] sm:$0xff]  ;;  %v165_v16 = vld [vmem:[%s7854_s2 + $0xe0] sm:$0xff]  ;;  %v166_v17 = vld [vmem:[%s7854_s2 + $0xe8] sm:$0xff]  ;;  %s6216_s15 = smov 96  }
  0x16   :  { %5687 = vmatprep.subr.bf16.mxu0 %v7856_v15  ;;  %v5928_v13 = vpack.i.bf16 %v297_v10, %v296_v7  ;;  %v5694_v19 = vpack.c.bf16 %v166_v17, %v165_v16  ;;  %v109_v20 = vand.u32 2147483647, %v107_v14  ;;  %v167_v21 = vld [vmem:[%s7854_s2 + $0xf0] sm:$0xff]  ;;  %v168_v23 = vld [vmem:[%s7854_s2 + $0xf8] sm:$0xff]  ;;  %v169_v25 = vld [vmem:[%s7854_s2 + $0x100] sm:$0xff]  ;;  %vm145_vm1 = vcmask 523264  }
  0x17   :  { %466 = vrot.lane.b32.xlu0 %v461_v4, %s6213_s22  ;;  %v5923_v12 = vpack.i.bf16 %v101_v6, %v100_v5  ;;  %v5697_v24 = vpack.c.bf16 %v168_v23, %v167_v21  ;;  %v170_v26 = vld [vmem:[%s7854_s2 + $0x108] sm:$0xff]  ;;  %v171_v28 = vld [vmem:[%s7854_s2 + $0x110] sm:$0xff]  ;;  %v172_v29 = vld [vmem:[%s7854_s2 + $0x118] sm:$0xff]  ;;  %v104_v2 = vand.u32 2147483647, %v102_v61  ;;  %v456_v17 = vmul.f32 %v6320_v38, %v6256_v8  ;;  %s6220_s29 = smov [#allocation2]  }
  0x18   :  { %v5700_v27 = vpack.c.bf16 %v170_v26, %v169_v25  ;;  %v5703_v30 = vpack.c.bf16 %v172_v29, %v171_v28  ;;  %v173_v31 = vld [vmem:[%s7854_s2 + $0x120] sm:$0xff]  ;;  %v174_v34 = vld [vmem:[%s7854_s2 + $0x128] sm:$0xff]  ;;  %v175_v36 = vld [vmem:[%s7854_s2 + $0x130] sm:$0xff]  ;;  %v103_v28 = vsub.f32 %v6317_v37, %v6331_v44  ;;  %vm148_vm2 = vcmask 785408   ;;  %s5188_s30 = sshll.u32 %s6220_s29, 4  ;;  %s5189_s30 = int_to_ptr.vmem [resolvable:$true] %s5188_s30 }
  0x19   :  { %5689 = vmatpush1.bf16.msra.mxu0 %v5688_v0  ;;  %464 = vrot.lane.b32.xlu1 %v460_v63, %s6213_s22  ;;  %v5706_v35 = vpack.c.bf16 %v174_v34, %v173_v31  ;;  %v176_v39 = vld [vmem:[%s7854_s2 + $0x138] sm:$0xff]  ;;  %v262_v42 = vld [vmem:[%s7854_s2] sm:$0xff]  ;;  %v263_v45 = vld [vmem:[%s7854_s2 + $0x8] sm:$0xff]  ;;  %vm6217_vm3 = vmmov 0   ;;  %vm585_vm4 = vcmask 1041409   ;;  %vm588_vm5 = vcmask 58368   ;;  %p6193_p1 = scmp.lt.s32.totalorder %s5189_s30, %s5189_s30 }
  0x1a   :  { %5690 = vmatprep.subr.bf16.mxu0 %v7856_v15  ;;  %v5709_v40 = vpack.c.bf16 %v176_v39, %v175_v36  ;;  %v264_v53 = vld [vmem:[%s7854_s2 + $0x10] sm:$0xff]  ;;  %v265_v54 = vld [vmem:[%s7854_s2 + $0x18] sm:$0xff]  ;;  %v415_v57 = vld [vmem:[%s7854_s2 + $0x140] sm:$0xff]  ;;  %vm845_vm6 = vcmask 130112   ;;  %vm852_vm7 = vcmask 195712   ;;  %vm859_vm8 = vcmask 261312  }
  0x1b   :  { %5929 = vrot.lane.b32.xlu0 %v5928_v13, %s6213_s22  ;;  %v416_v58 = vld [vmem:[%s7854_s2 + $0x148] sm:$0xff]  ;;  %v417_v0 = vld [vmem:[%s7854_s2 + $0x150] sm:$0xff]  ;;  %v418_v1 = vld [vmem:[%s7854_s2 + $0x158] sm:$0xff]  ;;  %vm2755_vm9 = vcmask 392512   ;;  %vm2762_vm10 = vcmask 458112   ;;  %vm2769_vm11 = vcmask 523712  }
  0x1c   :  { %v6459_v63 = vpack.c.bf16 %v416_v58, %v415_v57  ;;  %v6468_v4 = vpack.c.bf16 %v418_v1, %v417_v0  ;;  %v419_v32 = vld [vmem:[%s7854_s2 + $0x160] sm:$0xff]  ;;  %v420_v5 = vld [vmem:[%s7854_s2 + $0x168] sm:$0xff]  ;;  %v422_v13 = vld [vmem:[%s7854_s2 + $0x178] sm:$0xff]  ;;  %vm5180_vm12 = vcmask 517120   ;;  %s6188_s4 = scalar_lea.vmem %s5189_s30, 32 }
  0x1d   :  { %5692 = vmatpush1.bf16.msra.mxu0 %v5691_v11  ;;  %5924 = vrot.lane.b32.xlu1 %v5923_v12, %s6216_s15  ;;  %v6482_v11 = vpack.c.bf16 %v420_v5, %v419_v32  ;;  %v421_v12 = vld [vmem:[%s7854_s2 + $0x170] sm:$0xff]  ;;  %v290_v25 = vld [vmem:[%s7854_s2 + $0x40] sm:$0xff]  ;;  %v291_v26 = vld [vmem:[%s7854_s2 + $0x48] sm:$0xff]  ;;  %p6189_p0 = scmp.ne.s32.totalorder %s5189_s30, %s6188_s4  ;;  %p6194_p2 = scmp.lt.s32.totalorder %s6188_s4, %s6188_s4 }
  0x1e   :  { %5693 = vmatprep.subr.bf16.mxu0 %v7856_v15  ;;  %v292_v39 = vld [vmem:[%s7854_s2 + $0x50] sm:$0xff] }
  0x1f   :  { %p6195_p3 = por %p6194_p2, %p6193_p1 }
  0x21   :  { %5695 = vmatpush1.bf16.msra.mxu0 %v5694_v19  ;;  %138 = vrot.lane.b32.xlu1 %v109_v20, %s6213_s22  ;;  %v6494_v19 = vpack.c.bf16 %v422_v13, %v421_v12  ;;  %v5198_v13 = vld [vmem:[%s7854_s2 + $0x280] ss:$0 sm:$0xff]  ;;  %p6196_p4 = pnand %p6195_p3, %p6189_p0 }
  0x22   :  { %5696 = vmatprep.subr.bf16.mxu0 %v7856_v15 }
  0x25   :  { %5698 = vmatpush1.bf16.msra.mxu0 %v5697_v24  ;;  %v92_v24 = vmul.f32 %v6307_v33, %v6256_v8  ;;  %v457_v8 = vmul.f32 %v6346_v49, %v6317_v37  ;;  %v93_v33 = vmul.f32 %v6328_v43, %v6317_v37  ;;  %v293_v49 = vld [vmem:[%s7854_s2 + $0x58] sm:$0xff] }
  0x26   :  { %5699 = vmatprep.subr.bf16.mxu0 %v7856_v15 }
  0x29   :  { %5701 = vmatpush1.bf16.msra.mxu0 %v5700_v27 }
  0x2a   :  { %5702 = vmatprep.subr.bf16.mxu0 %v7856_v15 }
  0x2d   :  { %5704 = vmatpush1.bf16.msra.mxu0 %v5703_v30 }
  0x2e   :  { %5705 = vmatprep.subr.bf16.mxu0 %v7856_v15 }
  0x31   :  { %5707 = vmatpush1.bf16.msra.mxu0 %v5706_v35 }
  0x32   :  { %5708 = vmatprep.subr.bf16.mxu0 %v7856_v15 }
  0x35   :  { %5710 = vmatpush1.bf16.msra.mxu0 %v5709_v40 }
  0x36   :  { %5753 = vmatprep.subr.bf16.mxu0 %v7856_v15 }
  0x76   :  { %v5900_v41 = vpop.permute.xlu0 %5899 }
  0x77   :  { %v5902_v46 = vunpack.i.h.bf16 %v5900_v41  ;;  %v5901_v47 = vunpack.i.l.bf16 %v5900_v41  ;;  %v105_v41 = vand.u32 2147483647, %v103_v28  ;;  %v5204_v28 = vld [vmem:[%s7854_s2 + $0x283] ss:$0 sm:$0xff] }
  0x79   :  { %v286_v48 = vsel %vm142_vm0, %v262_v42, %v5901_v47  ;;  %v287_v50 = vsel %vm142_vm0, %v263_v45, %v5902_v46 }
  0x7a   :  { %v5905_v51 = vpop.permute.xlu0 %5904  ;;  %v5711_v52 = vpack.c.bf16 %v287_v50, %v286_v48 }
  0x7b   :  { %v5907_v55 = vunpack.i.h.bf16 %v5905_v51  ;;  %v5906_v56 = vunpack.i.l.bf16 %v5905_v51 }
  0x7c   :  { %5712 = vmatprep.subr.bf16.mxu1 %v5711_v52 }
  0x7d   :  { %5714 = vmatpush3.bf16.msra.mxu1 %v5711_v52  ;;  %v288_v59 = vsel %vm142_vm0, %v264_v53, %v5906_v56  ;;  %v289_v60 = vsel %vm142_vm0, %v265_v54, %v5907_v55 }
  0x7e   :  { %v5715_v62 = vpack.c.bf16 %v289_v60, %v288_v59  ;;  %v6218_v60 = vmov 0.0  }
  0x80   :  { %5716 = vmatprep.subr.bf16.mxu1 %v5715_v62 }
  0x81   :  { %5718 = vmatpush3.bf16.msra.mxu1 %v5715_v62  ;;  %v5910_v6 = vpop.permute.xlu1 %5909  ;;  %v137_v7 = vpop.permute.xlu0 %136 }
  0x82   :  { %5720 = vmatprep.subr.bf16.mxu1 %v6459_v63  ;;  %v151_v10 = vsel %vm142_vm0, %v104_v2, %v137_v7  ;;  %v5912_v20 = vunpack.i.h.bf16 %v5910_v6  ;;  %v5911_v21 = vunpack.i.l.bf16 %v5910_v6 }
  0x83   :  { %5199 = vmatprep.mubr.msk.f32.mxu0 %vm145_vm1, %v151_v10 }
  0x84   :  { %5400 = vmatmul.mubr.msk.f32.vlgmr.msra.gmra.mrb[0].mxu1 %vm142_vm0, %v6317_v37  ;;  %v314_v34 = vsel %vm142_vm0, %v290_v25, %v5912_v20  ;;  %v143_v35 = vsel %vm142_vm0, %v92_v24, %v5911_v21 }
  0x85   :  { %5722 = vmatpush3.bf16.msra.mxu1 %v6459_v63  ;;  %v5920_v16 = vpop.permute.xlu0 %5919 }
  0x86   :  { %5724 = vmatprep.subr.bf16.mxu1 %v6468_v4  ;;  %v5921_v23 = vunpack.i.l.bf16 %v5920_v16  ;;  %v5922_v31 = vunpack.i.h.bf16 %v5920_v16 }
  0x87   :  { %v5915_v14 = vpop.permute.xlu1 %5914 }
  0x88   :  { %v5916_v30 = vunpack.i.l.bf16 %v5915_v14  ;;  %v315_v44 = vsel %vm142_vm0, %v291_v26, %v5921_v23  ;;  %v5917_v42 = vunpack.i.h.bf16 %v5915_v14  ;;  %v144_v50 = vsel %vm142_vm0, %v93_v33, %v5922_v31  ;;  %v5207_v23 = vld [vmem:[%s7854_s2 + $0x281] ss:$0 sm:$0xff] }
  0x89   :  { %5726 = vmatpush3.bf16.msra.mxu1 %v6468_v4  ;;  %v467_v38 = vpop.permute.xlu0 %466  ;;  %v6524_v46 = vpack.c.bf16 %v315_v44, %v314_v34 }
  0x8a   :  { %5728 = vmatprep.subr.bf16.mxu1 %v6482_v11  ;;  %v471_v47 = vsel %vm142_vm0, %v457_v8, %v467_v38  ;;  %v146_v48 = vsel %vm145_vm1, %v143_v35, %v5916_v30  ;;  %v147_v58 = vsel %vm145_vm1, %v144_v50, %v5917_v42 }
  0x8b   :  { %v465_v27 = vpop.permute.xlu1 %464 }
  0x8c   :  { %v470_v29 = vsel %vm142_vm0, %v456_v17, %v465_v27 }
  0x8d   :  { %5730 = vmatpush3.bf16.msra.mxu1 %v6482_v11  ;;  %5418 = vmatprep.mubr.msk.f32.mxu1 %vm145_vm1, %v470_v29  ;;  %v5930_v40 = vpop.permute.xlu0 %5929  ;;  %v5203_v29 = vld [vmem:[%s7854_s2 + $0x282] ss:$0 sm:$0xff] }
  0x8e   :  { %5732 = vmatprep.subr.bf16.mxu1 %v6494_v19  ;;  %v5932_v43 = vunpack.i.h.bf16 %v5930_v40  ;;  %v5931_v45 = vunpack.i.l.bf16 %v5930_v40 }
  0x8f   :  { %v5925_v36 = vpop.permute.xlu1 %5924 }
  0x90   :  { %v5926_v37 = vunpack.i.l.bf16 %v5925_v36  ;;  %v5927_v51 = vunpack.i.h.bf16 %v5925_v36  ;;  %v317_v52 = vsel %vm142_vm0, %v293_v49, %v5932_v43  ;;  %v316_v53 = vsel %vm142_vm0, %v292_v39, %v5931_v45 }
  0x91   :  { %5734 = vmatpush3.bf16.msra.mxu1 %v6494_v19  ;;  %v6534_v56 = vpack.c.bf16 %v317_v52, %v316_v53  ;;  %v6597_v52 = vand.u32 127, %v30_v3 }
  0x92   :  { %5735 = vmatprep.subr.bf16.mxu1 %v7856_v15  ;;  %v149_v54 = vsel %vm148_vm2, %v146_v48, %v5926_v37  ;;  %v150_v59 = vsel %vm148_vm2, %v147_v58, %v5927_v51 }
  0x93   :  { %252 = vmatmul.mubr.f32.vlgmr.msra.gmra.mrb[0].mxu0 %v149_v54  ;;  %v139_v55 = vpop.permute.xlu1 %138  ;;  %v6601_v53 = vsub.s32 %v6597_v52, %v6259_v9 }
  0x94   :  { %5419 = vmatmul.mubr.msk.f32.vlgmr.msra.gmra.mrb[2].mxu1 %vm145_vm1, %v471_v47  ;;  %5755 = vmatpush3.bf16.msra.mxu0 %v6524_v46  ;;  %v152_v57 = vsel %vm142_vm0, %v105_v41, %v139_v55 }
  0x95   :  { %5737 = vmatpush3.bf16.msra.mxu1 %v6524_v46  ;;  %5200 = vmatprep.mubr.msk.f32.mxu0 %vm145_vm1, %v152_v57 }
  0x96   :  { %5738 = vmatprep.subr.bf16.mxu1 %v7856_v15  ;;  %5756 = vmatprep.subr.bf16.mxu0 %v7856_v15 }
  0x97   :  { %5429 = vmatprep.mubr.msk.f32.mxu1 %vm6217_vm3, %v6218_v60  ;;  %257 = vmatmul.mubr.f32.gmra.mrb[2].mxu0 %v150_v59 }
  0x98   :  { %5758 = vmatpush3.bf16.msra.mxu0 %v6534_v56  ;;  %5462 = vmatprep.mubr.msk.f32.mxu0 %vm6217_vm3, %v6218_v60 }
  0x99   :  { %5740 = vmatpush3.bf16.msra.mxu1 %v6534_v56  ;;  %5765 = vmatprep.subr.bf16.mxu0 %v7856_v15 }
  0x9a   :  { %5741 = vmatprep.subr.bf16.mxu1 %v7856_v15 }
  0x9c   :  { %5430 = vmatmul.mubr.f32.vlgmr.msra.gmra.mrb[4].mxu1 %v6218_v60 }
  0x9d   :  { %5743 = vmatpush3.bf16.msra.mxu1 %v6524_v46  ;;  %5440 = vmatprep.mubr.msk.f32.mxu1 %vm6217_vm3, %v6218_v60 }
  0x9e   :  { %5744 = vmatprep.subr.bf16.mxu1 %v7856_v15 }
  0xa1   :  { %5746 = vmatpush3.bf16.msra.mxu1 %v6534_v56 }
  0xa2   :  { %5747 = vmatprep.subr.bf16.mxu1 %v7856_v15 }
 0x157   :  { %v6559_v61 = vpop.f32.mrb[0].mxu1 }
 0x158   :  { %v6561_v62 = vpop.f32.mrb[1].mxu1  ;;  %v6591_v8 = vadd.f32 %v6559_v61, %v5203_v29 }
 0x159   :  { %v6587_v30 = vadd.f32 %v5203_v29, %v6561_v62 }
 0x166   :  { %v253_v0 = vpop.f32.mrb[0].mxu0 }
 0x167   :  { %v5420_v1 = vpop.f32.mrb[2].mxu1  ;;  %v255_v2 = vpop.f32.mrb[1].mxu0  ;;  %v6570_v16 = vadd.f32 %v5198_v13, %v253_v0 }
 0x168   :  { %v544_v32 = vpop.f32.mrb[3].mxu1 }
 0x169   :  { %v553_v20 = vadd.f32 %v544_v32, %v6570_v16 }
 0x16a   :  { %v258_v5 = vpop.f32.mrb[2].mxu0 }
 0x16b   :  { %v260_v6 = vpop.f32.mrb[3].mxu0  ;;  %v6568_v14 = vadd.f32 %v5198_v13, %v258_v5  ;;  %v6219_v5 = vmov 0  }
 0x16c   :  { %5933 = vset.pattern.permute.xlu0 %v6219_v5  ;;  %5934 = vset.pattern.permute.xlu1 %v6219_v5 }
 0x16d   :  { %v554_v17 = vadd.f32 %v5420_v1, %v6568_v14 }
 0x16f   :  { %v676_v7 = vpop.f32.mrb[4].mxu1  ;;  %5975 = vtanh.f32 %v554_v17 }
 0x170   :  { %v681_v10 = vrot.slane %v676_v7, 1  ;;  %698 = vrot.lane.b32.xlu1 %v676_v7, %s6216_s15  ;;  %v5431_v12 = vpop.f32.mrb[5].mxu1  ;;  %5977 = vtanh.f32 %v553_v20  ;;  %v684_v31 = vadd.f32 %v676_v7, %v6587_v30 }
 0x172   :  { %700 = vrot.lane.b32.xlu0 %v681_v10, %s6216_s15  ;;  %v685_v33 = vadd.f32 %v681_v10, %v6591_v8  ;;  %v5208_v34 = vmul.f32 -1.442695, %v684_v31 }
 0x174   :  { %5979 = vpow2.f32 %v5208_v34  ;;  %v5209_v44 = vmul.f32 -1.442695, %v685_v33 }
 0x176   :  { %5981 = vpow2.f32 %v5209_v44 }
 0x179   :  { %v5976_v21 = vpop.eup %5975 }
 0x17a   :  { %v5978_v24 = vpop.eup %5977  ;;  %v562_v25 = vmul.f32 %v5976_v21, %v5207_v23  ;;  %v6619_v21 = vsub.s32 1, %v6259_v9 }
 0x17b   :  { %v561_v26 = vmul.f32 %v5978_v24, %v5207_v23 }
 0x17c   :  { %v566_v27 = vsel %vm142_vm0, %v562_v25, 0.0 }
 0x17d   :  { %v563_v38 = vsel %vm142_vm0, %v561_v26, 0.0 }
 0x17e   :  { %v5980_v35 = vpop.eup %5979 }
 0x17f   :  { %v692_v36 = vadd.f32 1.0, %v5980_v35 }
 0x180   :  { %v5982_v39 = vpop.eup %5981 }
 0x181   :  { %v693_v49 = vadd.f32 1.0, %v5982_v39  ;;  %5983 = vrcp.f32 %v692_v36 }
 0x183   :  { %5985 = vrcp.f32 %v693_v49 }
 0x18b   :  { %v5984_v40 = vpop.eup %5983 }
 0x18d   :  { %v5986_v43 = vpop.eup %5985 }
 0x191   :  { %567 = vadd.xlane.f32.xlu0 %v566_v27 }
 0x194   :  { %564 = vadd.xlane.f32.xlu1 %v563_v38 }
 0x1a7   :  { %410 = vrot.lane.b32.xlu0 %v5204_v28, %s6213_s22 }
 0x1e2   :  { %v699_v41 = vpop.permute.xlu1 %698 }
 0x1e3   :  { %v704_v42 = vmul.f32 %v5984_v40, %v699_v41 }
 0x1e4   :  { %v701_v37 = vpop.permute.xlu0 %700 }
 0x1e5   :  { %708 = vrot.lane.b32.xlu1 %v704_v42, %s6213_s22  ;;  %v705_v45 = vmul.f32 %v5986_v43, %v701_v37 }
 0x1e9   :  { %710 = vrot.lane.b32.xlu1 %v705_v45, %s6213_s22 }
 0x21e   :  { %v568_v47 = vpop.xlane.xlu0 %567 }
 0x21f   :  { %v571_v48 = vmul.f32 1.442695, %v568_v47 }
 0x221   :  { %v565_v50 = vpop.xlane.xlu1 %564  ;;  %5987 = vpow2.f32 %v571_v48 }
 0x222   :  { %v569_v51 = vmul.f32 1.442695, %v565_v50  ;;  %v411_v1 = vpop.permute.xlu0 %410 }
 0x223   :  { %v6608_v3 = vadd.f32 %v411_v1, %v6561_v62  ;;  %v6612_v7 = vadd.f32 %v6559_v61, %v411_v1 }
 0x224   :  { %5989 = vpow2.f32 %v569_v51 }
 0x22b   :  { %v5988_v54 = vpop.eup %5987 }
 0x22c   :  { %v584_v58 = vrot.slane %v5988_v54, %v6601_v53 }
 0x22e   :  { %v5990_v55 = vpop.eup %5989 }
 0x22f   :  { %v580_v57 = vrot.slane %v5990_v55, %v6601_v53 }
 0x231   :  { %v586_v59 = vsel %vm585_vm4, %v584_v58, %v580_v57 }
 0x232   :  { %v589_v0 = vsel %vm588_vm5, %v586_v59, 0.0 }
 0x233   :  { %590 = vadd.xlane.f32.xlu0 %v589_v0 }
 0x257   :  { %v709_v2 = vpop.permute.xlu1 %708 }
 0x258   :  { %v714_v32 = vadd.f32 %v709_v2, %v6608_v3 }
 0x25a   :  { %5991 = vtanh.f32 %v714_v32 }
 0x25b   :  { %v711_v6 = vpop.permute.xlu1 %710 }
 0x25c   :  { %v715_v12 = vadd.f32 %v711_v6, %v6612_v7 }
 0x25e   :  { %5993 = vtanh.f32 %v715_v12 }
 0x264   :  { %v5992_v10 = vpop.eup %5991 }
 0x265   :  { %v731_v13 = vrot.slane %v5992_v10, %v6291_v22 }
 0x267   :  { %734 = vbcast.lane.b32.xlu1 %v731_v13, 288 }
 0x268   :  { %v5994_v62 = vpop.eup %5993 }
 0x269   :  { %v751_v17 = vrot.slane %v5994_v62, %v6291_v22 }
 0x26b   :  { %738 = vbcast.lane.b32.xlu1 %v731_v13, 296 }
 0x26f   :  { %742 = vbcast.lane.b32.xlu1 %v731_v13, 304 }
 0x273   :  { %746 = vbcast.lane.b32.xlu1 %v731_v13, 312 }
 0x277   :  { %754 = vbcast.lane.b32.xlu1 %v751_v17, 288 }
 0x27b   :  { %758 = vbcast.lane.b32.xlu1 %v751_v17, 296 }
 0x27f   :  { %762 = vbcast.lane.b32.xlu1 %v751_v17, 304 }
 0x283   :  { %766 = vbcast.lane.b32.xlu1 %v751_v17, 312 }
 0x2c0   :  { %v591_v20 = vpop.xlane.xlu0 %590 }
 0x2c1   :  { %v596_v61 = vrot.slane %v591_v20, %v6291_v22  ;;  %v600_v24 = vrot.slane %v591_v20, %v6619_v21 }
 0x2c3   :  { %5995 = vrcp.f32 %v596_v61 }
 0x2c4   :  { %5997 = vrcp.f32 %v600_v24 }
 0x2cd   :  { %v5996_v23 = vpop.eup %5995 }
 0x2ce   :  { %v6622_v25 = vmul.f32 %v5996_v23, %v5990_v55  ;;  %v5998_v33 = vpop.eup %5997 }
 0x2cf   :  { %v6638_v36 = vmul.f32 %v5998_v33, %v5988_v54 }
 0x2d0   :  { %v6625_v26 = vsub.f32 1.0, %v6622_v25  ;;  %v721_v38 = vrot.slane %v6622_v25, %v6291_v22 }
 0x2d1   :  { %v6647_v37 = vsub.f32 1.0, %v6638_v36  ;;  %v725_v54 = vrot.slane %v6638_v36, %v6291_v22 }
 0x2d2   :  { %v789_v27 = vrot.slane %v6625_v26, %v6291_v22  ;;  %v1060_v44 = vrot.slane %v6625_v26, %v6619_v21 }
 0x2d3   :  { %v793_v50 = vrot.slane %v6647_v37, %v6291_v22  ;;  %v1064_v2 = vrot.slane %v6647_v37, %v6619_v21 }
 0x2d4   :  { %v794_v31 = vmul.f32 0.0, %v789_v27 }
 0x2d5   :  { %v795_v59 = vmul.f32 0.0, %v793_v50 }
 0x2d9   :  { %v6631_v28 = vpop.permute.xlu1 %734 }
 0x2da   :  { %v776_v29 = vmul.f32 %v6631_v28, %v721_v38 }
 0x2dc   :  { %v796_v34 = vadd.f32 %v794_v31, %v776_v29 }
 0x2dd   :  { %v6636_v35 = vpop.permute.xlu1 %738 }
 0x2de   :  { %v777_v39 = vmul.f32 %v6636_v35, %v721_v38  ;;  %813 = vperm.xlu0 %5933, %v796_v34   ;;  %v6641_v49 = vmul.f32 %v1060_v44, %v796_v34  ;;  %v840_v34 = vadd.s32 4294967288, %v6597_v52 }
 0x2e0   :  { %v797_v40 = vadd.f32 %v794_v31, %v777_v39  ;;  %v854_v39 = vadd.s32 4294967272, %v6597_v52 }
 0x2e1   :  { %v6643_v41 = vpop.permute.xlu1 %742 }
 0x2e2   :  { %v778_v42 = vmul.f32 %v6643_v41, %v721_v38  ;;  %816 = vperm.xlu1 %5934, %v797_v40   ;;  %v6649_v43 = vmul.f32 %v1060_v44, %v797_v40 }
 0x2e4   :  { %v798_v45 = vadd.f32 %v794_v31, %v778_v42  ;;  %v6688_v42 = vsub.s32 %v840_v34, %v6259_v9 }
 0x2e5   :  { %v6651_v47 = vpop.permute.xlu1 %746 }
 0x2e6   :  { %v779_v48 = vmul.f32 %v6651_v47, %v721_v38  ;;  %819 = vperm.xlu1 %5934, %v798_v45   ;;  %v6656_v51 = vmul.f32 %v1060_v44, %v798_v45 }
 0x2e8   :  { %v799_v55 = vadd.f32 %v794_v31, %v779_v48  ;;  %v6694_v48 = vsub.s32 %v854_v39, %v6259_v9 }
 0x2e9   :  { %v6660_v57 = vpop.permute.xlu1 %754 }
 0x2ea   :  { %v780_v58 = vmul.f32 %v6660_v57, %v725_v54  ;;  %822 = vperm.xlu1 %5934, %v799_v55   ;;  %v6663_v0 = vmul.f32 %v1060_v44, %v799_v55  ;;  %v847_v44 = vadd.s32 4294967280, %v6597_v52 }
 0x2ec   :  { %v800_v1 = vadd.f32 %v795_v59, %v780_v58  ;;  %v6691_v45 = vsub.s32 %v847_v44, %v6259_v9 }
 0x2ed   :  { %v6667_v32 = vpop.permute.xlu1 %758 }
 0x2ee   :  { %v781_v5 = vmul.f32 %v6667_v32, %v725_v54  ;;  %825 = vperm.xlu1 %5934, %v800_v1   ;;  %v6670_v6 = vmul.f32 %v1064_v2, %v800_v1 }
 0x2f0   :  { %v801_v10 = vadd.f32 %v795_v59, %v781_v5 }
 0x2f1   :  { %v6672_v12 = vpop.permute.xlu1 %762 }
 0x2f2   :  { %v782_v13 = vmul.f32 %v6672_v12, %v725_v54  ;;  %828 = vperm.xlu1 %5934, %v801_v10   ;;  %v6675_v62 = vmul.f32 %v1064_v2, %v801_v10 }
 0x2f4   :  { %v802_v17 = vadd.f32 %v795_v59, %v782_v13 }
 0x2f5   :  { %v6677_v20 = vpop.permute.xlu1 %766 }
 0x2f6   :  { %v783_v61 = vmul.f32 %v6677_v20, %v725_v54  ;;  %831 = vperm.xlu1 %5934, %v802_v17   ;;  %v6680_v23 = vmul.f32 %v1064_v2, %v802_v17 }
 0x2f8   :  { %v803_v24 = vadd.f32 %v795_v59, %v783_v61 }
 0x2fa   :  { %834 = vperm.xlu1 %5934, %v803_v24   ;;  %v6682_v27 = vmul.f32 %v1064_v2, %v803_v24 }
 0x35d   :  { %v814_v50 = vpop.permute.xlu0 %813 }
 0x35e   :  { %v839_v2 = vrot.slane %v814_v50, %v6601_v53 }
 0x361   :  { %v817_v38 = vpop.permute.xlu1 %816 }
 0x362   :  { %v844_v55 = vrot.slane %v817_v38, %v6688_v42 }
 0x364   :  { %v846_v17 = vsel %vm845_vm6, %v844_v55, %v839_v2 }
 0x365   :  { %v820_v29 = vpop.permute.xlu1 %819 }
 0x366   :  { %v851_v59 = vrot.slane %v820_v29, %v6691_v45 }
 0x368   :  { %v853_v38 = vsel %vm852_vm7, %v851_v59, %v846_v17 }
 0x369   :  { %v823_v31 = vpop.permute.xlu1 %822 }
 0x36a   :  { %v858_v5 = vrot.slane %v823_v31, %v6694_v48 }
 0x36c   :  { %v860_v34 = vsel %vm859_vm8, %v858_v5, %v853_v38 }
 0x36d   :  { %v826_v33 = vpop.permute.xlu1 %825 }
 0x36e   :  { %v864_v10 = vrot.slane %v826_v33, %v6601_v53 }
 0x371   :  { %v829_v40 = vpop.permute.xlu1 %828 }
 0x372   :  { %v868_v58 = vrot.slane %v829_v40, %v6688_v42 }
 0x374   :  { %v869_v61 = vsel %vm845_vm6, %v868_v58, %v864_v10 }
 0x375   :  { %v832_v54 = vpop.permute.xlu1 %831 }
 0x376   :  { %v873_v1 = vrot.slane %v832_v54, %v6691_v45 }
 0x378   :  { %v874_v29 = vsel %vm852_vm7, %v873_v1, %v869_v61 }
 0x379   :  { %v835_v13 = vpop.permute.xlu1 %834 }
 0x37a   :  { %v878_v24 = vrot.slane %v835_v13, %v6694_v48 }
 0x37c   :  { %v879_v44 = vsel %vm859_vm8, %v878_v24, %v874_v29 }
 0x37d   :  { %v880_v31 = vsel %vm585_vm4, %v879_v44, %v860_v34 }
 0x37e   :  { %5441 = vmatmul.mubr.msk.f32.vlgmr.msra.gmra.mrb[6].mxu1 %vm142_vm0, %v880_v31 }
 0x37f   :  { %5749 = vmatpush3.bf16.msra.mxu1 %v6524_v46  ;;  %5451 = vmatprep.mubr.msk.f32.mxu1 %vm6217_vm3, %v6218_v60 }
 0x380   :  { %5750 = vmatprep.subr.bf16.mxu1 %v7856_v15 }
 0x383   :  { %5752 = vmatpush3.bf16.msra.mxu1 %v6534_v56 }
 0x384   :  { %5759 = vmatprep.subr.bf16.mxu1 %v7856_v15 }
 0x451   :  { %v949_v33 = vpop.f32.mrb[6].mxu1 }
 0x452   :  { %v954_v39 = vrot.slane %v949_v33, 7  ;;  %v5442_v40 = vpop.f32.mrb[7].mxu1  ;;  %v958_v54 = vadd.f32 %v949_v33, %v6591_v8 }
 0x454   :  { %971 = vrot.lane.b32.xlu1 %v954_v39, %s6216_s15  ;;  %v957_v50 = vadd.f32 %v954_v39, %v6587_v30  ;;  %v5212_v58 = vmul.f32 -1.442695, %v958_v54  ;;  %v998_v54 = vrot.slane %v6638_v36, %v6619_v21 }
 0x456   :  { %v5211_v55 = vmul.f32 -1.442695, %v957_v50 }
 0x458   :  { %973 = vrot.lane.b32.xlu1 %v949_v33, %s6216_s15  ;;  %5999 = vpow2.f32 %v5211_v55 }
 0x459   :  { %6001 = vpow2.f32 %v5212_v58 }
 0x462   :  { %v6000_v59 = vpop.eup %5999 }
 0x463   :  { %v965_v1 = vadd.f32 1.0, %v6000_v59  ;;  %v6002_v2 = vpop.eup %6001 }
 0x464   :  { %v966_v5 = vadd.f32 1.0, %v6002_v2  ;;  %v6731_v2 = vsub.s32 2, %v6259_v9 }
 0x465   :  { %6003 = vrcp.f32 %v965_v1 }
 0x466   :  { %6005 = vrcp.f32 %v966_v5 }
 0x46f   :  { %v6004_v10 = vpop.eup %6003 }
 0x470   :  { %v6006_v61 = vpop.eup %6005 }
 0x4c6   :  { %v972_v13 = vpop.permute.xlu1 %971 }
 0x4c7   :  { %v977_v17 = vmul.f32 %v6004_v10, %v972_v13  ;;  %v994_v13 = vrot.slane %v6622_v25, %v6619_v21 }
 0x4c9   :  { %981 = vrot.lane.b32.xlu1 %v977_v17, %s6213_s22  ;;  %v1336_v17 = vrot.slane %v6647_v37, %v6731_v2 }
 0x4ca   :  { %v974_v24 = vpop.permute.xlu1 %973 }
 0x4cb   :  { %v978_v38 = vmul.f32 %v6006_v61, %v974_v24 }
 0x4cd   :  { %983 = vrot.lane.b32.xlu1 %v978_v38, %s6213_s22 }
 0x53b   :  { %v982_v29 = vpop.permute.xlu1 %981 }
 0x53c   :  { %v987_v44 = vadd.f32 %v982_v29, %v6608_v3 }
 0x53f   :  { %v984_v34 = vpop.permute.xlu1 %983 }
 0x540   :  { %v988_v31 = vadd.f32 %v984_v34, %v6612_v7 }
 0x542   :  { %6007 = vtanh.f32 %v988_v31  ;;  %v1332_v31 = vrot.slane %v6625_v26, %v6731_v2 }
 0x543   :  { %6009 = vtanh.f32 %v987_v44 }
 0x54c   :  { %v6008_v33 = vpop.eup %6007 }
 0x54d   :  { %v1024_v39 = vrot.slane %v6008_v33, %v6619_v21  ;;  %v6010_v40 = vpop.eup %6009 }
 0x54e   :  { %v1004_v50 = vrot.slane %v6010_v40, %v6619_v21 }
 0x54f   :  { %1031 = vbcast.lane.b32.xlu1 %v1024_v39, 296  ;;  %1027 = vbcast.lane.b32.xlu0 %v1024_v39, 288 }
 0x553   :  { %1035 = vbcast.lane.b32.xlu1 %v1024_v39, 304  ;;  %1007 = vbcast.lane.b32.xlu0 %v1004_v50, 288 }
 0x557   :  { %1011 = vbcast.lane.b32.xlu1 %v1004_v50, 296  ;;  %1015 = vbcast.lane.b32.xlu0 %v1004_v50, 304 }
 0x55b   :  { %1039 = vbcast.lane.b32.xlu1 %v1024_v39, 312  ;;  %1019 = vbcast.lane.b32.xlu0 %v1004_v50, 312 }
 0x5c1   :  { %v1032_v55 = vpop.permute.xlu1 %1031  ;;  %v1028_v58 = vpop.permute.xlu0 %1027 }
 0x5c2   :  { %v1054_v59 = vmul.f32 %v1032_v55, %v998_v54  ;;  %v1053_v1 = vmul.f32 %v1028_v58, %v998_v54 }
 0x5c4   :  { %v1078_v5 = vadd.f32 %v6675_v62, %v1054_v59  ;;  %v1077_v10 = vadd.f32 %v6670_v6, %v1053_v1 }
 0x5c5   :  { %v1036_v61 = vpop.permute.xlu1 %1035  ;;  %v1008_v24 = vpop.permute.xlu0 %1007 }
 0x5c6   :  { %v1055_v38 = vmul.f32 %v1036_v61, %v998_v54  ;;  %v1049_v29 = vmul.f32 %v1008_v24, %v994_v13  ;;  %1105 = vperm.xlu1 %5934, %v1078_v5   ;;  %1102 = vperm.xlu0 %5933, %v1077_v10   ;;  %v6739_v34 = vmul.f32 %v1336_v17, %v1078_v5 }
 0x5c7   :  { %v6741_v44 = vmul.f32 %v1336_v17, %v1077_v10 }
 0x5c8   :  { %v1079_v62 = vadd.f32 %v6680_v23, %v1055_v38  ;;  %v1073_v6 = vadd.f32 %v6641_v49, %v1049_v29 }
 0x5c9   :  { %v1012_v33 = vpop.permute.xlu1 %1011  ;;  %v1016_v39 = vpop.permute.xlu0 %1015 }
 0x5ca   :  { %v1050_v40 = vmul.f32 %v1012_v33, %v994_v13  ;;  %v1051_v50 = vmul.f32 %v1016_v39, %v994_v13  ;;  %1108 = vperm.xlu1 %5934, %v1079_v62   ;;  %1090 = vperm.xlu0 %5933, %v1073_v6   ;;  %v6747_v55 = vmul.f32 %v1332_v31, %v1073_v6 }
 0x5cb   :  { %v6749_v58 = vmul.f32 %v1336_v17, %v1079_v62 }
 0x5cc   :  { %v1074_v59 = vadd.f32 %v6649_v43, %v1050_v40  ;;  %v1075_v1 = vadd.f32 %v6656_v51, %v1051_v50 }
 0x5cd   :  { %v1040_v23 = vpop.permute.xlu1 %1039  ;;  %v1020_v5 = vpop.permute.xlu0 %1019 }
 0x5ce   :  { %v1056_v49 = vmul.f32 %v1040_v23, %v998_v54  ;;  %v1052_v10 = vmul.f32 %v1020_v5, %v994_v13  ;;  %1093 = vperm.xlu1 %5934, %v1074_v59   ;;  %1096 = vperm.xlu0 %5933, %v1075_v1   ;;  %v6753_v61 = vmul.f32 %v1332_v31, %v1074_v59 }
 0x5cf   :  { %v6755_v24 = vmul.f32 %v1332_v31, %v1075_v1 }
 0x5d0   :  { %v1080_v38 = vadd.f32 %v6682_v27, %v1056_v49  ;;  %v1076_v29 = vadd.f32 %v6663_v0, %v1052_v10 }
 0x5d2   :  { %1111 = vperm.xlu1 %5934, %v1080_v38   ;;  %1099 = vperm.xlu0 %5933, %v1076_v29   ;;  %v6759_v62 = vmul.f32 %v1336_v17, %v1080_v38  ;;  %v6761_v43 = vmul.f32 %v1332_v31, %v1076_v29 }
 0x645   :  { %v1106_v51 = vpop.permute.xlu1 %1105  ;;  %v1103_v6 = vpop.permute.xlu0 %1102 }
 0x646   :  { %v1139_v40 = vrot.slane %v1106_v51, %v6688_v42  ;;  %v1135_v50 = vrot.slane %v1103_v6, %v6601_v53 }
 0x648   :  { %v1140_v5 = vsel %vm845_vm6, %v1139_v40, %v1135_v50 }
 0x649   :  { %v1109_v54 = vpop.permute.xlu1 %1108  ;;  %v1091_v13 = vpop.permute.xlu0 %1090 }
 0x64a   :  { %v1116_v27 = vrot.slane %v1091_v13, %v6601_v53  ;;  %v1144_v59 = vrot.slane %v1109_v54, %v6691_v45 }
 0x64c   :  { %v1145_v38 = vsel %vm852_vm7, %v1144_v59, %v1140_v5 }
 0x64d   :  { %v1094_v33 = vpop.permute.xlu1 %1093  ;;  %v1097_v39 = vpop.permute.xlu0 %1096 }
 0x64e   :  { %v1120_v0 = vrot.slane %v1094_v33, %v6688_v42  ;;  %v1125_v17 = vrot.slane %v1097_v39, %v6691_v45 }
 0x650   :  { %v1121_v31 = vsel %vm845_vm6, %v1120_v0, %v1116_v27 }
 0x651   :  { %v1112_v1 = vpop.permute.xlu1 %1111  ;;  %v1100_v23 = vpop.permute.xlu0 %1099  ;;  %v1126_v29 = vsel %vm852_vm7, %v1125_v17, %v1121_v31 }
 0x652   :  { %v1149_v49 = vrot.slane %v1112_v1, %v6694_v48  ;;  %v1130_v10 = vrot.slane %v1100_v23, %v6694_v48 }
 0x654   :  { %v1150_v51 = vsel %vm859_vm8, %v1149_v49, %v1145_v38  ;;  %v1131_v6 = vsel %vm859_vm8, %v1130_v10, %v1126_v29 }
 0x655   :  { %v1151_v54 = vsel %vm585_vm4, %v1150_v51, %v1131_v6 }
 0x656   :  { %5452 = vmatmul.mubr.msk.f32.vlgmr.msra.gmra.mrb[8].mxu1 %vm142_vm0, %v1151_v54 }
 0x657   :  { %5761 = vmatpush3.bf16.msra.mxu1 %v6524_v46  ;;  %5473 = vmatprep.mubr.msk.f32.mxu1 %vm6217_vm3, %v6218_v60 }
 0x658   :  { %5762 = vmatprep.subr.bf16.mxu1 %v7856_v15 }
 0x65b   :  { %5764 = vmatpush3.bf16.msra.mxu1 %v6534_v56 }
 0x65c   :  { %5771 = vmatprep.subr.bf16.mxu1 %v7856_v15 }
 0x729   :  { %v1220_v13 = vpop.f32.mrb[8].mxu1 }
 0x72a   :  { %v1225_v33 = vrot.slane %v1220_v13, 6  ;;  %v1226_v39 = vrot.slane %v1220_v13, 7  ;;  %v5453_v40 = vpop.f32.mrb[9].mxu1 }
 0x72c   :  { %1245 = vrot.lane.b32.xlu1 %v1226_v39, %s6216_s15  ;;  %1243 = vrot.lane.b32.xlu0 %v1225_v33, %s6216_s15  ;;  %v1229_v50 = vadd.f32 %v1225_v33, %v6587_v30  ;;  %v1230_v27 = vadd.f32 %v1226_v39, %v6591_v8 }
 0x72e   :  { %v5214_v0 = vmul.f32 -1.442695, %v1229_v50  ;;  %v5215_v59 = vmul.f32 -1.442695, %v1230_v27 }
 0x730   :  { %6011 = vpow2.f32 %v5214_v0  ;;  %v1266_v0 = vrot.slane %v6622_v25, %v6731_v2 }
 0x731   :  { %6013 = vpow2.f32 %v5215_v59 }
 0x73a   :  { %v6012_v17 = vpop.eup %6011 }
 0x73b   :  { %v6014_v31 = vpop.eup %6013  ;;  %v1237_v1 = vadd.f32 1.0, %v6012_v17 }
 0x73c   :  { %v1238_v23 = vadd.f32 1.0, %v6014_v31 }
 0x73d   :  { %6015 = vrcp.f32 %v1237_v1 }
 0x73e   :  { %6017 = vrcp.f32 %v1238_v23  ;;  %v6798_v23 = vsub.s32 3, %v6259_v9 }
 0x747   :  { %v6016_v5 = vpop.eup %6015 }
 0x748   :  { %v6018_v49 = vpop.eup %6017 }
 0x79e   :  { %v1246_v10 = vpop.permute.xlu1 %1245  ;;  %v1244_v38 = vpop.permute.xlu0 %1243 }
 0x79f   :  { %v1250_v29 = vmul.f32 %v6018_v49, %v1246_v10  ;;  %v1249_v51 = vmul.f32 %v6016_v5, %v1244_v38  ;;  %v1270_v10 = vrot.slane %v6638_v36, %v6731_v2  ;;  %v1604_v38 = vrot.slane %v6625_v26, %v6798_v23 }
 0x7a1   :  { %1255 = vrot.lane.b32.xlu1 %v1250_v29, %s6213_s22  ;;  %1253 = vrot.lane.b32.xlu0 %v1249_v51, %s6213_s22 }
 0x813   :  { %v1256_v6 = vpop.permute.xlu1 %1255  ;;  %v1254_v54 = vpop.permute.xlu0 %1253 }
 0x814   :  { %v1259_v13 = vadd.f32 %v1254_v54, %v6608_v3  ;;  %v1260_v33 = vadd.f32 %v1256_v6, %v6612_v7 }
 0x816   :  { %6019 = vtanh.f32 %v1259_v13 }
 0x817   :  { %6021 = vtanh.f32 %v1260_v33 }
 0x820   :  { %v6020_v39 = vpop.eup %6019 }
 0x821   :  { %v1276_v40 = vrot.slane %v6020_v39, %v6731_v2  ;;  %v6022_v50 = vpop.eup %6021  ;;  %v1608_v39 = vrot.slane %v6647_v37, %v6798_v23 }
 0x822   :  { %v1296_v27 = vrot.slane %v6022_v50, %v6731_v2 }
 0x823   :  { %1283 = vbcast.lane.b32.xlu1 %v1276_v40, 296  ;;  %1279 = vbcast.lane.b32.xlu0 %v1276_v40, 288 }
 0x827   :  { %1303 = vbcast.lane.b32.xlu1 %v1296_v27, 296  ;;  %1299 = vbcast.lane.b32.xlu0 %v1296_v27, 288 }
 0x82b   :  { %1307 = vbcast.lane.b32.xlu1 %v1296_v27, 304  ;;  %1287 = vbcast.lane.b32.xlu0 %v1276_v40, 304 }
 0x82f   :  { %1311 = vbcast.lane.b32.xlu1 %v1296_v27, 312  ;;  %1291 = vbcast.lane.b32.xlu0 %v1276_v40, 312 }
 0x895   :  { %v1284_v59 = vpop.permute.xlu1 %1283  ;;  %v1280_v17 = vpop.permute.xlu0 %1279 }
 0x896   :  { %v1322_v31 = vmul.f32 %v1284_v59, %v1266_v0  ;;  %v1321_v1 = vmul.f32 %v1280_v17, %v1266_v0 }
 0x898   :  { %v1346_v5 = vadd.f32 %v6753_v61, %v1322_v31  ;;  %v1345_v49 = vadd.f32 %v6747_v55, %v1321_v1 }
 0x899   :  { %v1304_v29 = vpop.permute.xlu1 %1303  ;;  %v1300_v51 = vpop.permute.xlu0 %1299 }
 0x89a   :  { %v1326_v6 = vmul.f32 %v1304_v29, %v1270_v10  ;;  %v1325_v54 = vmul.f32 %v1300_v51, %v1270_v10  ;;  %1365 = vperm.xlu1 %5934, %v1346_v5   ;;  %1362 = vperm.xlu0 %5933, %v1345_v49   ;;  %v6806_v13 = vmul.f32 %v1604_v38, %v1346_v5 }
 0x89b   :  { %v6808_v33 = vmul.f32 %v1604_v38, %v1345_v49 }
 0x89c   :  { %v1350_v61 = vadd.f32 %v6739_v34, %v1326_v6  ;;  %v1349_v55 = vadd.f32 %v6741_v44, %v1325_v54 }
 0x89d   :  { %v1308_v40 = vpop.permute.xlu1 %1307  ;;  %v1288_v50 = vpop.permute.xlu0 %1287 }
 0x89e   :  { %v1327_v27 = vmul.f32 %v1308_v40, %v1270_v10  ;;  %v1323_v59 = vmul.f32 %v1288_v50, %v1266_v0  ;;  %1377 = vperm.xlu1 %5934, %v1350_v61   ;;  %1374 = vperm.xlu0 %5933, %v1349_v55   ;;  %v6814_v17 = vmul.f32 %v1608_v39, %v1350_v61 }
 0x89f   :  { %v6816_v31 = vmul.f32 %v1608_v39, %v1349_v55 }
 0x8a0   :  { %v1351_v1 = vadd.f32 %v6749_v58, %v1327_v27  ;;  %v1347_v5 = vadd.f32 %v6755_v24, %v1323_v59 }
 0x8a1   :  { %v1312_v34 = vpop.permute.xlu1 %1311  ;;  %v1292_v49 = vpop.permute.xlu0 %1291 }
 0x8a2   :  { %v1328_v44 = vmul.f32 %v1312_v34, %v1270_v10  ;;  %v1324_v29 = vmul.f32 %v1292_v49, %v1266_v0  ;;  %1380 = vperm.xlu1 %5934, %v1351_v1   ;;  %1368 = vperm.xlu0 %5933, %v1347_v5   ;;  %v6820_v51 = vmul.f32 %v1608_v39, %v1351_v1 }
 0x8a3   :  { %v6822_v6 = vmul.f32 %v1604_v38, %v1347_v5 }
 0x8a4   :  { %v1352_v54 = vadd.f32 %v6759_v62, %v1328_v44  ;;  %v1348_v61 = vadd.f32 %v6761_v43, %v1324_v29 }
 0x8a6   :  { %1383 = vperm.xlu1 %5934, %v1352_v54   ;;  %1371 = vperm.xlu0 %5933, %v1348_v61   ;;  %v6826_v55 = vmul.f32 %v1608_v39, %v1352_v54  ;;  %v6828_v58 = vmul.f32 %v1604_v38, %v1348_v61 }
 0x919   :  { %v1366_v24 = vpop.permute.xlu1 %1365  ;;  %v1363_v40 = vpop.permute.xlu0 %1362 }
 0x91a   :  { %v1392_v59 = vrot.slane %v1366_v24, %v6688_v42  ;;  %v1388_v1 = vrot.slane %v1363_v40, %v6601_v53 }
 0x91c   :  { %v1393_v49 = vsel %vm845_vm6, %v1392_v59, %v1388_v1 }
 0x91d   :  { %v1378_v10 = vpop.permute.xlu1 %1377  ;;  %v1375_v0 = vpop.permute.xlu0 %1374 }
 0x91e   :  { %v1411_v62 = vrot.slane %v1378_v10, %v6688_v42  ;;  %v1407_v43 = vrot.slane %v1375_v0, %v6601_v53 }
 0x920   :  { %v1412_v44 = vsel %vm845_vm6, %v1411_v62, %v1407_v43 }
 0x921   :  { %v1381_v50 = vpop.permute.xlu1 %1380  ;;  %v1369_v27 = vpop.permute.xlu0 %1368 }
 0x922   :  { %v1416_v5 = vrot.slane %v1381_v50, %v6691_v45  ;;  %v1397_v39 = vrot.slane %v1369_v27, %v6691_v45 }
 0x924   :  { %v1417_v61 = vsel %vm852_vm7, %v1416_v5, %v1412_v44  ;;  %v1398_v24 = vsel %vm852_vm7, %v1397_v39, %v1393_v49 }
 0x925   :  { %v1384_v38 = vpop.permute.xlu1 %1383  ;;  %v1372_v34 = vpop.permute.xlu0 %1371 }
 0x926   :  { %v1421_v29 = vrot.slane %v1384_v38, %v6694_v48  ;;  %v1402_v54 = vrot.slane %v1372_v34, %v6694_v48 }
 0x928   :  { %v1422_v40 = vsel %vm859_vm8, %v1421_v29, %v1417_v61  ;;  %v1403_v10 = vsel %vm859_vm8, %v1402_v54, %v1398_v24 }
 0x929   :  { %v1423_v0 = vsel %vm585_vm4, %v1422_v40, %v1403_v10 }
 0x92a   :  { %5463 = vmatmul.mubr.msk.f32.vlgmr.msra.gmra.mrb[4].mxu0 %vm142_vm0, %v1423_v0 }
 0x92b   :  { %5767 = vmatpush3.bf16.msra.mxu0 %v6524_v46  ;;  %5484 = vmatprep.mubr.msk.f32.mxu0 %vm6217_vm3, %v6218_v60 }
 0x92c   :  { %5768 = vmatprep.subr.bf16.mxu0 %v7856_v15 }
 0x92f   :  { %5770 = vmatpush3.bf16.msra.mxu0 %v6534_v56 }
 0x930   :  { %5777 = vmatprep.subr.bf16.mxu0 %v7856_v15 }
 0x9fd   :  { %v1492_v50 = vpop.f32.mrb[4].mxu0 }
 0x9fe   :  { %v1497_v27 = vrot.slane %v1492_v50, 5  ;;  %v1498_v59 = vrot.slane %v1492_v50, 6  ;;  %v5464_v1 = vpop.f32.mrb[5].mxu0 }
 0xa00   :  { %1517 = vrot.lane.b32.xlu1 %v1498_v59, %s6216_s15  ;;  %1515 = vrot.lane.b32.xlu0 %v1497_v27, %s6216_s15  ;;  %v1501_v62 = vadd.f32 %v1497_v27, %v6587_v30  ;;  %v1502_v43 = vadd.f32 %v1498_v59, %v6591_v8 }
 0xa02   :  { %v5217_v5 = vmul.f32 -1.442695, %v1501_v62  ;;  %v5218_v39 = vmul.f32 -1.442695, %v1502_v43 }
 0xa04   :  { %6023 = vpow2.f32 %v5217_v5 }
 0xa05   :  { %6025 = vpow2.f32 %v5218_v39  ;;  %v1538_v39 = vrot.slane %v6622_v25, %v6798_v23 }
 0xa0e   :  { %v6024_v38 = vpop.eup %6023 }
 0xa0f   :  { %v6026_v34 = vpop.eup %6025  ;;  %v1509_v49 = vadd.f32 1.0, %v6024_v38 }
 0xa10   :  { %v1510_v44 = vadd.f32 1.0, %v6026_v34 }
 0xa11   :  { %6027 = vrcp.f32 %v1509_v49 }
 0xa12   :  { %6029 = vrcp.f32 %v1510_v44 }
 0xa1b   :  { %v6028_v29 = vpop.eup %6027 }
 0xa1c   :  { %v6030_v54 = vpop.eup %6029 }
 0xa72   :  { %v1518_v61 = vpop.permute.xlu1 %1517  ;;  %v1516_v24 = vpop.permute.xlu0 %1515 }
 0xa73   :  { %v1522_v40 = vmul.f32 %v6030_v54, %v1518_v61  ;;  %v1521_v10 = vmul.f32 %v6028_v29, %v1516_v24  ;;  %v6865_v29 = vsub.s32 4, %v6259_v9  ;;  %v1542_v24 = vrot.slane %v6638_v36, %v6798_v23 }
 0xa75   :  { %1527 = vrot.lane.b32.xlu1 %v1522_v40, %s6213_s22  ;;  %1525 = vrot.lane.b32.xlu0 %v1521_v10, %s6213_s22  ;;  %v1876_v40 = vrot.slane %v6625_v26, %v6865_v29 }
 0xae7   :  { %v1528_v0 = vpop.permute.xlu1 %1527  ;;  %v1526_v50 = vpop.permute.xlu0 %1525 }
 0xae8   :  { %v1531_v27 = vadd.f32 %v1526_v50, %v6608_v3  ;;  %v1532_v59 = vadd.f32 %v1528_v0, %v6612_v7 }
 0xaea   :  { %6031 = vtanh.f32 %v1531_v27 }
 0xaeb   :  { %6033 = vtanh.f32 %v1532_v59 }
 0xaf4   :  { %v6032_v1 = vpop.eup %6031 }
 0xaf5   :  { %v1548_v62 = vrot.slane %v6032_v1, %v6798_v23  ;;  %v6034_v43 = vpop.eup %6033 }
 0xaf6   :  { %v1568_v5 = vrot.slane %v6034_v43, %v6798_v23 }
 0xaf7   :  { %1555 = vbcast.lane.b32.xlu1 %v1548_v62, 296  ;;  %1551 = vbcast.lane.b32.xlu0 %v1548_v62, 288 }
 0xafb   :  { %1575 = vbcast.lane.b32.xlu1 %v1568_v5, 296  ;;  %1571 = vbcast.lane.b32.xlu0 %v1568_v5, 288 }
 0xaff   :  { %1579 = vbcast.lane.b32.xlu1 %v1568_v5, 304  ;;  %1559 = vbcast.lane.b32.xlu0 %v1548_v62, 304 }
 0xb03   :  { %1583 = vbcast.lane.b32.xlu1 %v1568_v5, 312  ;;  %1563 = vbcast.lane.b32.xlu0 %v1548_v62, 312  ;;  %v1880_v62 = vrot.slane %v6647_v37, %v6865_v29 }
 0xb69   :  { %v1556_v38 = vpop.permute.xlu1 %1555  ;;  %v1552_v34 = vpop.permute.xlu0 %1551 }
 0xb6a   :  { %v1594_v49 = vmul.f32 %v1556_v38, %v1538_v39  ;;  %v1593_v44 = vmul.f32 %v1552_v34, %v1538_v39 }
 0xb6c   :  { %v1618_v54 = vadd.f32 %v6806_v13, %v1594_v49  ;;  %v1617_v61 = vadd.f32 %v6808_v33, %v1593_v44 }
 0xb6d   :  { %v1576_v10 = vpop.permute.xlu1 %1575  ;;  %v1572_v0 = vpop.permute.xlu0 %1571 }
 0xb6e   :  { %v1598_v50 = vmul.f32 %v1576_v10, %v1542_v24  ;;  %v1597_v27 = vmul.f32 %v1572_v0, %v1542_v24  ;;  %1637 = vperm.xlu1 %5934, %v1618_v54   ;;  %1634 = vperm.xlu0 %5933, %v1617_v61   ;;  %v6873_v59 = vmul.f32 %v1876_v40, %v1618_v54 }
 0xb6f   :  { %v6875_v1 = vmul.f32 %v1876_v40, %v1617_v61 }
 0xb70   :  { %v1622_v13 = vadd.f32 %v6814_v17, %v1598_v50  ;;  %v1621_v33 = vadd.f32 %v6816_v31, %v1597_v27 }
 0xb71   :  { %v1580_v43 = vpop.permute.xlu1 %1579  ;;  %v1560_v5 = vpop.permute.xlu0 %1559 }
 0xb72   :  { %v1599_v38 = vmul.f32 %v1580_v43, %v1542_v24  ;;  %v1595_v34 = vmul.f32 %v1560_v5, %v1538_v39  ;;  %1649 = vperm.xlu1 %5934, %v1622_v13   ;;  %1646 = vperm.xlu0 %5933, %v1621_v33   ;;  %v6881_v49 = vmul.f32 %v1880_v62, %v1622_v13 }
 0xb73   :  { %v6883_v44 = vmul.f32 %v1880_v62, %v1621_v33 }
 0xb74   :  { %v1623_v54 = vadd.f32 %v6820_v51, %v1599_v38  ;;  %v1619_v61 = vadd.f32 %v6822_v6, %v1595_v34 }
 0xb75   :  { %v1584_v17 = vpop.permute.xlu1 %1583  ;;  %v1564_v10 = vpop.permute.xlu0 %1563 }
 0xb76   :  { %v1600_v31 = vmul.f32 %v1584_v17, %v1542_v24  ;;  %v1596_v0 = vmul.f32 %v1564_v10, %v1538_v39  ;;  %1652 = vperm.xlu1 %5934, %v1623_v54   ;;  %1640 = vperm.xlu0 %5933, %v1619_v61   ;;  %v6887_v50 = vmul.f32 %v1880_v62, %v1623_v54 }
 0xb77   :  { %v6889_v27 = vmul.f32 %v1876_v40, %v1619_v61 }
 0xb78   :  { %v1624_v43 = vadd.f32 %v6826_v55, %v1600_v31  ;;  %v1620_v13 = vadd.f32 %v6828_v58, %v1596_v0 }
 0xb7a   :  { %1655 = vperm.xlu1 %5934, %v1624_v43   ;;  %1643 = vperm.xlu0 %5933, %v1620_v13   ;;  %v6893_v33 = vmul.f32 %v1880_v62, %v1624_v43  ;;  %v6895_v51 = vmul.f32 %v1876_v40, %v1620_v13 }
 0xbed   :  { %v1638_v6 = vpop.permute.xlu1 %1637  ;;  %v1635_v5 = vpop.permute.xlu0 %1634 }
 0xbee   :  { %v1664_v54 = vrot.slane %v1638_v6, %v6688_v42  ;;  %v1660_v61 = vrot.slane %v1635_v5, %v6601_v53 }
 0xbf0   :  { %v1665_v31 = vsel %vm845_vm6, %v1664_v54, %v1660_v61 }
 0xbf1   :  { %v1650_v24 = vpop.permute.xlu1 %1649  ;;  %v1647_v39 = vpop.permute.xlu0 %1646 }
 0xbf2   :  { %v1683_v55 = vrot.slane %v1650_v24, %v6688_v42  ;;  %v1679_v58 = vrot.slane %v1647_v39, %v6601_v53 }
 0xbf4   :  { %v1684_v0 = vsel %vm845_vm6, %v1683_v55, %v1679_v58 }
 0xbf5   :  { %v1653_v38 = vpop.permute.xlu1 %1652  ;;  %v1641_v34 = vpop.permute.xlu0 %1640 }
 0xbf6   :  { %v1688_v17 = vrot.slane %v1653_v38, %v6691_v45  ;;  %v1669_v62 = vrot.slane %v1641_v34, %v6691_v45 }
 0xbf8   :  { %v1689_v6 = vsel %vm852_vm7, %v1688_v17, %v1684_v0  ;;  %v1670_v5 = vsel %vm852_vm7, %v1669_v62, %v1665_v31 }
 0xbf9   :  { %v1656_v40 = vpop.permute.xlu1 %1655  ;;  %v1644_v10 = vpop.permute.xlu0 %1643 }
 0xbfa   :  { %v1693_v43 = vrot.slane %v1656_v40, %v6694_v48  ;;  %v1674_v13 = vrot.slane %v1644_v10, %v6694_v48 }
 0xbfc   :  { %v1694_v24 = vsel %vm859_vm8, %v1693_v43, %v1689_v6  ;;  %v1675_v39 = vsel %vm859_vm8, %v1674_v13, %v1670_v5 }
 0xbfd   :  { %v1695_v38 = vsel %vm585_vm4, %v1694_v24, %v1675_v39 }
 0xbfe   :  { %5474 = vmatmul.mubr.msk.f32.vlgmr.msra.gmra.mrb[10].mxu1 %vm142_vm0, %v1695_v38 }
 0xbff   :  { %5773 = vmatpush3.bf16.msra.mxu1 %v6524_v46  ;;  %5495 = vmatprep.mubr.msk.f32.mxu1 %vm6217_vm3, %v6218_v60 }
 0xc00   :  { %5774 = vmatprep.subr.bf16.mxu1 %v7856_v15 }
 0xc03   :  { %5776 = vmatpush3.bf16.msra.mxu1 %v6534_v56 }
 0xc04   :  { %5783 = vmatprep.subr.bf16.mxu1 %v7856_v15 }
 0xcd1   :  { %v1764_v34 = vpop.f32.mrb[10].mxu1 }
 0xcd2   :  { %v1769_v54 = vrot.slane %v1764_v34, 4  ;;  %v1770_v61 = vrot.slane %v1764_v34, 5  ;;  %v5475_v55 = vpop.f32.mrb[11].mxu1 }
 0xcd4   :  { %1789 = vrot.lane.b32.xlu1 %v1770_v61, %s6216_s15  ;;  %1787 = vrot.lane.b32.xlu0 %v1769_v54, %s6216_s15  ;;  %v1773_v58 = vadd.f32 %v1769_v54, %v6587_v30  ;;  %v1774_v17 = vadd.f32 %v1770_v61, %v6591_v8 }
 0xcd6   :  { %v5220_v62 = vmul.f32 -1.442695, %v1773_v58  ;;  %v5221_v40 = vmul.f32 -1.442695, %v1774_v17 }
 0xcd8   :  { %6035 = vpow2.f32 %v5220_v62 }
 0xcd9   :  { %6037 = vpow2.f32 %v5221_v40 }
 0xce2   :  { %v6036_v10 = vpop.eup %6035 }
 0xce3   :  { %v6038_v31 = vpop.eup %6037  ;;  %v1781_v0 = vadd.f32 1.0, %v6036_v10  ;;  %v1810_v10 = vrot.slane %v6622_v25, %v6865_v29 }
 0xce4   :  { %v1782_v43 = vadd.f32 1.0, %v6038_v31 }
 0xce5   :  { %6039 = vrcp.f32 %v1781_v0 }
 0xce6   :  { %6041 = vrcp.f32 %v1782_v43 }
 0xcef   :  { %v6040_v13 = vpop.eup %6039 }
 0xcf0   :  { %v6042_v6 = vpop.eup %6041 }
 0xd46   :  { %v1790_v5 = vpop.permute.xlu1 %1789  ;;  %v1788_v24 = vpop.permute.xlu0 %1787 }
 0xd47   :  { %v1794_v39 = vmul.f32 %v6042_v6, %v1790_v5  ;;  %v1793_v38 = vmul.f32 %v6040_v13, %v1788_v24  ;;  %v6932_v6 = vsub.s32 5, %v6259_v9 }
 0xd49   :  { %1799 = vrot.lane.b32.xlu1 %v1794_v39, %s6213_s22  ;;  %1797 = vrot.lane.b32.xlu0 %v1793_v38, %s6213_s22  ;;  %v1814_v39 = vrot.slane %v6638_v36, %v6865_v29  ;;  %v2148_v38 = vrot.slane %v6625_v26, %v6932_v6 }
 0xdbb   :  { %v1800_v34 = vpop.permute.xlu1 %1799  ;;  %v1798_v54 = vpop.permute.xlu0 %1797 }
 0xdbc   :  { %v1803_v61 = vadd.f32 %v1798_v54, %v6608_v3  ;;  %v1804_v55 = vadd.f32 %v1800_v34, %v6612_v7 }
 0xdbe   :  { %6043 = vtanh.f32 %v1803_v61 }
 0xdbf   :  { %6045 = vtanh.f32 %v1804_v55 }
 0xdc8   :  { %v6044_v58 = vpop.eup %6043 }
 0xdc9   :  { %v1820_v17 = vrot.slane %v6044_v58, %v6865_v29  ;;  %v6046_v62 = vpop.eup %6045 }
 0xdca   :  { %v1840_v40 = vrot.slane %v6046_v62, %v6865_v29  ;;  %v2152_v62 = vrot.slane %v6647_v37, %v6932_v6 }
 0xdcb   :  { %1827 = vbcast.lane.b32.xlu1 %v1820_v17, 296  ;;  %1823 = vbcast.lane.b32.xlu0 %v1820_v17, 288 }
 0xdcf   :  { %1847 = vbcast.lane.b32.xlu1 %v1840_v40, 296  ;;  %1843 = vbcast.lane.b32.xlu0 %v1840_v40, 288 }
 0xdd3   :  { %1851 = vbcast.lane.b32.xlu1 %v1840_v40, 304  ;;  %1831 = vbcast.lane.b32.xlu0 %v1820_v17, 304 }
 0xdd7   :  { %1855 = vbcast.lane.b32.xlu1 %v1840_v40, 312  ;;  %1835 = vbcast.lane.b32.xlu0 %v1820_v17, 312 }
 0xe3d   :  { %v1828_v31 = vpop.permute.xlu1 %1827  ;;  %v1824_v0 = vpop.permute.xlu0 %1823 }
 0xe3e   :  { %v1866_v43 = vmul.f32 %v1828_v31, %v1810_v10  ;;  %v1865_v13 = vmul.f32 %v1824_v0, %v1810_v10 }
 0xe40   :  { %v1890_v5 = vadd.f32 %v6873_v59, %v1866_v43  ;;  %v1889_v24 = vadd.f32 %v6875_v1, %v1865_v13 }
 0xe41   :  { %v1848_v34 = vpop.permute.xlu1 %1847  ;;  %v1844_v54 = vpop.permute.xlu0 %1843 }
 0xe42   :  { %v1870_v61 = vmul.f32 %v1848_v34, %v1814_v39  ;;  %v1869_v55 = vmul.f32 %v1844_v54, %v1814_v39  ;;  %1909 = vperm.xlu1 %5934, %v1890_v5   ;;  %1906 = vperm.xlu0 %5933, %v1889_v24   ;;  %v6940_v58 = vmul.f32 %v2148_v38, %v1890_v5 }
 0xe43   :  { %v6942_v17 = vmul.f32 %v2148_v38, %v1889_v24 }
 0xe44   :  { %v1894_v59 = vadd.f32 %v6881_v49, %v1870_v61  ;;  %v1893_v1 = vadd.f32 %v6883_v44, %v1869_v55 }
 0xe45   :  { %v1852_v40 = vpop.permute.xlu1 %1851  ;;  %v1832_v31 = vpop.permute.xlu0 %1831 }
 0xe46   :  { %v1871_v0 = vmul.f32 %v1852_v40, %v1814_v39  ;;  %v1867_v43 = vmul.f32 %v1832_v31, %v1810_v10  ;;  %1921 = vperm.xlu1 %5934, %v1894_v59   ;;  %1918 = vperm.xlu0 %5933, %v1893_v1   ;;  %v6948_v13 = vmul.f32 %v2152_v62, %v1894_v59 }
 0xe47   :  { %v6950_v34 = vmul.f32 %v2152_v62, %v1893_v1 }
 0xe48   :  { %v1895_v5 = vadd.f32 %v6887_v50, %v1871_v0  ;;  %v1891_v24 = vadd.f32 %v6889_v27, %v1867_v43 }
 0xe49   :  { %v1856_v49 = vpop.permute.xlu1 %1855  ;;  %v1836_v54 = vpop.permute.xlu0 %1835 }
 0xe4a   :  { %v1872_v44 = vmul.f32 %v1856_v49, %v1814_v39  ;;  %v1868_v61 = vmul.f32 %v1836_v54, %v1810_v10  ;;  %1924 = vperm.xlu1 %5934, %v1895_v5   ;;  %1912 = vperm.xlu0 %5933, %v1891_v24   ;;  %v6954_v55 = vmul.f32 %v2152_v62, %v1895_v5 }
 0xe4b   :  { %v6956_v40 = vmul.f32 %v2148_v38, %v1891_v24 }
 0xe4c   :  { %v1896_v31 = vadd.f32 %v6893_v33, %v1872_v44  ;;  %v1892_v59 = vadd.f32 %v6895_v51, %v1868_v61 }
 0xe4e   :  { %1927 = vperm.xlu1 %5934, %v1896_v31   ;;  %1915 = vperm.xlu0 %5933, %v1892_v59   ;;  %v6960_v1 = vmul.f32 %v2152_v62, %v1896_v31  ;;  %v6962_v50 = vmul.f32 %v2148_v38, %v1892_v59 }
 0xec1   :  { %v1910_v27 = vpop.permute.xlu1 %1909  ;;  %v1907_v0 = vpop.permute.xlu0 %1906 }
 0xec2   :  { %v1936_v5 = vrot.slane %v1910_v27, %v6688_v42  ;;  %v1932_v24 = vrot.slane %v1907_v0, %v6601_v53 }
 0xec4   :  { %v1937_v61 = vsel %vm845_vm6, %v1936_v5, %v1932_v24 }
 0xec5   :  { %v1922_v39 = vpop.permute.xlu1 %1921  ;;  %v1919_v10 = vpop.permute.xlu0 %1918 }
 0xec6   :  { %v1955_v33 = vrot.slane %v1922_v39, %v6688_v42  ;;  %v1951_v51 = vrot.slane %v1919_v10, %v6601_v53 }
 0xec8   :  { %v1956_v31 = vsel %vm845_vm6, %v1955_v33, %v1951_v51 }
 0xec9   :  { %v1925_v43 = vpop.permute.xlu1 %1924  ;;  %v1913_v49 = vpop.permute.xlu0 %1912 }
 0xeca   :  { %v1960_v54 = vrot.slane %v1925_v43, %v6691_v45  ;;  %v1941_v62 = vrot.slane %v1913_v49, %v6691_v45 }
 0xecc   :  { %v1961_v0 = vsel %vm852_vm7, %v1960_v54, %v1956_v31  ;;  %v1942_v39 = vsel %vm852_vm7, %v1941_v62, %v1937_v61 }
 0xecd   :  { %v1928_v38 = vpop.permute.xlu1 %1927  ;;  %v1916_v44 = vpop.permute.xlu0 %1915 }
 0xece   :  { %v1965_v59 = vrot.slane %v1928_v38, %v6694_v48  ;;  %v1946_v27 = vrot.slane %v1916_v44, %v6694_v48 }
 0xed0   :  { %v1966_v10 = vsel %vm859_vm8, %v1965_v59, %v1961_v0  ;;  %v1947_v43 = vsel %vm859_vm8, %v1946_v27, %v1942_v39 }
 0xed1   :  { %v1967_v49 = vsel %vm585_vm4, %v1966_v10, %v1947_v43 }
 0xed2   :  { %5485 = vmatmul.mubr.msk.f32.vlgmr.msra.gmra.mrb[6].mxu0 %vm142_vm0, %v1967_v49 }
 0xed3   :  { %5779 = vmatpush3.bf16.msra.mxu0 %v6524_v46  ;;  %5506 = vmatprep.mubr.msk.f32.mxu0 %vm6217_vm3, %v6218_v60 }
 0xed4   :  { %5780 = vmatprep.subr.bf16.mxu0 %v7856_v15 }
 0xed7   :  { %5782 = vmatpush3.bf16.msra.mxu0 %v6534_v56 }
 0xed8   :  { %5823 = vmatprep.subr.bf16.mxu0 %v7856_v15 }
 0xfa5   :  { %v2036_v5 = vpop.f32.mrb[6].mxu0 }
 0xfa6   :  { %v2041_v24 = vrot.slane %v2036_v5, 3  ;;  %v2042_v33 = vrot.slane %v2036_v5, 4  ;;  %v5486_v51 = vpop.f32.mrb[7].mxu0 }
 0xfa8   :  { %2061 = vrot.lane.b32.xlu1 %v2042_v33, %s6216_s15  ;;  %2059 = vrot.lane.b32.xlu0 %v2041_v24, %s6216_s15  ;;  %v2045_v54 = vadd.f32 %v2041_v24, %v6587_v30  ;;  %v2046_v62 = vadd.f32 %v2042_v33, %v6591_v8 }
 0xfaa   :  { %v5223_v38 = vmul.f32 -1.442695, %v2045_v54  ;;  %v5224_v44 = vmul.f32 -1.442695, %v2046_v62 }
 0xfac   :  { %6047 = vpow2.f32 %v5223_v38 }
 0xfad   :  { %6049 = vpow2.f32 %v5224_v44 }
 0xfb6   :  { %v6048_v61 = vpop.eup %6047 }
 0xfb7   :  { %v6050_v31 = vpop.eup %6049  ;;  %v2053_v59 = vadd.f32 1.0, %v6048_v61 }
 0xfb8   :  { %v2054_v27 = vadd.f32 1.0, %v6050_v31  ;;  %v2082_v31 = vrot.slane %v6622_v25, %v6932_v6 }
 0xfb9   :  { %6051 = vrcp.f32 %v2053_v59 }
 0xfba   :  { %6053 = vrcp.f32 %v2054_v27 }
 0xfc3   :  { %v6052_v0 = vpop.eup %6051 }
 0xfc4   :  { %v6054_v39 = vpop.eup %6053 }
0x101a   :  { %v2062_v10 = vpop.permute.xlu1 %2061  ;;  %v2060_v43 = vpop.permute.xlu0 %2059 }
0x101b   :  { %v2066_v49 = vmul.f32 %v6054_v39, %v2062_v10  ;;  %v2065_v5 = vmul.f32 %v6052_v0, %v2060_v43  ;;  %v6999_v10 = vsub.s32 6, %v6259_v9 }
0x101d   :  { %2071 = vrot.lane.b32.xlu1 %v2066_v49, %s6213_s22  ;;  %2069 = vrot.lane.b32.xlu0 %v2065_v5, %s6213_s22  ;;  %v2086_v5 = vrot.slane %v6638_v36, %v6932_v6 }
0x108f   :  { %v2072_v24 = vpop.permute.xlu1 %2071  ;;  %v2070_v33 = vpop.permute.xlu0 %2069 }
0x1090   :  { %v2075_v51 = vadd.f32 %v2070_v33, %v6608_v3  ;;  %v2076_v54 = vadd.f32 %v2072_v24, %v6612_v7  ;;  %v2420_v24 = vrot.slane %v6625_v26, %v6999_v10 }
0x1092   :  { %6055 = vtanh.f32 %v2075_v51 }
0x1093   :  { %6057 = vtanh.f32 %v2076_v54 }
0x109c   :  { %v6056_v62 = vpop.eup %6055 }
0x109d   :  { %v2092_v38 = vrot.slane %v6056_v62, %v6932_v6  ;;  %v6058_v44 = vpop.eup %6057 }
0x109e   :  { %v2112_v61 = vrot.slane %v6058_v44, %v6932_v6 }
0x109f   :  { %2099 = vbcast.lane.b32.xlu1 %v2092_v38, 296  ;;  %2095 = vbcast.lane.b32.xlu0 %v2092_v38, 288 }
0x10a3   :  { %2119 = vbcast.lane.b32.xlu1 %v2112_v61, 296  ;;  %2115 = vbcast.lane.b32.xlu0 %v2112_v61, 288 }
0x10a7   :  { %2123 = vbcast.lane.b32.xlu1 %v2112_v61, 304  ;;  %2103 = vbcast.lane.b32.xlu0 %v2092_v38, 304 }
0x10ab   :  { %2127 = vbcast.lane.b32.xlu1 %v2112_v61, 312  ;;  %2107 = vbcast.lane.b32.xlu0 %v2092_v38, 312  ;;  %v2424_v61 = vrot.slane %v6647_v37, %v6999_v10 }
0x1111   :  { %v2100_v59 = vpop.permute.xlu1 %2099  ;;  %v2096_v27 = vpop.permute.xlu0 %2095 }
0x1112   :  { %v2138_v0 = vmul.f32 %v2100_v59, %v2082_v31  ;;  %v2137_v39 = vmul.f32 %v2096_v27, %v2082_v31 }
0x1114   :  { %v2162_v43 = vadd.f32 %v6940_v58, %v2138_v0  ;;  %v2161_v49 = vadd.f32 %v6942_v17, %v2137_v39 }
0x1115   :  { %v2120_v33 = vpop.permute.xlu1 %2119  ;;  %v2116_v51 = vpop.permute.xlu0 %2115 }
0x1116   :  { %v2142_v54 = vmul.f32 %v2120_v33, %v2086_v5  ;;  %v2141_v62 = vmul.f32 %v2116_v51, %v2086_v5  ;;  %2181 = vperm.xlu1 %5934, %v2162_v43   ;;  %2178 = vperm.xlu0 %5933, %v2161_v49   ;;  %v7007_v38 = vmul.f32 %v2420_v24, %v2162_v43 }
0x1117   :  { %v7009_v44 = vmul.f32 %v2420_v24, %v2161_v49 }
0x1118   :  { %v2166_v58 = vadd.f32 %v6948_v13, %v2142_v54  ;;  %v2165_v17 = vadd.f32 %v6950_v34, %v2141_v62 }
0x1119   :  { %v2124_v59 = vpop.permute.xlu1 %2123  ;;  %v2104_v27 = vpop.permute.xlu0 %2103 }
0x111a   :  { %v2143_v0 = vmul.f32 %v2124_v59, %v2086_v5  ;;  %v2139_v39 = vmul.f32 %v2104_v27, %v2082_v31  ;;  %2193 = vperm.xlu1 %5934, %v2166_v58   ;;  %2190 = vperm.xlu0 %5933, %v2165_v17   ;;  %v7015_v33 = vmul.f32 %v2424_v61, %v2166_v58 }
0x111b   :  { %v7017_v51 = vmul.f32 %v2424_v61, %v2165_v17 }
0x111c   :  { %v2167_v43 = vadd.f32 %v6954_v55, %v2143_v0  ;;  %v2163_v49 = vadd.f32 %v6956_v40, %v2139_v39 }
0x111d   :  { %v2128_v13 = vpop.permute.xlu1 %2127  ;;  %v2108_v54 = vpop.permute.xlu0 %2107 }
0x111e   :  { %v2144_v34 = vmul.f32 %v2128_v13, %v2086_v5  ;;  %v2140_v62 = vmul.f32 %v2108_v54, %v2082_v31  ;;  %2196 = vperm.xlu1 %5934, %v2167_v43   ;;  %2184 = vperm.xlu0 %5933, %v2163_v49   ;;  %v7021_v15 = vmul.f32 %v2424_v61, %v2167_v43 }
0x111f   :  { %v7023_v59 = vmul.f32 %v2420_v24, %v2163_v49 }
0x1120   :  { %v2168_v27 = vadd.f32 %v6960_v1, %v2144_v34  ;;  %v2164_v58 = vadd.f32 %v6962_v50, %v2140_v62 }
0x1122   :  { %2199 = vperm.xlu1 %5934, %v2168_v27   ;;  %2187 = vperm.xlu0 %5933, %v2164_v58   ;;  %v7027_v17 = vmul.f32 %v2424_v61, %v2168_v27  ;;  %v7029_v55 = vmul.f32 %v2420_v24, %v2164_v58 }
0x1195   :  { %v2182_v40 = vpop.permute.xlu1 %2181  ;;  %v2179_v0 = vpop.permute.xlu0 %2178 }
0x1196   :  { %v2208_v43 = vrot.slane %v2182_v40, %v6688_v42  ;;  %v2204_v49 = vrot.slane %v2179_v0, %v6601_v53 }
0x1198   :  { %v2209_v62 = vsel %vm845_vm6, %v2208_v43, %v2204_v49 }
0x1199   :  { %v2194_v5 = vpop.permute.xlu1 %2193  ;;  %v2191_v31 = vpop.permute.xlu0 %2190 }
0x119a   :  { %v2227_v1 = vrot.slane %v2194_v5, %v6688_v42  ;;  %v2223_v50 = vrot.slane %v2191_v31, %v6601_v53 }
0x119c   :  { %v2228_v27 = vsel %vm845_vm6, %v2227_v1, %v2223_v50 }
0x119d   :  { %v2197_v39 = vpop.permute.xlu1 %2196  ;;  %v2185_v13 = vpop.permute.xlu0 %2184 }
0x119e   :  { %v2232_v54 = vrot.slane %v2197_v39, %v6691_v45  ;;  %v2213_v61 = vrot.slane %v2185_v13, %v6691_v45 }
0x11a0   :  { %v2233_v0 = vsel %vm852_vm7, %v2232_v54, %v2228_v27  ;;  %v2214_v5 = vsel %vm852_vm7, %v2213_v61, %v2209_v62 }
0x11a1   :  { %v2200_v24 = vpop.permute.xlu1 %2199  ;;  %v2188_v34 = vpop.permute.xlu0 %2187 }
0x11a2   :  { %v2237_v58 = vrot.slane %v2200_v24, %v6694_v48  ;;  %v2218_v40 = vrot.slane %v2188_v34, %v6694_v48 }
0x11a4   :  { %v2238_v31 = vsel %vm859_vm8, %v2237_v58, %v2233_v0  ;;  %v2219_v39 = vsel %vm859_vm8, %v2218_v40, %v2214_v5 }
0x11a5   :  { %v2239_v13 = vsel %vm585_vm4, %v2238_v31, %v2219_v39 }
0x11a6   :  { %5496 = vmatmul.mubr.msk.f32.vlgmr.msra.gmra.mrb[12].mxu1 %vm142_vm0, %v2239_v13 }
0x11a7   :  { %5541 = vmatprep.mubr.msk.f32.mxu1 %vm6217_vm3, %v6218_v60 }
0x1279   :  { %v2308_v43 = vpop.f32.mrb[12].mxu1 }
0x127a   :  { %v2313_v49 = vrot.slane %v2308_v43, 2  ;;  %v2314_v1 = vrot.slane %v2308_v43, 3  ;;  %v5497_v50 = vpop.f32.mrb[13].mxu1 }
0x127c   :  { %2333 = vrot.lane.b32.xlu1 %v2314_v1, %s6216_s15  ;;  %2331 = vrot.lane.b32.xlu0 %v2313_v49, %s6216_s15  ;;  %v2317_v54 = vadd.f32 %v2313_v49, %v6587_v30  ;;  %v2318_v61 = vadd.f32 %v2314_v1, %v6591_v8 }
0x127e   :  { %v5226_v24 = vmul.f32 -1.442695, %v2317_v54  ;;  %v5227_v34 = vmul.f32 -1.442695, %v2318_v61 }
0x1280   :  { %6059 = vpow2.f32 %v5226_v24 }
0x1281   :  { %6061 = vpow2.f32 %v5227_v34 }
0x128a   :  { %v6060_v62 = vpop.eup %6059 }
0x128b   :  { %v6062_v27 = vpop.eup %6061  ;;  %v2325_v58 = vadd.f32 1.0, %v6060_v62 }
0x128c   :  { %v2326_v40 = vadd.f32 1.0, %v6062_v27  ;;  %v2354_v27 = vrot.slane %v6622_v25, %v6999_v10 }
0x128d   :  { %6063 = vrcp.f32 %v2325_v58 }
0x128e   :  { %6065 = vrcp.f32 %v2326_v40 }
0x1297   :  { %v6064_v0 = vpop.eup %6063 }
0x1298   :  { %v6066_v5 = vpop.eup %6065 }
0x12ee   :  { %v2334_v31 = vpop.permute.xlu1 %2333  ;;  %v2332_v39 = vpop.permute.xlu0 %2331 }
0x12ef   :  { %v2338_v13 = vmul.f32 %v6066_v5, %v2334_v31  ;;  %v2337_v43 = vmul.f32 %v6064_v0, %v2332_v39  ;;  %v7062_v31 = vsub.s32 7, %v6259_v9 }
0x12f1   :  { %2343 = vrot.lane.b32.xlu1 %v2338_v13, %s6213_s22  ;;  %2341 = vrot.lane.b32.xlu0 %v2337_v43, %s6213_s22  ;;  %v2358_v43 = vrot.slane %v6638_v36, %v6999_v10 }
0x1363   :  { %v2344_v49 = vpop.permute.xlu1 %2343  ;;  %v2342_v1 = vpop.permute.xlu0 %2341 }
0x1364   :  { %v2347_v50 = vadd.f32 %v2342_v1, %v6608_v3  ;;  %v2348_v54 = vadd.f32 %v2344_v49, %v6612_v7  ;;  %v2692_v49 = vrot.slane %v6625_v26, %v7062_v31 }
0x1366   :  { %6067 = vtanh.f32 %v2347_v50 }
0x1367   :  { %6069 = vtanh.f32 %v2348_v54 }
0x1370   :  { %v6068_v61 = vpop.eup %6067 }
0x1371   :  { %v2364_v24 = vrot.slane %v6068_v61, %v6999_v10  ;;  %v6070_v34 = vpop.eup %6069 }
0x1372   :  { %v2384_v62 = vrot.slane %v6070_v34, %v6999_v10 }
0x1373   :  { %2371 = vbcast.lane.b32.xlu1 %v2364_v24, 296  ;;  %2367 = vbcast.lane.b32.xlu0 %v2364_v24, 288 }
0x1377   :  { %2391 = vbcast.lane.b32.xlu1 %v2384_v62, 296  ;;  %2387 = vbcast.lane.b32.xlu0 %v2384_v62, 288 }
0x137b   :  { %2395 = vbcast.lane.b32.xlu1 %v2384_v62, 304  ;;  %2375 = vbcast.lane.b32.xlu0 %v2364_v24, 304 }
0x137f   :  { %2399 = vbcast.lane.b32.xlu1 %v2384_v62, 312  ;;  %2379 = vbcast.lane.b32.xlu0 %v2364_v24, 312  ;;  %v2696_v62 = vrot.slane %v6647_v37, %v7062_v31 }
0x13e5   :  { %v2372_v58 = vpop.permute.xlu1 %2371  ;;  %v2368_v40 = vpop.permute.xlu0 %2367 }
0x13e6   :  { %v2410_v0 = vmul.f32 %v2372_v58, %v2354_v27  ;;  %v2409_v5 = vmul.f32 %v2368_v40, %v2354_v27 }
0x13e8   :  { %v2434_v39 = vadd.f32 %v7007_v38, %v2410_v0  ;;  %v2433_v13 = vadd.f32 %v7009_v44, %v2409_v5 }
0x13e9   :  { %v2392_v1 = vpop.permute.xlu1 %2391  ;;  %v2388_v50 = vpop.permute.xlu0 %2387 }
0x13ea   :  { %v2414_v54 = vmul.f32 %v2392_v1, %v2358_v43  ;;  %v2413_v61 = vmul.f32 %v2388_v50, %v2358_v43  ;;  %2453 = vperm.xlu1 %5934, %v2434_v39   ;;  %2450 = vperm.xlu0 %5933, %v2433_v13   ;;  %v7070_v24 = vmul.f32 %v2692_v49, %v2434_v39 }
0x13eb   :  { %v7072_v34 = vmul.f32 %v2692_v49, %v2433_v13 }
0x13ec   :  { %v2438_v38 = vadd.f32 %v7015_v33, %v2414_v54  ;;  %v2437_v44 = vadd.f32 %v7017_v51, %v2413_v61 }
0x13ed   :  { %v2396_v58 = vpop.permute.xlu1 %2395  ;;  %v2376_v40 = vpop.permute.xlu0 %2375 }
0x13ee   :  { %v2415_v26 = vmul.f32 %v2396_v58, %v2358_v43  ;;  %v2411_v0 = vmul.f32 %v2376_v40, %v2354_v27  ;;  %2465 = vperm.xlu1 %5934, %v2438_v38   ;;  %2462 = vperm.xlu0 %5933, %v2437_v44   ;;  %v7078_v5 = vmul.f32 %v2696_v62, %v2438_v38 }
0x13ef   :  { %v7080_v1 = vmul.f32 %v2696_v62, %v2437_v44 }
0x13f0   :  { %v2439_v39 = vadd.f32 %v7021_v15, %v2415_v26  ;;  %v2435_v13 = vadd.f32 %v7023_v59, %v2411_v0 }
0x13f1   :  { %v2400_v33 = vpop.permute.xlu1 %2399  ;;  %v2380_v50 = vpop.permute.xlu0 %2379 }
0x13f2   :  { %v2416_v51 = vmul.f32 %v2400_v33, %v2358_v43  ;;  %v2412_v54 = vmul.f32 %v2380_v50, %v2354_v27  ;;  %2468 = vperm.xlu1 %5934, %v2439_v39   ;;  %2456 = vperm.xlu0 %5933, %v2435_v13   ;;  %v7084_v37 = vmul.f32 %v2696_v62, %v2439_v39 }
0x13f3   :  { %v7086_v61 = vmul.f32 %v2692_v49, %v2435_v13 }
0x13f4   :  { %v2440_v58 = vadd.f32 %v7027_v17, %v2416_v51  ;;  %v2436_v38 = vadd.f32 %v7029_v55, %v2412_v54 }
0x13f6   :  { %2471 = vperm.xlu1 %5934, %v2440_v58   ;;  %2459 = vperm.xlu0 %5933, %v2436_v38   ;;  %v7090_v44 = vmul.f32 %v2696_v62, %v2440_v58  ;;  %v7092_v15 = vmul.f32 %v2692_v49, %v2436_v38 }
0x1469   :  { %v2454_v59 = vpop.permute.xlu1 %2453  ;;  %v2451_v40 = vpop.permute.xlu0 %2450 }
0x146a   :  { %v2480_v39 = vrot.slane %v2454_v59, %v6688_v42  ;;  %v2476_v13 = vrot.slane %v2451_v40, %v6601_v53 }
0x146c   :  { %v2481_v51 = vsel %vm845_vm6, %v2480_v39, %v2476_v13 }
0x146d   :  { %v2466_v43 = vpop.permute.xlu1 %2465  ;;  %v2463_v27 = vpop.permute.xlu0 %2462 }
0x146e   :  { %v2499_v17 = vrot.slane %v2466_v43, %v6688_v42  ;;  %v2495_v55 = vrot.slane %v2463_v27, %v6601_v53 }
0x1470   :  { %v2500_v54 = vsel %vm845_vm6, %v2499_v17, %v2495_v55 }
0x1471   :  { %v2469_v26 = vpop.permute.xlu1 %2468  ;;  %v2457_v0 = vpop.permute.xlu0 %2456 }
0x1472   :  { %v2504_v33 = vrot.slane %v2469_v26, %v6691_v45  ;;  %v2485_v62 = vrot.slane %v2457_v0, %v6691_v45  ;;  %v7858_v0 = vmov 0.0|0.0  }
0x1474   :  { %v2505_v59 = vsel %vm852_vm7, %v2504_v33, %v2500_v54  ;;  %v2486_v40 = vsel %vm852_vm7, %v2485_v62, %v2481_v51 }
0x1475   :  { %v2472_v49 = vpop.permute.xlu1 %2471  ;;  %v2460_v50 = vpop.permute.xlu0 %2459 }
0x1476   :  { %v2509_v58 = vrot.slane %v2472_v49, %v6694_v48  ;;  %v2490_v38 = vrot.slane %v2460_v50, %v6694_v48 }
0x1478   :  { %v2510_v43 = vsel %vm859_vm8, %v2509_v58, %v2505_v59  ;;  %v2491_v27 = vsel %vm859_vm8, %v2490_v38, %v2486_v40 }
0x1479   :  { %v2511_v26 = vsel %vm585_vm4, %v2510_v43, %v2491_v27 }
0x147a   :  { %5507 = vmatmul.mubr.msk.f32.vlgmr.msra.gmra.mrb[8].mxu0 %vm142_vm0, %v2511_v26 }
0x147b   :  { %5825 = vmatpush3.bf16.msra.mxu0 %v6524_v46  ;;  %5571 = vmatprep.mubr.msk.f32.mxu0 %vm6217_vm3, %v6218_v60 }
0x147c   :  { %5826 = vmatprep.subr.bf16.mxu0 %v7858_v0 }
0x147f   :  { %5828 = vmatpush3.bf16.msra.mxu0 %v6534_v56 }
0x1480   :  { %5829 = vmatprep.subr.bf16.mxu0 %v7858_v0 }
0x154d   :  { %v2580_v39 = vpop.f32.mrb[8].mxu0 }
0x154e   :  { %v2585_v13 = vrot.slane %v2580_v39, 1  ;;  %v2586_v17 = vrot.slane %v2580_v39, 2  ;;  %v5508_v55 = vpop.f32.mrb[9].mxu0 }
0x1550   :  { %2605 = vrot.lane.b32.xlu1 %v2586_v17, %s6216_s15  ;;  %2603 = vrot.lane.b32.xlu0 %v2585_v13, %s6216_s15  ;;  %v2589_v33 = vadd.f32 %v2585_v13, %v6587_v30  ;;  %v2590_v62 = vadd.f32 %v2586_v17, %v6591_v8 }
0x1552   :  { %v5229_v49 = vmul.f32 -1.442695, %v2589_v33  ;;  %v5230_v50 = vmul.f32 -1.442695, %v2590_v62 }
0x1554   :  { %6071 = vpow2.f32 %v5229_v49 }
0x1555   :  { %6073 = vpow2.f32 %v5230_v50 }
0x155e   :  { %v6072_v51 = vpop.eup %6071 }
0x155f   :  { %v6074_v54 = vpop.eup %6073  ;;  %v2597_v58 = vadd.f32 1.0, %v6072_v51 }
0x1560   :  { %v2598_v38 = vadd.f32 1.0, %v6074_v54  ;;  %v2801_v54 = vld [vmem:[%s7854_s2 + $0x180] sm:$0xff] }
0x1561   :  { %6075 = vrcp.f32 %v2597_v58  ;;  %v2802_v58 = vld [vmem:[%s7854_s2 + $0x188] sm:$0xff] }
0x1562   :  { %6077 = vrcp.f32 %v2598_v38  ;;  %v5784_v38 = vpack.c.bf16 %v2802_v58, %v2801_v54 }
0x1564   :  { %5785 = vmatpush3.bf16.msra.mxu1 %v5784_v38 }
0x1565   :  { %5786 = vmatprep.subr.bf16.mxu1 %v7858_v0 }
0x156b   :  { %v6076_v59 = vpop.eup %6075 }
0x156c   :  { %v6078_v40 = vpop.eup %6077 }
0x15c2   :  { %v2606_v43 = vpop.permute.xlu1 %2605  ;;  %v2604_v27 = vpop.permute.xlu0 %2603 }
0x15c3   :  { %v2610_v26 = vmul.f32 %v6078_v40, %v2606_v43  ;;  %v2609_v39 = vmul.f32 %v6076_v59, %v2604_v27  ;;  %v2803_v59 = vld [vmem:[%s7854_s2 + $0x190] sm:$0xff]  ;;  %v2804_v40 = vld [vmem:[%s7854_s2 + $0x198] sm:$0xff]  ;;  %v2805_v27 = vld [vmem:[%s7854_s2 + $0x1a0] sm:$0xff] }
0x15c4   :  { %v5787_v43 = vpack.c.bf16 %v2804_v40, %v2803_v59 }
0x15c5   :  { %2615 = vrot.lane.b32.xlu1 %v2610_v26, %s6213_s22  ;;  %2613 = vrot.lane.b32.xlu0 %v2609_v39, %s6213_s22  ;;  %v2806_v26 = vld [vmem:[%s7854_s2 + $0x1a8] sm:$0xff] }
0x15c6   :  { %5788 = vmatpush3.bf16.msra.mxu1 %v5787_v43  ;;  %v5790_v39 = vpack.c.bf16 %v2806_v26, %v2805_v27 }
0x15c7   :  { %5789 = vmatprep.subr.bf16.mxu1 %v7858_v0 }
0x15ca   :  { %5791 = vmatpush3.bf16.msra.mxu1 %v5790_v39 }
0x15cb   :  { %5792 = vmatprep.subr.bf16.mxu1 %v7858_v0 }
0x1637   :  { %v2616_v13 = vpop.permute.xlu1 %2615  ;;  %v2614_v17 = vpop.permute.xlu0 %2613 }
0x1638   :  { %v2619_v55 = vadd.f32 %v2614_v17, %v6608_v3  ;;  %v2620_v33 = vadd.f32 %v2616_v13, %v6612_v7  ;;  %v2626_v13 = vrot.slane %v6622_v25, %v7062_v31 }
0x163a   :  { %6079 = vtanh.f32 %v2619_v55 }
0x163b   :  { %6081 = vtanh.f32 %v2620_v33 }
0x1644   :  { %v6080_v62 = vpop.eup %6079 }
0x1645   :  { %v2636_v49 = vrot.slane %v6080_v62, %v7062_v31  ;;  %v6082_v50 = vpop.eup %6081 }
0x1646   :  { %v2656_v51 = vrot.slane %v6082_v50, %v7062_v31 }
0x1647   :  { %2643 = vbcast.lane.b32.xlu1 %v2636_v49, 296  ;;  %2639 = vbcast.lane.b32.xlu0 %v2636_v49, 288 }
0x164b   :  { %2663 = vbcast.lane.b32.xlu1 %v2656_v51, 296  ;;  %2659 = vbcast.lane.b32.xlu0 %v2656_v51, 288 }
0x164f   :  { %2667 = vbcast.lane.b32.xlu1 %v2656_v51, 304  ;;  %2647 = vbcast.lane.b32.xlu0 %v2636_v49, 304 }
0x1653   :  { %2671 = vbcast.lane.b32.xlu1 %v2656_v51, 312  ;;  %2651 = vbcast.lane.b32.xlu0 %v2636_v49, 312  ;;  %v2630_v51 = vrot.slane %v6638_v36, %v7062_v31  ;;  %v2808_v36 = vld [vmem:[%s7854_s2 + $0x1b8] sm:$0xff] }
0x16b9   :  { %v2644_v17 = vpop.permute.xlu1 %2643  ;;  %v2640_v55 = vpop.permute.xlu0 %2639 }
0x16ba   :  { %v2682_v33 = vmul.f32 %v2644_v17, %v2626_v13  ;;  %v2681_v62 = vmul.f32 %v2640_v55, %v2626_v13 }
0x16bc   :  { %v2706_v49 = vadd.f32 %v7070_v24, %v2682_v33  ;;  %v2705_v50 = vadd.f32 %v7072_v34, %v2681_v62  ;;  %v2807_v24 = vld [vmem:[%s7854_s2 + $0x1b0] sm:$0xff] }
0x16bd   :  { %v2664_v54 = vpop.permute.xlu1 %2663  ;;  %v2660_v58 = vpop.permute.xlu0 %2659  ;;  %v5793_v55 = vpack.c.bf16 %v2808_v36, %v2807_v24  ;;  %v2815_v24 = vld [vmem:[%s7854_s2 + $0x1f0] sm:$0xff]  ;;  %v2816_v36 = vld [vmem:[%s7854_s2 + $0x1f8] sm:$0xff] }
0x16be   :  { %v5935_v38 = vpack.i.bf16 %v2706_v49, %v2705_v50  ;;  %v2686_v59 = vmul.f32 %v2664_v54, %v2630_v51  ;;  %v2685_v40 = vmul.f32 %v2660_v58, %v2630_v51  ;;  %v2809_v49 = vld [vmem:[%s7854_s2 + $0x1c0] sm:$0xff]  ;;  %v2810_v50 = vld [vmem:[%s7854_s2 + $0x1c8] sm:$0xff] }
0x16bf   :  { %5794 = vmatpush3.bf16.msra.mxu1 %v5793_v55 }
0x16c0   :  { %v2710_v43 = vadd.f32 %v7078_v5, %v2686_v59  ;;  %v2709_v25 = vadd.f32 %v7080_v1, %v2685_v40  ;;  %5936 = vperm.xlu0 %5933, %v5935_v38   ;;  %5795 = vmatprep.subr.bf16.mxu1 %v7858_v0  ;;  %v2811_v40 = vld [vmem:[%s7854_s2 + $0x1d0] sm:$0xff] }
0x16c1   :  { %v2668_v27 = vpop.permute.xlu1 %2667  ;;  %v2648_v26 = vpop.permute.xlu0 %2647 }
0x16c2   :  { %v5940_v34 = vpack.i.bf16 %v2710_v43, %v2709_v25  ;;  %v2687_v39 = vmul.f32 %v2668_v27, %v2630_v51  ;;  %v2683_v17 = vmul.f32 %v2648_v26, %v2626_v13  ;;  %v2812_v43 = vld [vmem:[%s7854_s2 + $0x1d8] sm:$0xff]  ;;  %v6180_v26 = vld [vmem:[%s7853_s1 + $0x2] sm:$0x3] }
0x16c4   :  { %v2711_v33 = vadd.f32 %v7084_v37, %v2687_v39  ;;  %v2707_v5 = vadd.f32 %v7086_v61, %v2683_v17  ;;  %5941 = vperm.xlu1 %5934, %v5940_v34   ;;  %v5796_v37 = vpack.c.bf16 %v2810_v50, %v2809_v49  ;;  %v5805_v34 = vpack.c.bf16 %v2816_v36, %v2815_v24 }
0x16c5   :  { %v2672_v1 = vpop.permute.xlu1 %2671  ;;  %v2652_v62 = vpop.permute.xlu0 %2651  ;;  %v2745_v39 = vadd.s32 4294967264, %v6597_v52  ;;  %v2750_v17 = vadd.s32 4294967256, %v6597_v52  ;;  %v2764_v49 = vadd.s32 4294967240, %v6597_v52 }
0x16c6   :  { %v5945_v54 = vpack.i.bf16 %v2711_v33, %v2707_v5  ;;  %v2688_v58 = vmul.f32 %v2672_v1, %v2630_v51  ;;  %v2684_v38 = vmul.f32 %v2652_v62, %v2626_v13  ;;  %5797 = vmatpush3.bf16.msra.mxu1 %v5796_v37  ;;  %v5799_v51 = vpack.c.bf16 %v2812_v43, %v2811_v40  ;;  %v2814_v13 = vld [vmem:[%s7854_s2 + $0x1e8] sm:$0xff] }
0x16c7   :  { %5798 = vmatprep.subr.bf16.mxu1 %v7858_v0  ;;  %v2757_v5 = vadd.s32 4294967248, %v6597_v52  ;;  %v7206_v1 = vsub.s32 %v2745_v39, %v6259_v9  ;;  %v7209_v62 = vsub.s32 %v2750_v17, %v6259_v9  ;;  %v7216_v43 = vsub.s32 %v2764_v49, %v6259_v9 }
0x16c8   :  { %v2712_v61 = vadd.f32 %v7090_v44, %v2688_v58  ;;  %v2708_v59 = vadd.f32 %v7092_v15, %v2684_v38  ;;  %5946 = vperm.xlu0 %5933, %v5945_v54   ;;  %v6179_v44 = vld [vmem:[%s7853_s1] sm:$0x3] }
0x16c9   :  { %v2813_v15 = vld [vmem:[%s7854_s2 + $0x1e0] sm:$0xff]  ;;  %v7213_v37 = vsub.s32 %v2757_v5, %v6259_v9 }
0x16ca   :  { %v5950_v25 = vpack.i.bf16 %v2712_v61, %v2708_v59  ;;  %5800 = vmatpush3.bf16.msra.mxu1 %v5799_v51  ;;  %v5802_v27 = vpack.c.bf16 %v2814_v13, %v2813_v15 }
0x16cb   :  { %5801 = vmatprep.subr.bf16.mxu1 %v7858_v0 }
0x16cc   :  { %5951 = vperm.xlu1 %5934, %v5950_v25   ;;  %2792 = vrot.lane.b32.xlu0 %v6179_v44, %s6215_s6 }
0x16ce   :  { %5803 = vmatpush3.bf16.msra.mxu1 %v5802_v27 }
0x16cf   :  { %5804 = vmatprep.subr.bf16.mxu1 %v7858_v0 }
0x16d0   :  { %2795 = vrot.lane.b32.xlu1 %v6180_v26, %s6216_s15 }
0x16d2   :  { %5806 = vmatpush3.bf16.msra.mxu1 %v5805_v34 }
0x16d3   :  { %5808 = vmatprep.subr.bf16.mxu1 %v6459_v63 }
0x173f   :  { %v5937_v55 = vpop.permute.xlu0 %5936 }
0x1740   :  { %v5939_v50 = vunpack.i.h.bf16 %v5937_v55  ;;  %v5938_v54 = vunpack.i.l.bf16 %v5937_v55 }
0x1742   :  { %v2754_v25 = vrot.slane %v5939_v50, %v7209_v62  ;;  %v2749_v51 = vrot.slane %v5938_v54, %v7206_v1 }
0x1743   :  { %v5942_v33 = vpop.permute.xlu1 %5941 }
0x1744   :  { %v5944_v58 = vunpack.i.h.bf16 %v5942_v33  ;;  %v5943_v38 = vunpack.i.l.bf16 %v5942_v33  ;;  %v2756_v9 = vsel %vm2755_vm9, %v2754_v25, %v2749_v51 }
0x1746   :  { %v2778_v44 = vrot.slane %v5944_v58, %v7209_v62  ;;  %v2774_v52 = vrot.slane %v5943_v38, %v7206_v1  ;;  %v6181_v58 = vld [vmem:[%s7853_s1 + $0x4] sm:$0x3] }
0x1747   :  { %v5947_v61 = vpop.permute.xlu0 %5946 }
0x1748   :  { %v5949_v59 = vunpack.i.h.bf16 %v5947_v61  ;;  %v5948_v40 = vunpack.i.l.bf16 %v5947_v61  ;;  %v2779_v36 = vsel %vm2755_vm9, %v2778_v44, %v2774_v52 }
0x174a   :  { %v2783_v15 = vrot.slane %v5949_v59, %v7213_v37  ;;  %v2761_v13 = vrot.slane %v5948_v40, %v7213_v37  ;;  %v5231_v40 = vld [vmem:[%s7854_s2 + $0x284] ss:$0 sm:$0xff] }
0x174b   :  { %v5952_v27 = vpop.permute.xlu1 %5951  ;;  %v7232_v49 = vpop.permute.xlu0 %2792 }
0x174c   :  { %v5954_v26 = vunpack.i.h.bf16 %v5952_v27  ;;  %v5953_v24 = vunpack.i.l.bf16 %v5952_v27  ;;  %v2784_v17 = vsel %vm2762_vm10, %v2783_v15, %v2779_v36  ;;  %v2763_v55 = vsel %vm2762_vm10, %v2761_v13, %v2756_v9  ;;  %v6182_v13 = vld [vmem:[%s7852_s0] sm:$0xff]  ;;  %v6183_v9 = vld [vmem:[%s7852_s0 + $0x8] sm:$0xff] }
0x174e   :  { %v2788_v34 = vrot.slane %v5954_v26, %v7216_v43  ;;  %v2768_v39 = vrot.slane %v5953_v24, %v7216_v43 }
0x174f   :  { %v7235_v54 = vpop.permute.xlu1 %2795 }
0x1750   :  { %v2770_v33 = vsel %vm2769_vm11, %v2768_v39, %v2763_v55  ;;  %v2789_v5 = vsel %vm2769_vm11, %v2788_v34, %v2784_v17 }
0x1751   :  { %v2790_v50 = vsel %vm585_vm4, %v2789_v5, %v2770_v33 }
0x1752   :  { %v2798_v38 = vsel %vm142_vm0, %v6181_v58, %v2790_v50 }
0x1753   :  { %v2799_v61 = vsel %vm145_vm1, %v2798_v38, %v7232_v49 }
0x1754   :  { %v2800_v59 = vsel %vm148_vm2, %v2799_v61, %v7235_v54 }
0x1755   :  { %5542 = vmatmul.mubr.f32.vlgmr.msra.gmra.mrb[14].mxu1 %v2800_v59 }
0x1756   :  { %5810 = vmatpush3.bf16.msra.mxu1 %v6459_v63 }
0x1757   :  { %5812 = vmatprep.subr.bf16.mxu1 %v6468_v4 }
0x175a   :  { %5814 = vmatpush3.bf16.msra.mxu1 %v6468_v4 }
0x175b   :  { %5816 = vmatprep.subr.bf16.mxu1 %v6482_v11 }
0x175e   :  { %5818 = vmatpush3.bf16.msra.mxu1 %v6482_v11 }
0x175f   :  { %5820 = vmatprep.subr.bf16.mxu1 %v6494_v19 }
0x1762   :  { %5822 = vmatpush3.bf16.msra.mxu1 %v6494_v19 }
0x1763   :  { %5835 = vmatprep.subr.bf16.mxu1 %v7858_v0 }
0x1828   :  { %v2888_v25 = vpop.f32.mrb[14].mxu1 }
0x1829   :  { %v2889_v63 = vadd.f32 %v5231_v40, %v2888_v25  ;;  %v5543_v51 = vpop.f32.mrb[15].mxu1  ;;  %v6184_v25 = vld [vmem:[%s7854_s2 + $0x281] ss:$0 sm:$0xff] }
0x182b   :  { %v7256_v44 = vmax.f32 %v2889_v63, 0.0 }
0x182d   :  { %v2900_v4 = vrot.slane %v7256_v44, %v6281_v18 }
0x182f   :  { %v2901_v52 = vcombine.high %v2900_v4, %v2900_v4  ;;  %v2908_v11 = vrot.slane %v2900_v4, %v6281_v18 }
0x1831   :  { %v2915_v15 = vrot.slane %v2901_v52, %v6281_v18  ;;  %v2919_v19 = vrot.slane %v2908_v11, %v6291_v22 }
0x1833   :  { %v2928_v27 = vsub.f32 %v6182_v13, %v2919_v19  ;;  %v2923_v26 = vrot.slane %v2915_v15, %v6291_v22  ;;  %v2926_v18 = vmul.f32 %v6182_v13, %v2919_v19 }
0x1835   :  { %v2930_v24 = vand.u32 2147483647, %v2928_v27  ;;  %v2929_v36 = vsub.f32 %v6183_v9, %v2923_v26  ;;  %v2927_v55 = vmul.f32 %v6183_v9, %v2923_v26 }
0x1837   :  { %2934 = vrot.lane.b32.xlu0 %v2930_v24, %s6213_s22  ;;  %v2931_v34 = vand.u32 2147483647, %v2929_v36 }
0x1839   :  { %2936 = vrot.lane.b32.xlu1 %v2931_v34, %s6213_s22 }
0x18a9   :  { %v2935_v39 = vpop.permute.xlu0 %2934 }
0x18aa   :  { %v2940_v17 = vsel %vm142_vm0, %v2926_v18, %v2935_v39 }
0x18ab   :  { %5560 = vmatprep.mubr.msk.f32.mxu1 %vm145_vm1, %v2940_v17  ;;  %v2937_v33 = vpop.permute.xlu1 %2936 }
0x18ac   :  { %v2941_v5 = vsel %vm142_vm0, %v2927_v55, %v2937_v33 }
0x18ad   :  { %5561 = vmatmul.mubr.msk.f32.vlgmr.msra.gmra.mrb[16].mxu1 %vm145_vm1, %v2941_v5 }
0x18ae   :  { %5837 = vmatpush3.bf16.msra.mxu1 %v6524_v46  ;;  %5593 = vmatprep.mubr.msk.f32.mxu1 %vm6217_vm3, %v6218_v60 }
0x18af   :  { %5838 = vmatprep.subr.bf16.mxu1 %v7858_v0 }
0x18b2   :  { %5840 = vmatpush3.bf16.msra.mxu1 %v6534_v56 }
0x18b3   :  { %5847 = vmatprep.subr.bf16.mxu1 %v7858_v0 }
0x1980   :  { %v5562_v50 = vpop.f32.mrb[16].mxu1 }
0x1981   :  { %v3024_v58 = vadd.f32 %v5562_v50, %v6568_v14  ;;  %v3014_v38 = vpop.f32.mrb[17].mxu1 }
0x1982   :  { %v3023_v61 = vadd.f32 %v3014_v38, %v6570_v16 }
0x1983   :  { %6083 = vtanh.f32 %v3024_v58 }
0x1984   :  { %6085 = vtanh.f32 %v3023_v61 }
0x198d   :  { %v6084_v59 = vpop.eup %6083 }
0x198e   :  { %v6086_v40 = vpop.eup %6085  ;;  %v3028_v63 = vmul.f32 %v6184_v25, %v6084_v59 }
0x198f   :  { %v3027_v51 = vmul.f32 %v6184_v25, %v6086_v40 }
0x1990   :  { %v3032_v4 = vsel %vm142_vm0, %v3028_v63, 0.0 }
0x1991   :  { %3033 = vadd.xlane.f32.xlu1 %v3032_v4  ;;  %v3029_v52 = vsel %vm142_vm0, %v3027_v51, 0.0 }
0x1992   :  { %3030 = vadd.xlane.f32.xlu0 %v3029_v52 }
0x1a1e   :  { %v3034_v14 = vpop.xlane.xlu1 %3033 }
0x1a1f   :  { %v3037_v11 = vmul.f32 1.442695, %v3034_v14  ;;  %v3031_v15 = vpop.xlane.xlu0 %3030 }
0x1a20   :  { %v3035_v16 = vmul.f32 1.442695, %v3031_v15 }
0x1a21   :  { %6087 = vpow2.f32 %v3037_v11 }
0x1a22   :  { %6089 = vpow2.f32 %v3035_v16 }
0x1a2b   :  { %v6088_v19 = vpop.eup %6087 }
0x1a2c   :  { %v6090_v13 = vpop.eup %6089  ;;  %v3048_v27 = vrot.slane %v6088_v19, %v6601_v53 }
0x1a2d   :  { %v3044_v26 = vrot.slane %v6090_v13, %v6601_v53 }
0x1a2f   :  { %v3049_v24 = vsel %vm585_vm4, %v3048_v27, %v3044_v26 }
0x1a30   :  { %v3051_v9 = vsel %vm588_vm5, %v3049_v24, 0.0 }
0x1a31   :  { %3052 = vadd.xlane.f32.xlu0 %v3051_v9 }
0x1abe   :  { %v3053_v36 = vpop.xlane.xlu0 %3052 }
0x1abf   :  { %v3058_v34 = vrot.slane %v3053_v36, %v6291_v22  ;;  %v3062_v18 = vrot.slane %v3053_v36, %v6619_v21 }
0x1ac1   :  { %6091 = vrcp.f32 %v3058_v34 }
0x1ac2   :  { %6093 = vrcp.f32 %v3062_v18 }
0x1acb   :  { %v6092_v39 = vpop.eup %6091 }
0x1acc   :  { %v6094_v17 = vpop.eup %6093  ;;  %v7295_v55 = vmul.f32 %v6092_v39, %v6090_v13 }
0x1acd   :  { %v7297_v33 = vmul.f32 %v6094_v17, %v6088_v19 }
0x1ace   :  { %v3072_v5 = vrot.slane %v7295_v55, %v6291_v22  ;;  %v7302_v50 = vsub.f32 1.0, %v7295_v55 }
0x1acf   :  { %v3076_v58 = vrot.slane %v7297_v33, %v6291_v22  ;;  %v7307_v38 = vsub.f32 1.0, %v7297_v33 }
0x1ad0   :  { %v3078_v61 = vmul.f32 %v3072_v5, %v6636_v35  ;;  %v3090_v59 = vrot.slane %v7302_v50, %v6291_v22  ;;  %v3077_v40 = vmul.f32 %v3072_v5, %v6631_v28  ;;  %v3079_v51 = vmul.f32 %v3072_v5, %v6643_v41 }
0x1ad1   :  { %v3081_v25 = vmul.f32 %v3076_v58, %v6660_v57  ;;  %v3094_v63 = vrot.slane %v7307_v38, %v6291_v22  ;;  %v3082_v52 = vmul.f32 %v3076_v58, %v6667_v32  ;;  %v3083_v14 = vmul.f32 %v3076_v58, %v6672_v12 }
0x1ad2   :  { %v3095_v4 = vmul.f32 0.0, %v3090_v59  ;;  %v3080_v11 = vmul.f32 %v3072_v5, %v6651_v47  ;;  %v3084_v15 = vmul.f32 %v3076_v58, %v6677_v20  ;;  %v3359_v28 = vrot.slane %v7307_v38, %v6619_v21 }
0x1ad3   :  { %v3096_v35 = vmul.f32 0.0, %v3094_v63  ;;  %v3355_v57 = vrot.slane %v7302_v50, %v6619_v21 }
0x1ad4   :  { %v3098_v16 = vadd.f32 %v3095_v4, %v3078_v61  ;;  %v3097_v22 = vadd.f32 %v3095_v4, %v3077_v40  ;;  %v3099_v19 = vadd.f32 %v3095_v4, %v3079_v51  ;;  %v3100_v41 = vadd.f32 %v3095_v4, %v3080_v11 }
0x1ad5   :  { %v3101_v13 = vadd.f32 %v3096_v35, %v3081_v25  ;;  %v3102_v27 = vadd.f32 %v3096_v35, %v3082_v52  ;;  %v3103_v32 = vadd.f32 %v3096_v35, %v3083_v14  ;;  %v3104_v26 = vadd.f32 %v3096_v35, %v3084_v15 }
0x1ad6   :  { %3117 = vperm.xlu1 %5934, %v3098_v16   ;;  %3114 = vperm.xlu0 %5933, %v3097_v22   ;;  %v7325_v47 = vmul.f32 %v3355_v57, %v3097_v22  ;;  %v7327_v12 = vmul.f32 %v3355_v57, %v3098_v16  ;;  %v7329_v20 = vmul.f32 %v3355_v57, %v3099_v19 }
0x1ad7   :  { %v7331_v24 = vmul.f32 %v3359_v28, %v3102_v27  ;;  %v7333_v9 = vmul.f32 %v3359_v28, %v3101_v13  ;;  %v7335_v36 = vmul.f32 %v3359_v28, %v3103_v32  ;;  %v7337_v34 = vmul.f32 %v3359_v28, %v3104_v26 }
0x1ad8   :  { %v7339_v18 = vmul.f32 %v3355_v57, %v3100_v41 }
0x1ada   :  { %3126 = vperm.xlu1 %5934, %v3101_v13   ;;  %3129 = vperm.xlu0 %5933, %v3102_v27  }
0x1ade   :  { %3120 = vperm.xlu1 %5934, %v3099_v19   ;;  %3132 = vperm.xlu0 %5933, %v3103_v32  }
0x1ae2   :  { %3123 = vperm.xlu1 %5934, %v3100_v41   ;;  %3135 = vperm.xlu0 %5933, %v3104_v26  }
0x1b55   :  { %v3118_v39 = vpop.permute.xlu1 %3117  ;;  %v3115_v17 = vpop.permute.xlu0 %3114 }
0x1b56   :  { %v3144_v40 = vrot.slane %v3118_v39, %v6688_v42  ;;  %v3140_v25 = vrot.slane %v3115_v17, %v6601_v53 }
0x1b58   :  { %v3145_v35 = vsel %vm845_vm6, %v3144_v40, %v3140_v25 }
0x1b59   :  { %v3127_v5 = vpop.permute.xlu1 %3126  ;;  %v3130_v58 = vpop.permute.xlu0 %3129 }
0x1b5a   :  { %v3159_v63 = vrot.slane %v3127_v5, %v6601_v53  ;;  %v3163_v51 = vrot.slane %v3130_v58, %v6688_v42 }
0x1b5c   :  { %v3164_v15 = vsel %vm845_vm6, %v3163_v51, %v3159_v63 }
0x1b5d   :  { %v3121_v61 = vpop.permute.xlu1 %3120  ;;  %v3133_v59 = vpop.permute.xlu0 %3132 }
0x1b5e   :  { %v3149_v4 = vrot.slane %v3121_v61, %v6691_v45  ;;  %v3168_v52 = vrot.slane %v3133_v59, %v6691_v45 }
0x1b60   :  { %v3150_v16 = vsel %vm852_vm7, %v3149_v4, %v3145_v35  ;;  %v3169_v22 = vsel %vm852_vm7, %v3168_v52, %v3164_v15 }
0x1b61   :  { %v3124_v14 = vpop.permute.xlu1 %3123  ;;  %v3136_v11 = vpop.permute.xlu0 %3135 }
0x1b62   :  { %v3154_v28 = vrot.slane %v3124_v14, %v6694_v48  ;;  %v3173_v57 = vrot.slane %v3136_v11, %v6694_v48 }
0x1b64   :  { %v3155_v19 = vsel %vm859_vm8, %v3154_v28, %v3150_v16  ;;  %v3174_v41 = vsel %vm859_vm8, %v3173_v57, %v3169_v22 }
0x1b65   :  { %v3175_v13 = vsel %vm585_vm4, %v3174_v41, %v3155_v19 }
0x1b66   :  { %5572 = vmatmul.mubr.msk.f32.vlgmr.msra.gmra.mrb[10].mxu0 %vm142_vm0, %v3175_v13  ;;  %v3293_v13 = vrot.slane %v7297_v33, %v6619_v21 }
0x1b67   :  { %5831 = vmatpush3.bf16.msra.mxu0 %v6524_v46  ;;  %5582 = vmatprep.mubr.msk.f32.mxu0 %vm6217_vm3, %v6218_v60 }
0x1b68   :  { %5832 = vmatprep.subr.bf16.mxu0 %v7858_v0 }
0x1b6b   :  { %5834 = vmatpush3.bf16.msra.mxu0 %v6534_v56 }
0x1b6c   :  { %5841 = vmatprep.subr.bf16.mxu0 %v7858_v0 }
0x1c39   :  { %v3244_v27 = vpop.f32.mrb[10].mxu0 }
0x1c3a   :  { %v3249_v32 = vrot.slane %v3244_v27, 7  ;;  %3268 = vrot.lane.b32.xlu0 %v3244_v27, %s6216_s15  ;;  %v5573_v26 = vpop.f32.mrb[11].mxu0  ;;  %v3253_v39 = vadd.f32 %v3244_v27, %v6591_v8 }
0x1c3c   :  { %3266 = vrot.lane.b32.xlu1 %v3249_v32, %s6216_s15  ;;  %v3252_v17 = vadd.f32 %v3249_v32, %v6587_v30  ;;  %v5236_v5 = vmul.f32 -1.442695, %v3253_v39 }
0x1c3e   :  { %v5235_v58 = vmul.f32 -1.442695, %v3252_v17  ;;  %6095 = vpow2.f32 %v5236_v5 }
0x1c40   :  { %6097 = vpow2.f32 %v5235_v58  ;;  %v3289_v58 = vrot.slane %v7295_v55, %v6619_v21 }
0x1c48   :  { %v6096_v61 = vpop.eup %6095 }
0x1c49   :  { %v3261_v40 = vadd.f32 1.0, %v6096_v61  ;;  %v3631_v61 = vrot.slane %v7307_v38, %v6731_v2 }
0x1c4a   :  { %v6098_v59 = vpop.eup %6097 }
0x1c4b   :  { %v3260_v25 = vadd.f32 1.0, %v6098_v59  ;;  %6099 = vrcp.f32 %v3261_v40 }
0x1c4d   :  { %6101 = vrcp.f32 %v3260_v25 }
0x1c55   :  { %v6100_v63 = vpop.eup %6099 }
0x1c57   :  { %v6102_v52 = vpop.eup %6101 }
0x1cac   :  { %v3269_v51 = vpop.permute.xlu0 %3268 }
0x1cad   :  { %v3273_v4 = vmul.f32 %v6100_v63, %v3269_v51 }
0x1cae   :  { %v3267_v14 = vpop.permute.xlu1 %3266 }
0x1caf   :  { %v3272_v11 = vmul.f32 %v6102_v52, %v3267_v14  ;;  %3278 = vrot.lane.b32.xlu0 %v3273_v4, %s6213_s22 }
0x1cb1   :  { %3276 = vrot.lane.b32.xlu1 %v3272_v11, %s6213_s22 }
0x1d21   :  { %v3279_v35 = vpop.permute.xlu0 %3278 }
0x1d22   :  { %v3283_v15 = vadd.f32 %v3279_v35, %v6612_v7 }
0x1d23   :  { %v3277_v28 = vpop.permute.xlu1 %3276 }
0x1d24   :  { %6103 = vtanh.f32 %v3283_v15  ;;  %v3282_v57 = vadd.f32 %v3277_v28, %v6608_v3 }
0x1d26   :  { %6105 = vtanh.f32 %v3282_v57 }
0x1d2e   :  { %v6104_v16 = vpop.eup %6103 }
0x1d2f   :  { %v3319_v22 = vrot.slane %v6104_v16, %v6619_v21 }
0x1d30   :  { %v6106_v19 = vpop.eup %6105 }
0x1d31   :  { %3326 = vbcast.lane.b32.xlu0 %v3319_v22, 296  ;;  %3322 = vbcast.lane.b32.xlu1 %v3319_v22, 288  ;;  %v3299_v41 = vrot.slane %v6106_v19, %v6619_v21  ;;  %v3627_v21 = vrot.slane %v7302_v50, %v6731_v2 }
0x1d35   :  { %3330 = vbcast.lane.b32.xlu0 %v3319_v22, 304  ;;  %3302 = vbcast.lane.b32.xlu1 %v3299_v41, 288 }
0x1d39   :  { %3306 = vbcast.lane.b32.xlu0 %v3299_v41, 296  ;;  %3310 = vbcast.lane.b32.xlu1 %v3299_v41, 304 }
0x1d3d   :  { %3334 = vbcast.lane.b32.xlu0 %v3319_v22, 312  ;;  %3314 = vbcast.lane.b32.xlu1 %v3299_v41, 312 }
0x1da3   :  { %v3327_v27 = vpop.permute.xlu0 %3326  ;;  %v3323_v32 = vpop.permute.xlu1 %3322 }
0x1da4   :  { %v3349_v26 = vmul.f32 %v3327_v27, %v3293_v13  ;;  %v3348_v39 = vmul.f32 %v3323_v32, %v3293_v13 }
0x1da6   :  { %v3373_v17 = vadd.f32 %v7331_v24, %v3349_v26  ;;  %v3372_v5 = vadd.f32 %v7333_v9, %v3348_v39 }
0x1da7   :  { %v3331_v59 = vpop.permute.xlu0 %3330  ;;  %v3303_v40 = vpop.permute.xlu1 %3302 }
0x1da8   :  { %v3350_v25 = vmul.f32 %v3331_v59, %v3293_v13  ;;  %v3344_v63 = vmul.f32 %v3303_v40, %v3289_v58  ;;  %3400 = vperm.xlu0 %5933, %v3373_v17   ;;  %3397 = vperm.xlu1 %5934, %v3372_v5   ;;  %v7381_v51 = vmul.f32 %v3631_v61, %v3373_v17 }
0x1da9   :  { %v7383_v4 = vmul.f32 %v3631_v61, %v3372_v5 }
0x1daa   :  { %v3374_v24 = vadd.f32 %v7335_v36, %v3350_v25  ;;  %v3368_v9 = vadd.f32 %v7325_v47, %v3344_v63 }
0x1dab   :  { %v3307_v52 = vpop.permute.xlu0 %3306  ;;  %v3311_v14 = vpop.permute.xlu1 %3310 }
0x1dac   :  { %v3345_v11 = vmul.f32 %v3307_v52, %v3289_v58  ;;  %v3346_v35 = vmul.f32 %v3311_v14, %v3289_v58  ;;  %3403 = vperm.xlu0 %5933, %v3374_v24   ;;  %3385 = vperm.xlu1 %5934, %v3368_v9   ;;  %v7389_v15 = vmul.f32 %v3627_v21, %v3368_v9 }
0x1dad   :  { %v7391_v28 = vmul.f32 %v3631_v61, %v3374_v24 }
0x1dae   :  { %v3369_v57 = vadd.f32 %v7327_v12, %v3345_v11  ;;  %v3370_v16 = vadd.f32 %v7329_v20, %v3346_v35 }
0x1daf   :  { %v3335_v36 = vpop.permute.xlu0 %3334  ;;  %v3315_v22 = vpop.permute.xlu1 %3314 }
0x1db0   :  { %v3351_v47 = vmul.f32 %v3335_v36, %v3293_v13  ;;  %v3347_v19 = vmul.f32 %v3315_v22, %v3289_v58  ;;  %3388 = vperm.xlu0 %5933, %v3369_v57   ;;  %3391 = vperm.xlu1 %5934, %v3370_v16   ;;  %v7395_v41 = vmul.f32 %v3627_v21, %v3369_v57 }
0x1db1   :  { %v7397_v27 = vmul.f32 %v3627_v21, %v3370_v16 }
0x1db2   :  { %v3375_v32 = vadd.f32 %v7337_v34, %v3351_v47  ;;  %v3371_v26 = vadd.f32 %v7339_v18, %v3347_v19 }
0x1db4   :  { %3406 = vperm.xlu0 %5933, %v3375_v32   ;;  %3394 = vperm.xlu1 %5934, %v3371_v26   ;;  %v7401_v39 = vmul.f32 %v3631_v61, %v3375_v32  ;;  %v7403_v12 = vmul.f32 %v3627_v21, %v3371_v26 }
0x1e27   :  { %v3401_v20 = vpop.permute.xlu0 %3400  ;;  %v3398_v17 = vpop.permute.xlu1 %3397 }
0x1e28   :  { %v3434_v40 = vrot.slane %v3401_v20, %v6688_v42  ;;  %v3430_v25 = vrot.slane %v3398_v17, %v6601_v53 }
0x1e2a   :  { %v3435_v52 = vsel %vm845_vm6, %v3434_v40, %v3430_v25 }
0x1e2b   :  { %v3404_v13 = vpop.permute.xlu0 %3403  ;;  %v3386_v5 = vpop.permute.xlu1 %3385 }
0x1e2c   :  { %v3411_v34 = vrot.slane %v3386_v5, %v6601_v53  ;;  %v3439_v63 = vrot.slane %v3404_v13, %v6691_v45 }
0x1e2e   :  { %v3440_v35 = vsel %vm852_vm7, %v3439_v63, %v3435_v52 }
0x1e2f   :  { %v3389_v58 = vpop.permute.xlu0 %3388  ;;  %v3392_v59 = vpop.permute.xlu1 %3391 }
0x1e30   :  { %v3415_v18 = vrot.slane %v3389_v58, %v6688_v42  ;;  %v3420_v61 = vrot.slane %v3392_v59, %v6691_v45 }
0x1e32   :  { %v3416_v24 = vsel %vm845_vm6, %v3415_v18, %v3411_v34 }
0x1e33   :  { %v3407_v9 = vpop.permute.xlu0 %3406  ;;  %v3395_v21 = vpop.permute.xlu1 %3394  ;;  %v3421_v57 = vsel %vm852_vm7, %v3420_v61, %v3416_v24 }
0x1e34   :  { %v3444_v14 = vrot.slane %v3407_v9, %v6694_v48  ;;  %v3425_v11 = vrot.slane %v3395_v21, %v6694_v48 }
0x1e36   :  { %v3445_v16 = vsel %vm859_vm8, %v3444_v14, %v3440_v35  ;;  %v3426_v36 = vsel %vm859_vm8, %v3425_v11, %v3421_v57 }
0x1e37   :  { %v3446_v22 = vsel %vm585_vm4, %v3445_v16, %v3426_v36 }
0x1e38   :  { %5583 = vmatmul.mubr.msk.f32.vlgmr.msra.gmra.mrb[12].mxu0 %vm142_vm0, %v3446_v22  ;;  %v3561_v22 = vrot.slane %v7295_v55, %v6731_v2 }
0x1e39   :  { %5843 = vmatpush3.bf16.msra.mxu0 %v6524_v46  ;;  %5604 = vmatprep.mubr.msk.f32.mxu0 %vm6217_vm3, %v6218_v60 }
0x1e3a   :  { %5844 = vmatprep.subr.bf16.mxu0 %v7858_v0 }
0x1e3d   :  { %5846 = vmatpush3.bf16.msra.mxu0 %v6534_v56 }
0x1e3e   :  { %5853 = vmatprep.subr.bf16.mxu0 %v7858_v0 }
0x1f0b   :  { %v3515_v47 = vpop.f32.mrb[12].mxu0 }
0x1f0c   :  { %v3520_v19 = vrot.slane %v3515_v47, 6  ;;  %v3521_v32 = vrot.slane %v3515_v47, 7  ;;  %v5584_v26 = vpop.f32.mrb[13].mxu0 }
0x1f0e   :  { %3540 = vrot.lane.b32.xlu0 %v3521_v32, %s6216_s15  ;;  %3538 = vrot.lane.b32.xlu1 %v3520_v19, %s6216_s15  ;;  %v3524_v20 = vadd.f32 %v3520_v19, %v6587_v30  ;;  %v3525_v17 = vadd.f32 %v3521_v32, %v6591_v8 }
0x1f10   :  { %v5238_v13 = vmul.f32 -1.442695, %v3524_v20  ;;  %v5239_v5 = vmul.f32 -1.442695, %v3525_v17 }
0x1f12   :  { %6107 = vpow2.f32 %v5238_v13  ;;  %v3565_v13 = vrot.slane %v7297_v33, %v6731_v2 }
0x1f13   :  { %6109 = vpow2.f32 %v5239_v5  ;;  %v3899_v5 = vrot.slane %v7302_v50, %v6798_v23 }
0x1f1c   :  { %v6108_v58 = vpop.eup %6107 }
0x1f1d   :  { %v6110_v59 = vpop.eup %6109  ;;  %v3532_v40 = vadd.f32 1.0, %v6108_v58 }
0x1f1e   :  { %v3533_v25 = vadd.f32 1.0, %v6110_v59 }
0x1f1f   :  { %6111 = vrcp.f32 %v3532_v40 }
0x1f20   :  { %6113 = vrcp.f32 %v3533_v25 }
0x1f29   :  { %v6112_v34 = vpop.eup %6111 }
0x1f2a   :  { %v6114_v18 = vpop.eup %6113 }
0x1f80   :  { %v3541_v63 = vpop.permute.xlu0 %3540  ;;  %v3539_v61 = vpop.permute.xlu1 %3538 }
0x1f81   :  { %v3545_v24 = vmul.f32 %v6114_v18, %v3541_v63  ;;  %v3544_v9 = vmul.f32 %v6112_v34, %v3539_v61 }
0x1f83   :  { %3550 = vrot.lane.b32.xlu0 %v3545_v24, %s6213_s22  ;;  %3548 = vrot.lane.b32.xlu1 %v3544_v9, %s6213_s22 }
0x1ff5   :  { %v3551_v21 = vpop.permute.xlu0 %3550  ;;  %v3549_v52 = vpop.permute.xlu1 %3548 }
0x1ff6   :  { %v3554_v14 = vadd.f32 %v3549_v52, %v6608_v3  ;;  %v3555_v11 = vadd.f32 %v3551_v21, %v6612_v7 }
0x1ff8   :  { %6115 = vtanh.f32 %v3554_v14 }
0x1ff9   :  { %6117 = vtanh.f32 %v3555_v11 }
0x2002   :  { %v6116_v35 = vpop.eup %6115 }
0x2003   :  { %v3571_v57 = vrot.slane %v6116_v35, %v6731_v2  ;;  %v6118_v16 = vpop.eup %6117 }
0x2004   :  { %v3591_v36 = vrot.slane %v6118_v16, %v6731_v2  ;;  %v3903_v2 = vrot.slane %v7307_v38, %v6798_v23 }
0x2005   :  { %3578 = vbcast.lane.b32.xlu0 %v3571_v57, 296  ;;  %3574 = vbcast.lane.b32.xlu1 %v3571_v57, 288 }
0x2009   :  { %3598 = vbcast.lane.b32.xlu0 %v3591_v36, 296  ;;  %3594 = vbcast.lane.b32.xlu1 %v3591_v36, 288 }
0x200d   :  { %3602 = vbcast.lane.b32.xlu0 %v3591_v36, 304  ;;  %3582 = vbcast.lane.b32.xlu1 %v3571_v57, 304 }
0x2011   :  { %3606 = vbcast.lane.b32.xlu0 %v3591_v36, 312  ;;  %3586 = vbcast.lane.b32.xlu1 %v3571_v57, 312 }
0x2077   :  { %v3579_v47 = vpop.permute.xlu0 %3578  ;;  %v3575_v19 = vpop.permute.xlu1 %3574 }
0x2078   :  { %v3617_v32 = vmul.f32 %v3579_v47, %v3561_v22  ;;  %v3616_v26 = vmul.f32 %v3575_v19, %v3561_v22 }
0x207a   :  { %v3641_v20 = vadd.f32 %v7395_v41, %v3617_v32  ;;  %v3640_v17 = vadd.f32 %v7389_v15, %v3616_v26 }
0x207b   :  { %v3599_v58 = vpop.permute.xlu0 %3598  ;;  %v3595_v59 = vpop.permute.xlu1 %3594 }
0x207c   :  { %v3621_v40 = vmul.f32 %v3599_v58, %v3565_v13  ;;  %v3620_v25 = vmul.f32 %v3595_v59, %v3565_v13  ;;  %3660 = vperm.xlu0 %5933, %v3641_v20   ;;  %3657 = vperm.xlu1 %5934, %v3640_v17   ;;  %v7445_v34 = vmul.f32 %v3899_v5, %v3641_v20 }
0x207d   :  { %v7447_v18 = vmul.f32 %v3899_v5, %v3640_v17 }
0x207e   :  { %v3645_v41 = vadd.f32 %v7381_v51, %v3621_v40  ;;  %v3644_v15 = vadd.f32 %v7383_v4, %v3620_v25 }
0x207f   :  { %v3603_v63 = vpop.permute.xlu0 %3602  ;;  %v3583_v61 = vpop.permute.xlu1 %3582 }
0x2080   :  { %v3622_v24 = vmul.f32 %v3603_v63, %v3565_v13  ;;  %v3618_v9 = vmul.f32 %v3583_v61, %v3561_v22  ;;  %3672 = vperm.xlu0 %5933, %v3645_v41   ;;  %3669 = vperm.xlu1 %5934, %v3644_v15   ;;  %v7453_v21 = vmul.f32 %v3903_v2, %v3645_v41 }
0x2081   :  { %v7455_v52 = vmul.f32 %v3903_v2, %v3644_v15 }
0x2082   :  { %v3646_v14 = vadd.f32 %v7391_v28, %v3622_v24  ;;  %v3642_v11 = vadd.f32 %v7397_v27, %v3618_v9 }
0x2083   :  { %v3607_v51 = vpop.permute.xlu0 %3606  ;;  %v3587_v35 = vpop.permute.xlu1 %3586 }
0x2084   :  { %v3623_v4 = vmul.f32 %v3607_v51, %v3565_v13  ;;  %v3619_v57 = vmul.f32 %v3587_v35, %v3561_v22  ;;  %3675 = vperm.xlu0 %5933, %v3646_v14   ;;  %3663 = vperm.xlu1 %5934, %v3642_v11   ;;  %v7459_v16 = vmul.f32 %v3903_v2, %v3646_v14 }
0x2085   :  { %v7461_v36 = vmul.f32 %v3899_v5, %v3642_v11 }
0x2086   :  { %v3647_v47 = vadd.f32 %v7401_v39, %v3623_v4  ;;  %v3643_v19 = vadd.f32 %v7403_v12, %v3619_v57 }
0x2088   :  { %3678 = vperm.xlu0 %5933, %v3647_v47   ;;  %3666 = vperm.xlu1 %5934, %v3643_v19   ;;  %v7465_v32 = vmul.f32 %v3903_v2, %v3647_v47  ;;  %v7467_v28 = vmul.f32 %v3899_v5, %v3643_v19 }
0x20fb   :  { %v3661_v27 = vpop.permute.xlu0 %3660  ;;  %v3658_v26 = vpop.permute.xlu1 %3657 }
0x20fc   :  { %v3687_v58 = vrot.slane %v3661_v27, %v6688_v42  ;;  %v3683_v59 = vrot.slane %v3658_v26, %v6601_v53 }
0x20fe   :  { %v3688_v15 = vsel %vm845_vm6, %v3687_v58, %v3683_v59 }
0x20ff   :  { %v3673_v20 = vpop.permute.xlu0 %3672  ;;  %v3670_v22 = vpop.permute.xlu1 %3669 }
0x2100   :  { %v3706_v39 = vrot.slane %v3673_v20, %v6688_v42  ;;  %v3702_v12 = vrot.slane %v3670_v22, %v6601_v53 }
0x2102   :  { %v3707_v2 = vsel %vm845_vm6, %v3706_v39, %v3702_v12 }
0x2103   :  { %v3676_v17 = vpop.permute.xlu0 %3675  ;;  %v3664_v13 = vpop.permute.xlu1 %3663 }
0x2104   :  { %v3711_v40 = vrot.slane %v3676_v17, %v6691_v45  ;;  %v3692_v25 = vrot.slane %v3664_v13, %v6691_v45 }
0x2106   :  { %v3712_v24 = vsel %vm852_vm7, %v3711_v40, %v3707_v2  ;;  %v3693_v9 = vsel %vm852_vm7, %v3692_v25, %v3688_v15 }
0x2107   :  { %v3679_v5 = vpop.permute.xlu0 %3678  ;;  %v3667_v41 = vpop.permute.xlu1 %3666 }
0x2108   :  { %v3716_v63 = vrot.slane %v3679_v5, %v6694_v48  ;;  %v3697_v61 = vrot.slane %v3667_v41, %v6694_v48 }
0x210a   :  { %v3717_v14 = vsel %vm859_vm8, %v3716_v63, %v3712_v24  ;;  %v3698_v11 = vsel %vm859_vm8, %v3697_v61, %v3693_v9 }
0x210b   :  { %v3718_v51 = vsel %vm585_vm4, %v3717_v14, %v3698_v11  ;;  %v3833_v11 = vrot.slane %v7295_v55, %v6798_v23 }
0x210c   :  { %5594 = vmatmul.mubr.msk.f32.vlgmr.msra.gmra.mrb[18].mxu1 %vm142_vm0, %v3718_v51 }
0x210d   :  { %5849 = vmatpush3.bf16.msra.mxu1 %v6524_v46  ;;  %5615 = vmatprep.mubr.msk.f32.mxu1 %vm6217_vm3, %v6218_v60 }
0x210e   :  { %5850 = vmatprep.subr.bf16.mxu1 %v7858_v0 }
0x2111   :  { %5852 = vmatpush3.bf16.msra.mxu1 %v6534_v56 }
0x2112   :  { %5859 = vmatprep.subr.bf16.mxu1 %v7858_v0 }
0x21df   :  { %v3787_v35 = vpop.f32.mrb[18].mxu1 }
0x21e0   :  { %v3792_v4 = vrot.slane %v3787_v35, 5  ;;  %v3793_v57 = vrot.slane %v3787_v35, 6  ;;  %v5595_v47 = vpop.f32.mrb[19].mxu1 }
0x21e2   :  { %3812 = vrot.lane.b32.xlu0 %v3793_v57, %s6216_s15  ;;  %3810 = vrot.lane.b32.xlu1 %v3792_v4, %s6216_s15  ;;  %v3796_v19 = vadd.f32 %v3792_v4, %v6587_v30  ;;  %v3797_v27 = vadd.f32 %v3793_v57, %v6591_v8 }
0x21e4   :  { %v5241_v26 = vmul.f32 -1.442695, %v3796_v19  ;;  %v5242_v20 = vmul.f32 -1.442695, %v3797_v27  ;;  %v3837_v27 = vrot.slane %v7297_v33, %v6798_v23 }
0x21e6   :  { %6119 = vpow2.f32 %v5241_v26  ;;  %v4171_v26 = vrot.slane %v7302_v50, %v6865_v29 }
0x21e7   :  { %6121 = vpow2.f32 %v5242_v20 }
0x21f0   :  { %v6120_v22 = vpop.eup %6119 }
0x21f1   :  { %v6122_v17 = vpop.eup %6121  ;;  %v3804_v13 = vadd.f32 1.0, %v6120_v22 }
0x21f2   :  { %v3805_v58 = vadd.f32 1.0, %v6122_v17 }
0x21f3   :  { %6123 = vrcp.f32 %v3804_v13 }
0x21f4   :  { %6125 = vrcp.f32 %v3805_v58 }
0x21fd   :  { %v6124_v59 = vpop.eup %6123 }
0x21fe   :  { %v6126_v39 = vpop.eup %6125 }
0x2254   :  { %v3813_v12 = vpop.permute.xlu0 %3812  ;;  %v3811_v40 = vpop.permute.xlu1 %3810 }
0x2255   :  { %v3817_v25 = vmul.f32 %v6126_v39, %v3813_v12  ;;  %v3816_v5 = vmul.f32 %v6124_v59, %v3811_v40 }
0x2257   :  { %3822 = vrot.lane.b32.xlu0 %v3817_v25, %s6213_s22  ;;  %3820 = vrot.lane.b32.xlu1 %v3816_v5, %s6213_s22 }
0x22c9   :  { %v3823_v41 = vpop.permute.xlu0 %3822  ;;  %v3821_v15 = vpop.permute.xlu1 %3820 }
0x22ca   :  { %v3826_v2 = vadd.f32 %v3821_v15, %v6608_v3  ;;  %v3827_v63 = vadd.f32 %v3823_v41, %v6612_v7 }
0x22cc   :  { %6127 = vtanh.f32 %v3826_v2 }
0x22cd   :  { %6129 = vtanh.f32 %v3827_v63 }
0x22d6   :  { %v6128_v61 = vpop.eup %6127 }
0x22d7   :  { %v3843_v24 = vrot.slane %v6128_v61, %v6798_v23  ;;  %v6130_v9 = vpop.eup %6129 }
0x22d8   :  { %v3863_v14 = vrot.slane %v6130_v9, %v6798_v23  ;;  %v4175_v23 = vrot.slane %v7307_v38, %v6865_v29 }
0x22d9   :  { %3850 = vbcast.lane.b32.xlu0 %v3843_v24, 296  ;;  %3846 = vbcast.lane.b32.xlu1 %v3843_v24, 288 }
0x22dd   :  { %3870 = vbcast.lane.b32.xlu0 %v3863_v14, 296  ;;  %3866 = vbcast.lane.b32.xlu1 %v3863_v14, 288 }
0x22e1   :  { %3874 = vbcast.lane.b32.xlu0 %v3863_v14, 304  ;;  %3854 = vbcast.lane.b32.xlu1 %v3843_v24, 304 }
0x22e5   :  { %3878 = vbcast.lane.b32.xlu0 %v3863_v14, 312  ;;  %3858 = vbcast.lane.b32.xlu1 %v3843_v24, 312 }
0x234b   :  { %v3851_v51 = vpop.permute.xlu0 %3850  ;;  %v3847_v35 = vpop.permute.xlu1 %3846 }
0x234c   :  { %v3889_v4 = vmul.f32 %v3851_v51, %v3833_v11  ;;  %v3888_v57 = vmul.f32 %v3847_v35, %v3833_v11 }
0x234e   :  { %v3913_v47 = vadd.f32 %v7445_v34, %v3889_v4  ;;  %v3912_v19 = vadd.f32 %v7447_v18, %v3888_v57 }
0x234f   :  { %v3871_v20 = vpop.permute.xlu0 %3870  ;;  %v3867_v22 = vpop.permute.xlu1 %3866 }
0x2350   :  { %v3893_v17 = vmul.f32 %v3871_v20, %v3837_v27  ;;  %v3892_v13 = vmul.f32 %v3867_v22, %v3837_v27  ;;  %3932 = vperm.xlu0 %5933, %v3913_v47   ;;  %3929 = vperm.xlu1 %5934, %v3912_v19   ;;  %v7509_v58 = vmul.f32 %v4171_v26, %v3913_v47 }
0x2351   :  { %v7511_v59 = vmul.f32 %v4171_v26, %v3912_v19 }
0x2352   :  { %v3917_v34 = vadd.f32 %v7453_v21, %v3893_v17  ;;  %v3916_v18 = vadd.f32 %v7455_v52, %v3892_v13 }
0x2353   :  { %v3875_v39 = vpop.permute.xlu0 %3874  ;;  %v3855_v12 = vpop.permute.xlu1 %3854 }
0x2354   :  { %v3894_v40 = vmul.f32 %v3875_v39, %v3837_v27  ;;  %v3890_v25 = vmul.f32 %v3855_v12, %v3833_v11  ;;  %3944 = vperm.xlu0 %5933, %v3917_v34   ;;  %3941 = vperm.xlu1 %5934, %v3916_v18   ;;  %v7517_v5 = vmul.f32 %v4175_v23, %v3917_v34 }
0x2355   :  { %v7519_v41 = vmul.f32 %v4175_v23, %v3916_v18 }
0x2356   :  { %v3918_v15 = vadd.f32 %v7459_v16, %v3894_v40  ;;  %v3914_v2 = vadd.f32 %v7461_v36, %v3890_v25 }
0x2357   :  { %v3879_v21 = vpop.permute.xlu0 %3878  ;;  %v3859_v63 = vpop.permute.xlu1 %3858 }
0x2358   :  { %v3895_v52 = vmul.f32 %v3879_v21, %v3837_v27  ;;  %v3891_v61 = vmul.f32 %v3859_v63, %v3833_v11  ;;  %3947 = vperm.xlu0 %5933, %v3918_v15   ;;  %3935 = vperm.xlu1 %5934, %v3914_v2   ;;  %v7523_v24 = vmul.f32 %v4175_v23, %v3918_v15 }
0x2359   :  { %v7525_v9 = vmul.f32 %v4171_v26, %v3914_v2 }
0x235a   :  { %v3919_v14 = vadd.f32 %v7465_v32, %v3895_v52  ;;  %v3915_v51 = vadd.f32 %v7467_v28, %v3891_v61 }
0x235c   :  { %3950 = vperm.xlu0 %5933, %v3919_v14   ;;  %3938 = vperm.xlu1 %5934, %v3915_v51   ;;  %v7529_v35 = vmul.f32 %v4175_v23, %v3919_v14  ;;  %v7531_v16 = vmul.f32 %v4171_v26, %v3915_v51 }
0x23cf   :  { %v3933_v36 = vpop.permute.xlu0 %3932  ;;  %v3930_v4 = vpop.permute.xlu1 %3929 }
0x23d0   :  { %v3959_v27 = vrot.slane %v3933_v36, %v6688_v42  ;;  %v3955_v20 = vrot.slane %v3930_v4, %v6601_v53 }
0x23d2   :  { %v3960_v34 = vsel %vm845_vm6, %v3959_v27, %v3955_v20 }
0x23d3   :  { %v3945_v57 = vpop.permute.xlu0 %3944  ;;  %v3942_v11 = vpop.permute.xlu1 %3941 }
0x23d4   :  { %v3978_v32 = vrot.slane %v3945_v57, %v6688_v42  ;;  %v3974_v28 = vrot.slane %v3942_v11, %v6601_v53 }
0x23d6   :  { %v3979_v18 = vsel %vm845_vm6, %v3978_v32, %v3974_v28 }
0x23d7   :  { %v3948_v47 = vpop.permute.xlu0 %3947  ;;  %v3936_v19 = vpop.permute.xlu1 %3935 }
0x23d8   :  { %v3983_v22 = vrot.slane %v3948_v47, %v6691_v45  ;;  %v3964_v17 = vrot.slane %v3936_v19, %v6691_v45 }
0x23da   :  { %v3984_v12 = vsel %vm852_vm7, %v3983_v22, %v3979_v18  ;;  %v3965_v40 = vsel %vm852_vm7, %v3964_v17, %v3960_v34 }
0x23db   :  { %v3951_v26 = vpop.permute.xlu0 %3950  ;;  %v3939_v13 = vpop.permute.xlu1 %3938 }
0x23dc   :  { %v3988_v23 = vrot.slane %v3951_v26, %v6694_v48  ;;  %v3969_v39 = vrot.slane %v3939_v13, %v6694_v48 }
0x23de   :  { %v3989_v25 = vsel %vm859_vm8, %v3988_v23, %v3984_v12  ;;  %v3970_v15 = vsel %vm859_vm8, %v3969_v39, %v3965_v40 }
0x23df   :  { %v3990_v2 = vsel %vm585_vm4, %v3989_v25, %v3970_v15  ;;  %v4105_v25 = vrot.slane %v7295_v55, %v6865_v29 }
0x23e0   :  { %5605 = vmatmul.mubr.msk.f32.vlgmr.msra.gmra.mrb[14].mxu0 %vm142_vm0, %v3990_v2 }
0x23e1   :  { %5855 = vmatpush3.bf16.msra.mxu0 %v6524_v46  ;;  %5626 = vmatprep.mubr.msk.f32.mxu0 %vm6217_vm3, %v6218_v60 }
0x23e2   :  { %5856 = vmatprep.subr.bf16.mxu0 %v7858_v0 }
0x23e5   :  { %5858 = vmatpush3.bf16.msra.mxu0 %v6534_v56 }
0x23e6   :  { %5865 = vmatprep.subr.bf16.mxu0 %v7858_v0 }
0x24b3   :  { %v4059_v21 = vpop.f32.mrb[14].mxu0 }
0x24b4   :  { %v4064_v63 = vrot.slane %v4059_v21, 4  ;;  %v4065_v52 = vrot.slane %v4059_v21, 5  ;;  %v5606_v61 = vpop.f32.mrb[15].mxu0 }
0x24b6   :  { %4084 = vrot.lane.b32.xlu0 %v4065_v52, %s6216_s15  ;;  %4082 = vrot.lane.b32.xlu1 %v4064_v63, %s6216_s15  ;;  %v4068_v14 = vadd.f32 %v4064_v63, %v6587_v30  ;;  %v4069_v51 = vadd.f32 %v4065_v52, %v6591_v8 }
0x24b8   :  { %v5244_v36 = vmul.f32 -1.442695, %v4068_v14  ;;  %v5245_v4 = vmul.f32 -1.442695, %v4069_v51  ;;  %v4109_v14 = vrot.slane %v7297_v33, %v6865_v29  ;;  %v4443_v51 = vrot.slane %v7302_v50, %v6932_v6 }
0x24ba   :  { %6131 = vpow2.f32 %v5244_v36 }
0x24bb   :  { %6133 = vpow2.f32 %v5245_v4 }
0x24c4   :  { %v6132_v57 = vpop.eup %6131 }
0x24c5   :  { %v6134_v11 = vpop.eup %6133  ;;  %v4076_v47 = vadd.f32 1.0, %v6132_v57 }
0x24c6   :  { %v4077_v19 = vadd.f32 1.0, %v6134_v11 }
0x24c7   :  { %6135 = vrcp.f32 %v4076_v47 }
0x24c8   :  { %6137 = vrcp.f32 %v4077_v19 }
0x24d1   :  { %v6136_v27 = vpop.eup %6135 }
0x24d2   :  { %v6138_v20 = vpop.eup %6137 }
0x2528   :  { %v4085_v32 = vpop.permute.xlu0 %4084  ;;  %v4083_v28 = vpop.permute.xlu1 %4082 }
0x2529   :  { %v4089_v22 = vmul.f32 %v6138_v20, %v4085_v32  ;;  %v4088_v17 = vmul.f32 %v6136_v27, %v4083_v28 }
0x252b   :  { %4094 = vrot.lane.b32.xlu0 %v4089_v22, %s6213_s22  ;;  %4092 = vrot.lane.b32.xlu1 %v4088_v17, %s6213_s22 }
0x259d   :  { %v4095_v26 = vpop.permute.xlu0 %4094  ;;  %v4093_v13 = vpop.permute.xlu1 %4092 }
0x259e   :  { %v4098_v34 = vadd.f32 %v4093_v13, %v6608_v3  ;;  %v4099_v18 = vadd.f32 %v4095_v26, %v6612_v7 }
0x25a0   :  { %6139 = vtanh.f32 %v4098_v34 }
0x25a1   :  { %6141 = vtanh.f32 %v4099_v18 }
0x25aa   :  { %v6140_v23 = vpop.eup %6139 }
0x25ab   :  { %v4115_v39 = vrot.slane %v6140_v23, %v6865_v29  ;;  %v6142_v12 = vpop.eup %6141 }
0x25ac   :  { %v4135_v40 = vrot.slane %v6142_v12, %v6865_v29  ;;  %v4447_v29 = vrot.slane %v7307_v38, %v6932_v6 }
0x25ad   :  { %4122 = vbcast.lane.b32.xlu0 %v4115_v39, 296  ;;  %4118 = vbcast.lane.b32.xlu1 %v4115_v39, 288 }
0x25b1   :  { %4142 = vbcast.lane.b32.xlu0 %v4135_v40, 296  ;;  %4138 = vbcast.lane.b32.xlu1 %v4135_v40, 288 }
0x25b5   :  { %4146 = vbcast.lane.b32.xlu0 %v4135_v40, 304  ;;  %4126 = vbcast.lane.b32.xlu1 %v4115_v39, 304 }
0x25b9   :  { %4150 = vbcast.lane.b32.xlu0 %v4135_v40, 312  ;;  %4130 = vbcast.lane.b32.xlu1 %v4115_v39, 312 }
0x261f   :  { %v4123_v15 = vpop.permute.xlu0 %4122  ;;  %v4119_v2 = vpop.permute.xlu1 %4118 }
0x2620   :  { %v4161_v21 = vmul.f32 %v4123_v15, %v4105_v25  ;;  %v4160_v63 = vmul.f32 %v4119_v2, %v4105_v25 }
0x2622   :  { %v4185_v52 = vadd.f32 %v7509_v58, %v4161_v21  ;;  %v4184_v61 = vadd.f32 %v7511_v59, %v4160_v63 }
0x2623   :  { %v4143_v36 = vpop.permute.xlu0 %4142  ;;  %v4139_v4 = vpop.permute.xlu1 %4138 }
0x2624   :  { %v4165_v57 = vmul.f32 %v4143_v36, %v4109_v14  ;;  %v4164_v11 = vmul.f32 %v4139_v4, %v4109_v14  ;;  %4204 = vperm.xlu0 %5933, %v4185_v52   ;;  %4201 = vperm.xlu1 %5934, %v4184_v61   ;;  %v7573_v47 = vmul.f32 %v4443_v51, %v4185_v52 }
0x2625   :  { %v7575_v19 = vmul.f32 %v4443_v51, %v4184_v61 }
0x2626   :  { %v4189_v58 = vadd.f32 %v7517_v5, %v4165_v57  ;;  %v4188_v59 = vadd.f32 %v7519_v41, %v4164_v11 }
0x2627   :  { %v4147_v27 = vpop.permute.xlu0 %4146  ;;  %v4127_v20 = vpop.permute.xlu1 %4126 }
0x2628   :  { %v4166_v32 = vmul.f32 %v4147_v27, %v4109_v14  ;;  %v4162_v28 = vmul.f32 %v4127_v20, %v4105_v25  ;;  %4216 = vperm.xlu0 %5933, %v4189_v58   ;;  %4213 = vperm.xlu1 %5934, %v4188_v59   ;;  %v7581_v22 = vmul.f32 %v4447_v29, %v4189_v58 }
0x2629   :  { %v7583_v17 = vmul.f32 %v4447_v29, %v4188_v59 }
0x262a   :  { %v4190_v26 = vadd.f32 %v7523_v24, %v4166_v32  ;;  %v4186_v13 = vadd.f32 %v7525_v9, %v4162_v28 }
0x262b   :  { %v4151_v5 = vpop.permute.xlu0 %4150  ;;  %v4131_v34 = vpop.permute.xlu1 %4130 }
0x262c   :  { %v4167_v41 = vmul.f32 %v4151_v5, %v4109_v14  ;;  %v4163_v18 = vmul.f32 %v4131_v34, %v4105_v25  ;;  %4219 = vperm.xlu0 %5933, %v4190_v26   ;;  %4207 = vperm.xlu1 %5934, %v4186_v13   ;;  %v7587_v23 = vmul.f32 %v4447_v29, %v4190_v26 }
0x262d   :  { %v7589_v39 = vmul.f32 %v4443_v51, %v4186_v13 }
0x262e   :  { %v4191_v12 = vadd.f32 %v7529_v35, %v4167_v41  ;;  %v4187_v40 = vadd.f32 %v7531_v16, %v4163_v18 }
0x2630   :  { %4222 = vperm.xlu0 %5933, %v4191_v12   ;;  %4210 = vperm.xlu1 %5934, %v4187_v40   ;;  %v7593_v15 = vmul.f32 %v4447_v29, %v4191_v12  ;;  %v7595_v24 = vmul.f32 %v4443_v51, %v4187_v40 }
0x26a3   :  { %v4205_v9 = vpop.permute.xlu0 %4204  ;;  %v4202_v2 = vpop.permute.xlu1 %4201 }
0x26a4   :  { %v4231_v61 = vrot.slane %v4205_v9, %v6688_v42  ;;  %v4227_v14 = vrot.slane %v4202_v2, %v6601_v53 }
0x26a6   :  { %v4232_v11 = vsel %vm845_vm6, %v4231_v61, %v4227_v14 }
0x26a7   :  { %v4217_v21 = vpop.permute.xlu0 %4216  ;;  %v4214_v25 = vpop.permute.xlu1 %4213 }
0x26a8   :  { %v4250_v35 = vrot.slane %v4217_v21, %v6688_v42  ;;  %v4246_v16 = vrot.slane %v4214_v25, %v6601_v53 }
0x26aa   :  { %v4251_v58 = vsel %vm845_vm6, %v4250_v35, %v4246_v16 }
0x26ab   :  { %v4220_v63 = vpop.permute.xlu0 %4219  ;;  %v4208_v52 = vpop.permute.xlu1 %4207 }
0x26ac   :  { %v4255_v36 = vrot.slane %v4220_v63, %v6691_v45  ;;  %v4236_v4 = vrot.slane %v4208_v52, %v6691_v45 }
0x26ae   :  { %v4256_v27 = vsel %vm852_vm7, %v4255_v36, %v4251_v58  ;;  %v4237_v20 = vsel %vm852_vm7, %v4236_v4, %v4232_v11 }
0x26af   :  { %v4223_v51 = vpop.permute.xlu0 %4222  ;;  %v4211_v57 = vpop.permute.xlu1 %4210 }
0x26b0   :  { %v4260_v59 = vrot.slane %v4223_v51, %v6694_v48  ;;  %v4241_v29 = vrot.slane %v4211_v57, %v6694_v48 }
0x26b2   :  { %v4261_v32 = vsel %vm859_vm8, %v4260_v59, %v4256_v27  ;;  %v4242_v28 = vsel %vm859_vm8, %v4241_v29, %v4237_v20  ;;  %v4377_v29 = vrot.slane %v7295_v55, %v6932_v6 }
0x26b3   :  { %v4262_v26 = vsel %vm585_vm4, %v4261_v32, %v4242_v28 }
0x26b4   :  { %5616 = vmatmul.mubr.msk.f32.vlgmr.msra.gmra.mrb[20].mxu1 %vm142_vm0, %v4262_v26 }
0x26b5   :  { %5861 = vmatpush3.bf16.msra.mxu1 %v6524_v46  ;;  %5637 = vmatprep.mubr.msk.f32.mxu1 %vm6217_vm3, %v6218_v60 }
0x26b6   :  { %5862 = vmatprep.subr.bf16.mxu1 %v7858_v0 }
0x26b9   :  { %5864 = vmatpush3.bf16.msra.mxu1 %v6534_v56 }
0x2787   :  { %v4331_v13 = vpop.f32.mrb[20].mxu1 }
0x2788   :  { %v4336_v5 = vrot.slane %v4331_v13, 3  ;;  %v4337_v34 = vrot.slane %v4331_v13, 4  ;;  %v5617_v41 = vpop.f32.mrb[21].mxu1 }
0x278a   :  { %4356 = vrot.lane.b32.xlu0 %v4337_v34, %s6216_s15  ;;  %4354 = vrot.lane.b32.xlu1 %v4336_v5, %s6216_s15  ;;  %v4340_v18 = vadd.f32 %v4336_v5, %v6587_v30  ;;  %v4341_v12 = vadd.f32 %v4337_v34, %v6591_v8  ;;  %v4381_v5 = vrot.slane %v7297_v33, %v6932_v6 }
0x278b   :  { %v4715_v34 = vrot.slane %v7302_v50, %v6999_v10 }
0x278c   :  { %v5247_v46 = vmul.f32 -1.442695, %v4340_v18  ;;  %v5248_v40 = vmul.f32 -1.442695, %v4341_v12 }
0x278e   :  { %6143 = vpow2.f32 %v5247_v46 }
0x278f   :  { %6145 = vpow2.f32 %v5248_v40 }
0x2798   :  { %v6144_v9 = vpop.eup %6143 }
0x2799   :  { %v6146_v2 = vpop.eup %6145  ;;  %v4348_v21 = vadd.f32 1.0, %v6144_v9 }
0x279a   :  { %v4349_v56 = vadd.f32 1.0, %v6146_v2 }
0x279b   :  { %6147 = vrcp.f32 %v4348_v21 }
0x279c   :  { %6149 = vrcp.f32 %v4349_v56 }
0x27a5   :  { %v6148_v25 = vpop.eup %6147 }
0x27a6   :  { %v6150_v63 = vpop.eup %6149 }
0x27fc   :  { %v4357_v52 = vpop.permute.xlu0 %4356  ;;  %v4355_v61 = vpop.permute.xlu1 %4354 }
0x27fd   :  { %v4361_v14 = vmul.f32 %v6150_v63, %v4357_v52  ;;  %v4360_v35 = vmul.f32 %v6148_v25, %v4355_v61 }
0x27ff   :  { %4366 = vrot.lane.b32.xlu0 %v4361_v14, %s6213_s22  ;;  %4364 = vrot.lane.b32.xlu1 %v4360_v35, %s6213_s22 }
0x2871   :  { %v4367_v16 = vpop.permute.xlu0 %4366  ;;  %v4365_v36 = vpop.permute.xlu1 %4364 }
0x2872   :  { %v4370_v4 = vadd.f32 %v4365_v36, %v6608_v3  ;;  %v4371_v51 = vadd.f32 %v4367_v16, %v6612_v7 }
0x2874   :  { %6151 = vtanh.f32 %v4370_v4 }
0x2875   :  { %6153 = vtanh.f32 %v4371_v51 }
0x287e   :  { %v6152_v57 = vpop.eup %6151 }
0x287f   :  { %v4387_v11 = vrot.slane %v6152_v57, %v6932_v6  ;;  %v6154_v58 = vpop.eup %6153 }
0x2880   :  { %v4407_v59 = vrot.slane %v6154_v58, %v6932_v6  ;;  %v4719_v6 = vrot.slane %v7307_v38, %v6999_v10 }
0x2881   :  { %4394 = vbcast.lane.b32.xlu0 %v4387_v11, 296  ;;  %4390 = vbcast.lane.b32.xlu1 %v4387_v11, 288 }
0x2885   :  { %4414 = vbcast.lane.b32.xlu0 %v4407_v59, 296  ;;  %4410 = vbcast.lane.b32.xlu1 %v4407_v59, 288 }
0x2889   :  { %4418 = vbcast.lane.b32.xlu0 %v4407_v59, 304  ;;  %4398 = vbcast.lane.b32.xlu1 %v4387_v11, 304 }
0x288d   :  { %4422 = vbcast.lane.b32.xlu0 %v4407_v59, 312  ;;  %4402 = vbcast.lane.b32.xlu1 %v4387_v11, 312 }
0x28f3   :  { %v4395_v27 = vpop.permute.xlu0 %4394  ;;  %v4391_v20 = vpop.permute.xlu1 %4390 }
0x28f4   :  { %v4433_v32 = vmul.f32 %v4395_v27, %v4377_v29  ;;  %v4432_v28 = vmul.f32 %v4391_v20, %v4377_v29 }
0x28f6   :  { %v4457_v26 = vadd.f32 %v7573_v47, %v4433_v32  ;;  %v4456_v13 = vadd.f32 %v7575_v19, %v4432_v28 }
0x28f7   :  { %v4415_v41 = vpop.permute.xlu0 %4414  ;;  %v4411_v18 = vpop.permute.xlu1 %4410 }
0x28f8   :  { %v4437_v12 = vmul.f32 %v4415_v41, %v4381_v5  ;;  %v4436_v46 = vmul.f32 %v4411_v18, %v4381_v5  ;;  %4476 = vperm.xlu0 %5933, %v4457_v26   ;;  %4473 = vperm.xlu1 %5934, %v4456_v13   ;;  %v7636_v40 = vmul.f32 %v4715_v34, %v4457_v26 }
0x28f9   :  { %v7638_v9 = vmul.f32 %v4715_v34, %v4456_v13 }
0x28fa   :  { %v4461_v47 = vadd.f32 %v7581_v22, %v4437_v12  ;;  %v4460_v19 = vadd.f32 %v7583_v17, %v4436_v46 }
0x28fb   :  { %v4419_v2 = vpop.permute.xlu0 %4418  ;;  %v4399_v21 = vpop.permute.xlu1 %4398 }
0x28fc   :  { %v4438_v56 = vmul.f32 %v4419_v2, %v4381_v5  ;;  %v4434_v25 = vmul.f32 %v4399_v21, %v4377_v29  ;;  %4488 = vperm.xlu0 %5933, %v4461_v47   ;;  %4485 = vperm.xlu1 %5934, %v4460_v19   ;;  %v7644_v63 = vmul.f32 %v4719_v6, %v4461_v47 }
0x28fd   :  { %v7646_v52 = vmul.f32 %v4719_v6, %v4460_v19 }
0x28fe   :  { %v4462_v61 = vadd.f32 %v7587_v23, %v4438_v56  ;;  %v4458_v14 = vadd.f32 %v7589_v39, %v4434_v25 }
0x28ff   :  { %v4423_v22 = vpop.permute.xlu0 %4422  ;;  %v4403_v35 = vpop.permute.xlu1 %4402 }
0x2900   :  { %v4439_v17 = vmul.f32 %v4423_v22, %v4381_v5  ;;  %v4435_v16 = vmul.f32 %v4403_v35, %v4377_v29  ;;  %4491 = vperm.xlu0 %5933, %v4462_v61   ;;  %4479 = vperm.xlu1 %5934, %v4458_v14   ;;  %v7650_v36 = vmul.f32 %v4719_v6, %v4462_v61 }
0x2901   :  { %v7652_v4 = vmul.f32 %v4715_v34, %v4458_v14 }
0x2902   :  { %v4463_v51 = vadd.f32 %v7593_v15, %v4439_v17  ;;  %v4459_v57 = vadd.f32 %v7595_v24, %v4435_v16 }
0x2904   :  { %4494 = vperm.xlu0 %5933, %v4463_v51   ;;  %4482 = vperm.xlu1 %5934, %v4459_v57   ;;  %v7656_v11 = vmul.f32 %v4719_v6, %v4463_v51  ;;  %v7658_v23 = vmul.f32 %v4715_v34, %v4459_v57 }
0x2977   :  { %v4477_v39 = vpop.permute.xlu0 %4476  ;;  %v4474_v58 = vpop.permute.xlu1 %4473 }
0x2978   :  { %v4503_v32 = vrot.slane %v4477_v39, %v6688_v42  ;;  %v4499_v28 = vrot.slane %v4474_v58, %v6601_v53 }
0x297a   :  { %v4504_v41 = vsel %vm845_vm6, %v4503_v32, %v4499_v28 }
0x297b   :  { %v4489_v59 = vpop.permute.xlu0 %4488  ;;  %v4486_v29 = vpop.permute.xlu1 %4485 }
0x297c   :  { %v4522_v15 = vrot.slane %v4489_v59, %v6688_v42  ;;  %v4518_v24 = vrot.slane %v4486_v29, %v6601_v53 }
0x297e   :  { %v4523_v18 = vsel %vm845_vm6, %v4522_v15, %v4518_v24 }
0x297f   :  { %v4492_v27 = vpop.permute.xlu0 %4491  ;;  %v4480_v20 = vpop.permute.xlu1 %4479 }
0x2980   :  { %v4527_v26 = vrot.slane %v4492_v27, %v6691_v45  ;;  %v4508_v13 = vrot.slane %v4480_v20, %v6691_v45 }
0x2982   :  { %v4528_v47 = vsel %vm852_vm7, %v4527_v26, %v4523_v18  ;;  %v4509_v19 = vsel %vm852_vm7, %v4508_v13, %v4504_v41  ;;  %v4649_v18 = vrot.slane %v7295_v55, %v6999_v10 }
0x2983   :  { %v4495_v5 = vpop.permute.xlu0 %4494  ;;  %v4483_v34 = vpop.permute.xlu1 %4482 }
0x2984   :  { %v4532_v12 = vrot.slane %v4495_v5, %v6694_v48  ;;  %v4513_v46 = vrot.slane %v4483_v34, %v6694_v48 }
0x2986   :  { %v4533_v6 = vsel %vm859_vm8, %v4532_v12, %v4528_v47  ;;  %v4514_v2 = vsel %vm859_vm8, %v4513_v46, %v4509_v19 }
0x2987   :  { %v4534_v21 = vsel %vm585_vm4, %v4533_v6, %v4514_v2 }
0x2988   :  { %5627 = vmatmul.mubr.msk.f32.vlgmr.msra.gmra.mrb[16].mxu0 %vm142_vm0, %v4534_v21  ;;  %v4653_v21 = vrot.slane %v7297_v33, %v6999_v10 }
0x2989   :  { %5672 = vmatprep.mubr.msk.f32.mxu0 %vm6217_vm3, %v6218_v60 }
0x2a5b   :  { %v4603_v56 = vpop.f32.mrb[16].mxu0 }
0x2a5c   :  { %v4608_v25 = vrot.slane %v4603_v56, 2  ;;  %v4609_v61 = vrot.slane %v4603_v56, 3  ;;  %v5628_v14 = vpop.f32.mrb[17].mxu0  ;;  %v4987_v56 = vrot.slane %v7302_v50, %v7062_v31 }
0x2a5e   :  { %4628 = vrot.lane.b32.xlu0 %v4609_v61, %s6216_s15  ;;  %4626 = vrot.lane.b32.xlu1 %v4608_v25, %s6216_s15  ;;  %v4612_v22 = vadd.f32 %v4608_v25, %v6587_v30  ;;  %v4613_v35 = vadd.f32 %v4609_v61, %v6591_v8 }
0x2a60   :  { %v5250_v17 = vmul.f32 -1.442695, %v4612_v22  ;;  %v5251_v16 = vmul.f32 -1.442695, %v4613_v35 }
0x2a62   :  { %6155 = vpow2.f32 %v5250_v17 }
0x2a63   :  { %6157 = vpow2.f32 %v5251_v16 }
0x2a6c   :  { %v6156_v51 = vpop.eup %6155 }
0x2a6d   :  { %v6158_v57 = vpop.eup %6157  ;;  %v4620_v39 = vadd.f32 1.0, %v6156_v51 }
0x2a6e   :  { %v4621_v60 = vadd.f32 1.0, %v6158_v57 }
0x2a6f   :  { %6159 = vrcp.f32 %v4620_v39 }
0x2a70   :  { %6161 = vrcp.f32 %v4621_v60 }
0x2a79   :  { %v6160_v58 = vpop.eup %6159 }
0x2a7a   :  { %v6162_v59 = vpop.eup %6161 }
0x2ad0   :  { %v4629_v29 = vpop.permute.xlu0 %4628  ;;  %v4627_v27 = vpop.permute.xlu1 %4626 }
0x2ad1   :  { %v4633_v20 = vmul.f32 %v6162_v59, %v4629_v29  ;;  %v4632_v32 = vmul.f32 %v6160_v58, %v4627_v27 }
0x2ad3   :  { %4638 = vrot.lane.b32.xlu0 %v4633_v20, %s6213_s22  ;;  %4636 = vrot.lane.b32.xlu1 %v4632_v32, %s6213_s22 }
0x2b45   :  { %v4639_v28 = vpop.permute.xlu0 %4638  ;;  %v4637_v15 = vpop.permute.xlu1 %4636 }
0x2b46   :  { %v4642_v24 = vadd.f32 %v4637_v15, %v6608_v3  ;;  %v4643_v26 = vadd.f32 %v4639_v28, %v6612_v7 }
0x2b48   :  { %6163 = vtanh.f32 %v4642_v24 }
0x2b49   :  { %6165 = vtanh.f32 %v4643_v26 }
0x2b52   :  { %v6164_v13 = vpop.eup %6163 }
0x2b53   :  { %v4659_v5 = vrot.slane %v6164_v13, %v6999_v10  ;;  %v6166_v34 = vpop.eup %6165 }
0x2b54   :  { %v4679_v41 = vrot.slane %v6166_v34, %v6999_v10  ;;  %v4991_v10 = vrot.slane %v7307_v38, %v7062_v31 }
0x2b55   :  { %4666 = vbcast.lane.b32.xlu0 %v4659_v5, 296  ;;  %4662 = vbcast.lane.b32.xlu1 %v4659_v5, 288 }
0x2b59   :  { %4686 = vbcast.lane.b32.xlu0 %v4679_v41, 296  ;;  %4682 = vbcast.lane.b32.xlu1 %v4679_v41, 288 }
0x2b5d   :  { %4690 = vbcast.lane.b32.xlu0 %v4679_v41, 304  ;;  %4670 = vbcast.lane.b32.xlu1 %v4659_v5, 304 }
0x2b61   :  { %4694 = vbcast.lane.b32.xlu0 %v4679_v41, 312  ;;  %4674 = vbcast.lane.b32.xlu1 %v4659_v5, 312 }
0x2bc7   :  { %v4667_v12 = vpop.permute.xlu0 %4666  ;;  %v4663_v46 = vpop.permute.xlu1 %4662 }
0x2bc8   :  { %v4705_v47 = vmul.f32 %v4667_v12, %v4649_v18  ;;  %v4704_v19 = vmul.f32 %v4663_v46, %v4649_v18 }
0x2bca   :  { %v4729_v6 = vadd.f32 %v7636_v40, %v4705_v47  ;;  %v4728_v2 = vadd.f32 %v7638_v9, %v4704_v19 }
0x2bcb   :  { %v4687_v25 = vpop.permute.xlu0 %4686  ;;  %v4683_v61 = vpop.permute.xlu1 %4682 }
0x2bcc   :  { %v4709_v14 = vmul.f32 %v4687_v25, %v4653_v21  ;;  %v4708_v22 = vmul.f32 %v4683_v61, %v4653_v21  ;;  %4748 = vperm.xlu0 %5933, %v4729_v6   ;;  %4745 = vperm.xlu1 %5934, %v4728_v2   ;;  %v7696_v35 = vmul.f32 %v4987_v56, %v4729_v6 }
0x2bcd   :  { %v7698_v17 = vmul.f32 %v4987_v56, %v4728_v2 }
0x2bce   :  { %v4733_v40 = vadd.f32 %v7644_v63, %v4709_v14  ;;  %v4732_v9 = vadd.f32 %v7646_v52, %v4708_v22 }
0x2bcf   :  { %v4691_v16 = vpop.permute.xlu0 %4690  ;;  %v4671_v51 = vpop.permute.xlu1 %4670 }
0x2bd0   :  { %v4710_v50 = vmul.f32 %v4691_v16, %v4653_v21  ;;  %v4706_v57 = vmul.f32 %v4671_v51, %v4649_v18  ;;  %4760 = vperm.xlu0 %5933, %v4733_v40   ;;  %4757 = vperm.xlu1 %5934, %v4732_v9   ;;  %v7704_v39 = vmul.f32 %v4991_v10, %v4733_v40 }
0x2bd1   :  { %v7706_v60 = vmul.f32 %v4991_v10, %v4732_v9 }
0x2bd2   :  { %v4734_v58 = vadd.f32 %v7650_v36, %v4710_v50  ;;  %v4730_v59 = vadd.f32 %v7652_v4, %v4706_v57 }
0x2bd3   :  { %v4695_v63 = vpop.permute.xlu0 %4694  ;;  %v4675_v29 = vpop.permute.xlu1 %4674 }
0x2bd4   :  { %v4711_v52 = vmul.f32 %v4695_v63, %v4653_v21  ;;  %v4707_v27 = vmul.f32 %v4675_v29, %v4649_v18  ;;  %4763 = vperm.xlu0 %5933, %v4734_v58   ;;  %4751 = vperm.xlu1 %5934, %v4730_v59   ;;  %v7710_v38 = vmul.f32 %v4991_v10, %v4734_v58 }
0x2bd5   :  { %v7712_v20 = vmul.f32 %v4987_v56, %v4730_v59 }
0x2bd6   :  { %v4735_v32 = vadd.f32 %v7656_v11, %v4711_v52  ;;  %v4731_v28 = vadd.f32 %v7658_v23, %v4707_v27 }
0x2bd8   :  { %4766 = vperm.xlu0 %5933, %v4735_v32   ;;  %4754 = vperm.xlu1 %5934, %v4731_v28   ;;  %v7716_v15 = vmul.f32 %v4991_v10, %v4735_v32  ;;  %v7718_v36 = vmul.f32 %v4987_v56, %v4731_v28 }
0x2c4b   :  { %v4749_v4 = vpop.permute.xlu0 %4748  ;;  %v4746_v24 = vpop.permute.xlu1 %4745 }
0x2c4c   :  { %v4775_v41 = vrot.slane %v4749_v4, %v6688_v42  ;;  %v4771_v18 = vrot.slane %v4746_v24, %v6601_v53 }
0x2c4e   :  { %v4776_v6 = vsel %vm845_vm6, %v4775_v41, %v4771_v18  ;;  %v5083_v41 = vld [vmem:[%s7854_s2 + $0x200] sm:$0xff]  ;;  %v5085_v18 = vld [vmem:[%s7854_s2 + $0x210] sm:$0xff] }
0x2c4f   :  { %v4761_v26 = vpop.permute.xlu0 %4760  ;;  %v4758_v13 = vpop.permute.xlu1 %4757 }
0x2c50   :  { %v4794_v11 = vrot.slane %v4761_v26, %v6688_v42  ;;  %v4790_v23 = vrot.slane %v4758_v13, %v6601_v53 }
0x2c52   :  { %v4795_v2 = vsel %vm845_vm6, %v4794_v11, %v4790_v23  ;;  %v5086_v11 = vld [vmem:[%s7854_s2 + $0x218] sm:$0xff] }
0x2c53   :  { %v4764_v5 = vpop.permute.xlu0 %4763  ;;  %v4752_v34 = vpop.permute.xlu1 %4751  ;;  %v5869_v23 = vpack.c.bf16 %v5086_v11, %v5085_v18 }
0x2c54   :  { %v4799_v12 = vrot.slane %v4764_v5, %v6691_v45  ;;  %v4780_v46 = vrot.slane %v4752_v34, %v6691_v45 }
0x2c56   :  { %v4800_v25 = vsel %vm852_vm7, %v4799_v12, %v4795_v2  ;;  %v4781_v42 = vsel %vm852_vm7, %v4780_v46, %v4776_v6  ;;  %v5087_v12 = vld [vmem:[%s7854_s2 + $0x220] sm:$0xff]  ;;  %v5088_v46 = vld [vmem:[%s7854_s2 + $0x228] sm:$0xff] }
0x2c57   :  { %v4767_v47 = vpop.permute.xlu0 %4766  ;;  %v4755_v19 = vpop.permute.xlu1 %4754 }
0x2c58   :  { %v4804_v21 = vrot.slane %v4767_v47, %v6694_v48  ;;  %v4785_v56 = vrot.slane %v4755_v19, %v6694_v48  ;;  %v5872_v47 = vpack.c.bf16 %v5088_v46, %v5087_v12  ;;  %v4921_v19 = vrot.slane %v7295_v55, %v7062_v31 }
0x2c5a   :  { %v4805_v53 = vsel %vm859_vm8, %v4804_v21, %v4800_v25  ;;  %v4786_v61 = vsel %vm859_vm8, %v4785_v56, %v4781_v42 }
0x2c5b   :  { %v4806_v45 = vsel %vm585_vm4, %v4805_v53, %v4786_v61  ;;  %v4925_v53 = vrot.slane %v7297_v33, %v7062_v31  ;;  %v5090_v33 = vld [vmem:[%s7854_s2 + $0x238] sm:$0xff] }
0x2c5c   :  { %5638 = vmatmul.mubr.msk.f32.vlgmr.msra.gmra.mrb[22].mxu1 %vm142_vm0, %v4806_v45 }
0x2d2f   :  { %v4875_v14 = vpop.f32.mrb[22].mxu1 }
0x2d30   :  { %v4880_v22 = vrot.slane %v4875_v14, 1  ;;  %v4881_v40 = vrot.slane %v4875_v14, 2  ;;  %v5639_v9 = vpop.f32.mrb[23].mxu1 }
0x2d32   :  { %4900 = vrot.lane.b32.xlu0 %v4881_v40, %s6216_s15  ;;  %4898 = vrot.lane.b32.xlu1 %v4880_v22, %s6216_s15  ;;  %v4884_v48 = vadd.f32 %v4880_v22, %v6587_v30  ;;  %v4885_v10 = vadd.f32 %v4881_v40, %v6591_v8 }
0x2d34   :  { %v5253_v16 = vmul.f32 -1.442695, %v4884_v48  ;;  %v5254_v51 = vmul.f32 -1.442695, %v4885_v10 }
0x2d36   :  { %6167 = vpow2.f32 %v5253_v16 }
0x2d37   :  { %6169 = vpow2.f32 %v5254_v51 }
0x2d40   :  { %v6168_v50 = vpop.eup %6167 }
0x2d41   :  { %v6170_v57 = vpop.eup %6169  ;;  %v4892_v58 = vadd.f32 1.0, %v6168_v50 }
0x2d42   :  { %v4893_v59 = vadd.f32 1.0, %v6170_v57 }
0x2d43   :  { %6171 = vrcp.f32 %v4892_v58 }
0x2d44   :  { %6173 = vrcp.f32 %v4893_v59 }
0x2d4d   :  { %v6172_v63 = vpop.eup %6171 }
0x2d4e   :  { %v6174_v29 = vpop.eup %6173 }
0x2da4   :  { %v4901_v52 = vpop.permute.xlu0 %4900  ;;  %v4899_v27 = vpop.permute.xlu1 %4898 }
0x2da5   :  { %v4905_v32 = vmul.f32 %v6174_v29, %v4901_v52  ;;  %v4904_v28 = vmul.f32 %v6172_v63, %v4899_v27  ;;  %v5091_v29 = vld [vmem:[%s7854_s2 + $0x240] sm:$0xff]  ;;  %v5092_v52 = vld [vmem:[%s7854_s2 + $0x248] sm:$0xff] }
0x2da6   :  { %v5878_v27 = vpack.c.bf16 %v5092_v52, %v5091_v29 }
0x2da7   :  { %4910 = vrot.lane.b32.xlu0 %v4905_v32, %s6213_s22  ;;  %4908 = vrot.lane.b32.xlu1 %v4904_v28, %s6213_s22 }
0x2e19   :  { %v4911_v30 = vpop.permute.xlu0 %4910  ;;  %v4909_v8 = vpop.permute.xlu1 %4908 }
0x2e1a   :  { %v4914_v4 = vadd.f32 %v4909_v8, %v6608_v3  ;;  %v4915_v24 = vadd.f32 %v4911_v30, %v6612_v7  ;;  %v5084_v3 = vld [vmem:[%s7854_s2 + $0x208] sm:$0xff]  ;;  %v5095_v30 = vld [vmem:[%s7854_s2 + $0x260] sm:$0xff] }
0x2e1b   :  { %v5866_v7 = vpack.c.bf16 %v5084_v3, %v5083_v41  ;;  %v5096_v8 = vld [vmem:[%s7854_s2 + $0x268] sm:$0xff] }
0x2e1c   :  { %6175 = vtanh.f32 %v4914_v4  ;;  %v5097_v4 = vld [vmem:[%s7854_s2 + $0x270] sm:$0xff] }
0x2e1d   :  { %6177 = vtanh.f32 %v4915_v24  ;;  %5867 = vmatpush3.bf16.msra.mxu0 %v5866_v7  ;;  %v5884_v24 = vpack.c.bf16 %v5096_v8, %v5095_v30 }
0x2e1e   :  { %5868 = vmatprep.subr.bf16.mxu0 %v7858_v0 }
0x2e21   :  { %5870 = vmatpush3.bf16.msra.mxu0 %v5869_v23 }
0x2e22   :  { %5871 = vmatprep.subr.bf16.mxu0 %v7858_v0 }
0x2e25   :  { %5873 = vmatpush3.bf16.msra.mxu0 %v5872_v47 }
0x2e26   :  { %v6176_v26 = vpop.eup %6175  ;;  %5874 = vmatprep.subr.bf16.mxu0 %v7858_v0 }
0x2e27   :  { %v4931_v13 = vrot.slane %v6176_v26, %v7062_v31  ;;  %v6178_v5 = vpop.eup %6177  ;;  %v5098_v26 = vld [vmem:[%s7854_s2 + $0x278] sm:$0xff] }
0x2e28   :  { %v4951_v34 = vrot.slane %v6178_v5, %v7062_v31  ;;  %v5089_v31 = vld [vmem:[%s7854_s2 + $0x230] sm:$0xff] }
0x2e29   :  { %4938 = vbcast.lane.b32.xlu0 %v4931_v13, 296  ;;  %4934 = vbcast.lane.b32.xlu1 %v4931_v13, 288  ;;  %v5875_v57 = vpack.c.bf16 %v5090_v33, %v5089_v31 }
0x2e2b   :  { %5876 = vmatpush3.bf16.msra.mxu0 %v5875_v57 }
0x2e2c   :  { %5877 = vmatprep.subr.bf16.mxu0 %v7858_v0 }
0x2e2d   :  { %4958 = vbcast.lane.b32.xlu0 %v4951_v34, 296  ;;  %4954 = vbcast.lane.b32.xlu1 %v4951_v34, 288 }
0x2e2f   :  { %5879 = vmatpush3.bf16.msra.mxu0 %v5878_v27 }
0x2e30   :  { %5880 = vmatprep.subr.bf16.mxu0 %v7858_v0 }
0x2e31   :  { %4962 = vbcast.lane.b32.xlu0 %v4951_v34, 304  ;;  %4942 = vbcast.lane.b32.xlu1 %v4931_v13, 304 }
0x2e35   :  { %4966 = vbcast.lane.b32.xlu0 %v4951_v34, 312  ;;  %4946 = vbcast.lane.b32.xlu1 %v4931_v13, 312  ;;  %v5887_v13 = vpack.c.bf16 %v5098_v26, %v5097_v4 }
0x2e9b   :  { %v4939_v6 = vpop.permute.xlu0 %4938  ;;  %v4935_v2 = vpop.permute.xlu1 %4934 }
0x2e9c   :  { %v4977_v21 = vmul.f32 %v4939_v6, %v4921_v19  ;;  %v4976_v56 = vmul.f32 %v4935_v2, %v4921_v19 }
0x2e9e   :  { %v5001_v25 = vadd.f32 %v7696_v35, %v4977_v21  ;;  %v5000_v42 = vadd.f32 %v7698_v17, %v4976_v56 }
0x2e9f   :  { %v4959_v61 = vpop.permute.xlu0 %4958  ;;  %v4955_v45 = vpop.permute.xlu1 %4954 }
0x2ea0   :  { %v5955_v14 = vpack.i.bf16 %v5001_v25, %v5000_v42  ;;  %v4981_v22 = vmul.f32 %v4959_v61, %v4925_v53  ;;  %v4980_v40 = vmul.f32 %v4955_v45, %v4925_v53 }
0x2ea2   :  { %v5005_v9 = vadd.f32 %v7704_v39, %v4981_v22  ;;  %v5004_v55 = vadd.f32 %v7706_v60, %v4980_v40  ;;  %5956 = vperm.xlu1 %5934, %v5955_v14  }
0x2ea3   :  { %v4963_v48 = vpop.permute.xlu0 %4962  ;;  %v4943_v10 = vpop.permute.xlu1 %4942 }
0x2ea4   :  { %v5960_v16 = vpack.i.bf16 %v5005_v9, %v5004_v55  ;;  %v4982_v51 = vmul.f32 %v4963_v48, %v4925_v53  ;;  %v4978_v35 = vmul.f32 %v4943_v10, %v4921_v19 }
0x2ea6   :  { %v5006_v17 = vadd.f32 %v7710_v38, %v4982_v51  ;;  %v5002_v50 = vadd.f32 %v7712_v20, %v4978_v35  ;;  %5961 = vperm.xlu0 %5933, %v5960_v16  }
0x2ea7   :  { %v4967_v39 = vpop.permute.xlu0 %4966  ;;  %v4947_v60 = vpop.permute.xlu1 %4946 }
0x2ea8   :  { %v5965_v58 = vpack.i.bf16 %v5006_v17, %v5002_v50  ;;  %v4983_v59 = vmul.f32 %v4967_v39, %v4925_v53  ;;  %v4979_v63 = vmul.f32 %v4947_v60, %v4921_v19 }
0x2eaa   :  { %v5007_v38 = vadd.f32 %v7716_v15, %v4983_v59  ;;  %v5003_v20 = vadd.f32 %v7718_v36, %v4979_v63  ;;  %5966 = vperm.xlu1 %5934, %v5965_v58   ;;  %v5093_v15 = vld [vmem:[%s7854_s2 + $0x250] sm:$0xff]  ;;  %v5094_v36 = vld [vmem:[%s7854_s2 + $0x258] sm:$0xff] }
0x2eab   :  { %v5881_v28 = vpack.c.bf16 %v5094_v36, %v5093_v15 }
0x2eac   :  { %v5970_v32 = vpack.i.bf16 %v5007_v38, %v5003_v20 }
0x2ead   :  { %5882 = vmatpush3.bf16.msra.mxu0 %v5881_v28 }
0x2eae   :  { %5971 = vperm.xlu0 %5933, %v5970_v32   ;;  %5883 = vmatprep.subr.bf16.mxu0 %v7858_v0 }
0x2eb1   :  { %5885 = vmatpush3.bf16.msra.mxu0 %v5884_v24 }
0x2eb2   :  { %5886 = vmatprep.subr.bf16.mxu0 %v7858_v0 }
0x2eb5   :  { %5888 = vmatpush3.bf16.msra.mxu0 %v5887_v13 }
0x2f21   :  { %v5957_v5 = vpop.permute.xlu1 %5956 }
0x2f22   :  { %v5959_v41 = vunpack.i.h.bf16 %v5957_v5  ;;  %v5958_v3 = vunpack.i.l.bf16 %v5957_v5 }
0x2f24   :  { %v5047_v46 = vrot.slane %v5959_v41, %v7209_v62  ;;  %v5043_v47 = vrot.slane %v5958_v3, %v7206_v1 }
0x2f25   :  { %v5962_v34 = vpop.permute.xlu0 %5961 }
0x2f26   :  { %v5964_v7 = vunpack.i.h.bf16 %v5962_v34  ;;  %v5963_v18 = vunpack.i.l.bf16 %v5962_v34  ;;  %v5048_v42 = vsel %vm2755_vm9, %v5047_v46, %v5043_v47 }
0x2f28   :  { %v5066_v19 = vrot.slane %v5964_v7, %v7209_v62  ;;  %v5062_v6 = vrot.slane %v5963_v18, %v7206_v1 }
0x2f29   :  { %v5967_v11 = vpop.permute.xlu1 %5966 }
0x2f2a   :  { %v5969_v23 = vunpack.i.h.bf16 %v5967_v11  ;;  %v5968_v12 = vunpack.i.l.bf16 %v5967_v11  ;;  %v5067_v53 = vsel %vm2755_vm9, %v5066_v19, %v5062_v6 }
0x2f2c   :  { %v5071_v0 = vrot.slane %v5969_v23, %v7213_v37  ;;  %v5052_v2 = vrot.slane %v5968_v12, %v7213_v37 }
0x2f2d   :  { %v5972_v21 = vpop.permute.xlu0 %5971 }
0x2f2e   :  { %v5974_v56 = vunpack.i.h.bf16 %v5972_v21  ;;  %v5973_v25 = vunpack.i.l.bf16 %v5972_v21  ;;  %v5072_v14 = vsel %vm2762_vm10, %v5071_v0, %v5067_v53  ;;  %v5053_v62 = vsel %vm2762_vm10, %v5052_v2, %v5048_v42 }
0x2f30   :  { %v5076_v61 = vrot.slane %v5974_v56, %v7216_v43  ;;  %v5057_v45 = vrot.slane %v5973_v25, %v7216_v43  ;;  %v5255_v43 = vld [vmem:[%s7854_s2 + $0x285] ss:$0 sm:$0xff] }
0x2f32   :  { %v5058_v1 = vsel %vm2769_vm11, %v5057_v45, %v5053_v62  ;;  %v5077_v22 = vsel %vm2769_vm11, %v5076_v61, %v5072_v14 }
0x2f33   :  { %v5078_v37 = vsel %vm585_vm4, %v5077_v22, %v5058_v1 }
0x2f34   :  { %v5080_v40 = vsel %vm142_vm0, %v7256_v44, %v5078_v37 }
0x2f35   :  { %v5081_v9 = vsel %vm145_vm1, %v5080_v40, %v7232_v49 }
0x2f36   :  { %v5082_v55 = vsel %vm148_vm2, %v5081_v9, %v7235_v54 }
0x2f37   :  { %5673 = vmatmul.mubr.f32.vlgmr.msra.gmra.mrb[18].mxu0 %v5082_v55 }
0x300a   :  { %v5170_v48 = vpop.f32.mrb[18].mxu0 }
0x300b   :  { %v5171_v10 = vadd.f32 %v5255_v43, %v5170_v48  ;;  %v5674_v16 = vpop.f32.mrb[19].mxu0 }
0x300d   :  { %v5174_v51 = vmax.f32 %v5171_v10, 0.0 }
0x300f   :  { %5176 = vrot.lane.b32.xlu1 %v5174_v51, %s6213_s22 }
0x3081   :  { %v5177_v35 = vpop.permute.xlu1 %5176 }
0x3082   :  { %v5179_v49 = vsel %vm142_vm0, %v7256_v44, %v5177_v35 }
0x3083   :  { %5181 = vst.msk [vmem:[#allocation2] sm:$0x3] %vm5180_vm12, %v5179_v49 }
0x3084   :  { %6199 = shalt.err (!%p6196_p4)
}
0x3085   :  { %s6200_s22 = scalar_lea.hbm %s7855_s3, 32 }
0x3086   :  { %p6201_p5 = scmp.ne.s32.totalorder %s7855_s3, %s6200_s22  ;;  %p6204_p6 = scmp.lt.u32.totalorder %s6200_s22, %s7855_s3 }
0x3088   :  { %p6206_p7 = pnand %p6204_p6, %p6201_p5 }
0x308a   :  { %6209 = shalt.err (!%p6206_p7)
}
0x308b   :  { %5191 = dma.vmem_to_hbm [thread:$0]  %s5189_s30, 32, %s7855_s3, [#allocation3]  }
0x308c   :  { %6210 = dma.done.wait [#allocation3], 32  }
0x308d   :  { %6211 = vsyncadd [#allocation3], 4294967264 }
0x308e   :  { %5195 = vsyncpa [#allocation3], 1 }

</bundles_post_ra>
